<compile_context>
chip_gen: v6e
topology: v6e:2x2x1
jax: 0.10.0
libtpu: 0.0.40
codegen_flags: <defaults>
</compile_context>

<pallas_src>
from functools import partial

import jax
import jax.numpy as jnp
from jax import lax
from jax.experimental import pallas as pl
from jax.experimental.pallas import tpu as pltpu


# ------------------------------- Pallas kernel ----------------------------------
def _coupling_kernel(x_ref, w1_ref, b1_ref, w2_ref, b2_ref, y_ref, ldg_ref, *,
                     d_half):
    x = x_ref[...]                                   # (TB, D) f32
    x_a = x[:, :d_half]                              # conditioning (masked) half
    x_b = x[:, d_half:]                              # transformed half

    # nnet(x_a) restricted to the rows/columns actually consumed (static mask
    # exploited structurally); bf16 MXU inputs, f32 accumulation, f32 biases.
    h = jnp.dot(x_a.astype(jnp.bfloat16), w1_ref[...],
                preferred_element_type=jnp.float32) + b1_ref[...]
    h = jnp.maximum(h, 0.0)
    f = jnp.dot(h.astype(jnp.bfloat16), w2_ref[...],
                preferred_element_type=jnp.float32) + b2_ref[...]
    # f lane layout: [ s-half | t-half ], each d_half wide.

    # s = sigmoid(z) * 0.98 + 0.01  ==  0.49 * tanh(z/2) + 0.5   (single EUP tanh)
    s = 0.49 * jnp.tanh(0.5 * f[:, :d_half]) + 0.5
    t = f[:, d_half:]

    # Only the transformed half of y is written; the conditioning half of the
    # (x-aliased) output buffer already holds x — no redundant writeback.
    y_ref[...] = x_b * s + t * (1.0 - s)

    # _logdetgrad: per-row sum of log(s) over the transformed half (s in
    # [0.01, 0.99] so log is safe).  Emitted as a lane-dense (8, TB) block
    # (identical rows) via a tiny ones·log_sᵀ contraction on the MXU — avoids
    # both a masked (TB,1) store and a (TB,128) padding slab.
    log_s = jnp.log(s)                                       # (TB, d_half)
    ones_rows = jnp.ones((8, d_half), jnp.float32)
    ldg_ref[...] = lax.dot_general(
        ones_rows, log_s,
        dimension_numbers=(((1,), (1,)), ((), ())),          # contract d_half (A·Bᵀ)
        preferred_element_type=jnp.float32)                  # (8, TB)


# --------------------------- one-time parameter prep ------------------------------
def prepare_params(params):
    """Slice/concat the weights for the static channel0 mask and cast the matmul
    operands to bf16.  Do this once at parameter-load time, not per call."""
    D, H = params["w1"].shape
    d_half = D // 2
    # Only the first D//2 rows of w1 ever see non-zero inputs; only the s/t
    # columns mapping to the transformed half are consumed downstream.
    w1s = params["w1"][:d_half, :].astype(jnp.bfloat16)                    # (D/2, H)
    w2s = jnp.concatenate([params["w2"][:, d_half:D],
                           params["w2"][:, D + d_half:2 * D]],
                          axis=1).astype(jnp.bfloat16)                     # (H, D)
    b2s = jnp.concatenate([params["b2"][:, d_half:D],
                           params["b2"][:, D + d_half:2 * D]], axis=1)     # (1, D)
    return {"w1s": w1s, "b1": params["b1"], "w2s": w2s, "b2s": b2s}


def _pick_block_b(B):
    # Prefer 256-512 row tiles (fills the 256-wide MXU M dim on v6e/v7x and
    # amortizes per-step overhead) with an even number of grid steps so v7x's
    # two TensorCores get equal work; fall back to one full-batch block.
    for tb in (512, 256, 128):
        if B % tb == 0 and (B // tb) % 2 == 0:
            return tb
    for tb in (512, 256, 128):
        if B % tb == 0:
            return tb
    return B


# ------------------------------- host wrapper ------------------------------------
def masked_coupling_forward(x, prepped, logp=None, *, block_b=None):
    """Fused MaskedCouplingBlock forward.

    NOTE: x is aliased into the y output.  Under jit, donate x and do not reuse
    it afterwards; without donation XLA inserts a copy (correct, not in-place).
    """
    w1s, b1, w2s, b2s = prepped["w1s"], prepped["b1"], prepped["w2s"], prepped["b2s"]
    B, D = x.shape
    d_half, H = w1s.shape
    assert D == 2 * d_half and d_half % 128 == 0, (
        "optimized kernel requires D//2 to be a lane-aligned multiple of 128")
    if block_b is None:
        block_b = _pick_block_b(B)
    assert B % block_b == 0, "batch must be divisible by the batch tile"
    assert block_b % 128 == 0 or block_b == B, "ldg block must stay lane-aligned"

    # Per-step VMEM footprint: x in + half-y out + ldg out (double-buffered),
    # weights resident (ideally single-buffered).  Keep the scoped limit
    # explicit and well under v7x's 64 MiB.
    est = (2 * block_b * D * 4 + 2 * block_b * d_half * 4 + 2 * 8 * block_b * 4
           + w1s.size * 2 + w2s.size * 2 + (b1.size + b2s.size) * 4)
    vmem_limit = int(min(48 * 1024 * 1024, max(32 * 1024 * 1024, 2 * est)))

    kernel = partial(_coupling_kernel, d_half=d_half)
    out_shape = (jax.ShapeDtypeStruct((B, D), jnp.float32),    # y (aliases x)
                 jax.ShapeDtypeStruct((8, B), jnp.float32))    # ldg rows (row 0 used)

    def build(single_buffer_weights):
        wkw = {"pipeline_mode": pl.Buffered(1)} if single_buffer_weights else {}
        in_specs = [
            pl.BlockSpec((block_b, D), lambda i: (i, 0)),               # x: batch-tiled
            pl.BlockSpec((d_half, H), lambda i: (0, 0), **wkw),         # w1 (resident)
            pl.BlockSpec((1, H), lambda i: (0, 0), **wkw),              # b1
            pl.BlockSpec((H, 2 * d_half), lambda i: (0, 0), **wkw),     # w2 (resident)
            pl.BlockSpec((1, 2 * d_half), lambda i: (0, 0), **wkw),     # b2
        ]
        out_specs = (
            pl.BlockSpec((block_b, d_half), lambda i: (i, 1)),  # transformed half only
            pl.BlockSpec((8, block_b), lambda i: (0, i)),       # lane-dense ldg rows
        )
        return pl.pallas_call(
            kernel,
            out_shape=out_shape,
            grid=(B // block_b,),
            in_specs=in_specs,
            out_specs=out_specs,
            input_output_aliases={0: 0},   # y aliases x: skip conditioning-half writeback
            compiler_params=pltpu.CompilerParams(
                dimension_semantics=("parallel",),   # megacore sharding on v7x
                vmem_limit_bytes=vmem_limit,
            ),
        )

    try:
        y, ldg = build(True)(x, w1s, b1, w2s, b2s)
    except Exception:
        # pl.Buffered(1) single-buffering unsupported on this jax/backend:
        # fall back to default double-buffered resident weights.
        y, ldg = build(False)(x, w1s, b1, w2s, b2s)

    if logp is None:
        return y
    return y, logp - ldg[0][:, None]


# -------------------- deterministic parameter init (no checkpoint) ---------------
def init_params(key, D, H):
    k1, k2 = jax.random.split(key)
    return {
        "w1": jax.random.normal(k1, (D, H), jnp.float32) * (1.0 / jnp.sqrt(D)),
        "b1": jnp.zeros((1, H), jnp.float32),
        "w2": jax.random.normal(k2, (H, 2 * D), jnp.float32) * 0.05,
        "b2": jnp.zeros((1, 2 * D), jnp.float32),
    }


# ------------------------- pure-JAX reference (mirrors torch) ---------------------
def reference_forward(x, params, logp=None):
    B, D = x.shape
    d_half = D // 2
    m = (jnp.arange(D) < d_half)[None, :]            # channel0 mask on dim 1
    x_a = jnp.where(m, x, 0.0)
    h = jax.nn.relu(x_a @ params["w1"] + params["b1"])
    f = (h @ params["w2"] + params["b2"]).reshape(B, 2, D)
    s = jax.nn.sigmoid(f[:, 0, :]) * 0.98 + 0.01
    t = f[:, 1, :]
    y = jnp.where(~m, x * s + t * (1.0 - s), 0.0) + x_a
    if logp is None:
        return y
    ldg = jnp.sum(jnp.log(jnp.where(~m, s, 1.0)), axis=1, keepdims=True)
    return y, logp - ldg


if __name__ == "__main__":
    B, D, H = 512, 256, 128     # D//2 = 128 lane-aligned; TB=256 -> grid=2 (even)
    key = jax.random.PRNGKey(0)
    kx, kp = jax.random.split(key)
    x = jax.random.normal(kx, (B, D), jnp.float32)
    params = init_params(kp, D, H)
    prepped = prepare_params(params)
    logp = jnp.zeros((B, 1), jnp.float32)

    # Compute the reference BEFORE the kernel call: x is aliased into y.
    y_ref, logpy_ref = reference_forward(x, params, logp=logp)
    jax.block_until_ready((y_ref, logpy_ref))

    y, logpy = masked_coupling_forward(x, prepped, logp=logp)
    jax.block_until_ready((y, logpy))

    assert y.shape == (B, D) and logpy.shape == (B, 1)
    # bf16 MXU inputs (f32 accumulation) -> relaxed tolerances vs the f32 reference.
    assert jnp.allclose(y, y_ref, rtol=2e-2, atol=5e-2), "y mismatch vs reference"
    assert jnp.allclose(logpy, logpy_ref, rtol=1e-2, atol=5e-1), "logpy mismatch vs reference"

    print("KERNEL_OK")
</pallas_src>

<mosaic_0001>
module attributes {stable_mosaic.version = 11 : i64} {
  func.func @_coupling_kernel(%arg0: i32, %arg1: memref<256x256xf32, #tpu.memory_space<vmem>>, %arg2: memref<128x128xbf16, #tpu.memory_space<vmem>>, %arg3: memref<1x128xf32, #tpu.memory_space<vmem>>, %arg4: memref<128x256xbf16, #tpu.memory_space<vmem>>, %arg5: memref<1x256xf32, #tpu.memory_space<vmem>>, %arg6: memref<256x128xf32, #tpu.memory_space<vmem>>, %arg7: memref<8x256xf32, #tpu.memory_space<vmem>>) attributes {dimension_semantics = [#tpu.dimension_semantics<parallel>], iteration_bounds = array<i64: 2>, scalar_prefetch = 0 : i64, scratch_operands = 0 : i64, tpu.core_type = #tpu.core_type<tc>, window_params = [{transform_indices = @transform_0, window_bounds = array<i64: 256, 256>}, {pipeline_mode = #tpu.pipeline_mode<synchronous>, transform_indices = @transform_1, window_bounds = array<i64: 128, 128>}, {pipeline_mode = #tpu.pipeline_mode<synchronous>, transform_indices = @transform_2, window_bounds = array<i64: 1, 128>}, {pipeline_mode = #tpu.pipeline_mode<synchronous>, transform_indices = @transform_3, window_bounds = array<i64: 128, 256>}, {pipeline_mode = #tpu.pipeline_mode<synchronous>, transform_indices = @transform_4, window_bounds = array<i64: 1, 256>}, {transform_indices = @transform_5, window_bounds = array<i64: 256, 128>}, {transform_indices = @transform_6, window_bounds = array<i64: 8, 256>}]} {
    %c0 = arith.constant 0 : index
    %c0_0 = arith.constant 0 : index
    %0 = vector.load %arg1[%c0, %c0_0] : memref<256x256xf32, #tpu.memory_space<vmem>>, vector<256x256xf32>
    %1 = vector.extract_strided_slice %0 {offsets = [0, 0], sizes = [256, 128], strides = [1, 1]} : vector<256x256xf32> to vector<256x128xf32>
    %2 = vector.extract_strided_slice %0 {offsets = [0, 128], sizes = [256, 128], strides = [1, 1]} : vector<256x256xf32> to vector<256x128xf32>
    %3 = arith.truncf %1 : vector<256x128xf32> to vector<256x128xbf16>
    %c0_1 = arith.constant 0 : index
    %c0_2 = arith.constant 0 : index
    %4 = vector.load %arg2[%c0_1, %c0_2] : memref<128x128xbf16, #tpu.memory_space<vmem>>, vector<128x128xbf16>
    %cst = arith.constant dense<0.000000e+00> : vector<256x128xf32>
    %5 = tpu.matmul %3, %4, %cst {dimension_numbers = #tpu.dot_dimension_numbers<[1], [0], [0], [1], [0, 0, 1, 1], [], []>} : vector<256x128xbf16>, vector<128x128xbf16>, vector<256x128xf32> -> vector<256x128xf32>
    %c0_3 = arith.constant 0 : index
    %c0_4 = arith.constant 0 : index
    %6 = vector.load %arg3[%c0_3, %c0_4] : memref<1x128xf32, #tpu.memory_space<vmem>>, vector<1x128xf32>
    %7 = vector.broadcast %6 : vector<1x128xf32> to vector<256x128xf32>
    %8 = arith.addf %5, %7 : vector<256x128xf32>
    %cst_5 = arith.constant 0.000000e+00 : f32
    %9 = vector.broadcast %cst_5 : f32 to vector<256x128xf32>
    %10 = arith.maximumf %8, %9 : vector<256x128xf32>
    %11 = arith.truncf %10 : vector<256x128xf32> to vector<256x128xbf16>
    %c0_6 = arith.constant 0 : index
    %c0_7 = arith.constant 0 : index
    %12 = vector.load %arg4[%c0_6, %c0_7] : memref<128x256xbf16, #tpu.memory_space<vmem>>, vector<128x256xbf16>
    %cst_8 = arith.constant dense<0.000000e+00> : vector<256x256xf32>
    %13 = tpu.matmul %11, %12, %cst_8 {dimension_numbers = #tpu.dot_dimension_numbers<[1], [0], [0], [1], [0, 0, 1, 1], [], []>} : vector<256x128xbf16>, vector<128x256xbf16>, vector<256x256xf32> -> vector<256x256xf32>
    %c0_9 = arith.constant 0 : index
    %c0_10 = arith.constant 0 : index
    %14 = vector.load %arg5[%c0_9, %c0_10] : memref<1x256xf32, #tpu.memory_space<vmem>>, vector<1x256xf32>
    %15 = vector.broadcast %14 : vector<1x256xf32> to vector<256x256xf32>
    %16 = arith.addf %13, %15 : vector<256x256xf32>
    %17 = vector.extract_strided_slice %16 {offsets = [0, 0], sizes = [256, 128], strides = [1, 1]} : vector<256x256xf32> to vector<256x128xf32>
    %cst_11 = arith.constant 5.000000e-01 : f32
    %18 = vector.broadcast %cst_11 : f32 to vector<256x128xf32>
    %19 = arith.mulf %18, %17 : vector<256x128xf32>
    %20 = math.tanh %19 : vector<256x128xf32>
    %cst_12 = arith.constant 4.900000e-01 : f32
    %21 = vector.broadcast %cst_12 : f32 to vector<256x128xf32>
    %22 = arith.mulf %21, %20 : vector<256x128xf32>
    %cst_13 = arith.constant 5.000000e-01 : f32
    %23 = vector.broadcast %cst_13 : f32 to vector<256x128xf32>
    %24 = arith.addf %22, %23 : vector<256x128xf32>
    %25 = vector.extract_strided_slice %16 {offsets = [0, 128], sizes = [256, 128], strides = [1, 1]} : vector<256x256xf32> to vector<256x128xf32>
    %26 = arith.mulf %2, %24 : vector<256x128xf32>
    %cst_14 = arith.constant 1.000000e+00 : f32
    %27 = vector.broadcast %cst_14 : f32 to vector<256x128xf32>
    %28 = arith.subf %27, %24 : vector<256x128xf32>
    %29 = arith.mulf %25, %28 : vector<256x128xf32>
    %30 = arith.addf %26, %29 : vector<256x128xf32>
    %c0_15 = arith.constant 0 : index
    %c0_16 = arith.constant 0 : index
    %31 = vector.load %arg6[%c0_15, %c0_16] : memref<256x128xf32, #tpu.memory_space<vmem>>, vector<256x128xf32>
    tpu.vector_store %arg6[%c0_15, %c0_16], %30 {strides = array<i32>} : memref<256x128xf32, #tpu.memory_space<vmem>>, vector<256x128xf32>,
    %32 = math.log %24 : vector<256x128xf32>
    %cst_17 = arith.constant 1.000000e+00 : f32
    %33 = vector.broadcast %cst_17 : f32 to vector<8x128xf32>
    %cst_18 = arith.constant dense<0.000000e+00> : vector<8x256xf32>
    %34 = tpu.matmul %33, %32, %cst_18 {dimension_numbers = #tpu.dot_dimension_numbers<[1], [1], [0], [0], [0, 0, 1, 0], [], []>} : vector<8x128xf32>, vector<256x128xf32>, vector<8x256xf32> -> vector<8x256xf32>
    %c0_19 = arith.constant 0 : index
    %c0_20 = arith.constant 0 : index
    %35 = vector.load %arg7[%c0_19, %c0_20] : memref<8x256xf32, #tpu.memory_space<vmem>>, vector<8x256xf32>
    tpu.vector_store %arg7[%c0_19, %c0_20], %34 {strides = array<i32>} : memref<8x256xf32, #tpu.memory_space<vmem>>, vector<8x256xf32>,
    return
  }
  func.func @transform_0(%arg0: i32) -> (i32, i32) {
    %c0_i32 = arith.constant 0 : i32
    %c0_i32_0 = arith.constant 0 : i32
    return %arg0, %c0_i32 : i32, i32
  }
  func.func @transform_1(%arg0: i32) -> (i32, i32) {
    %c0_i32 = arith.constant 0 : i32
    %c0_i32_0 = arith.constant 0 : i32
    %c0_i32_1 = arith.constant 0 : i32
    return %c0_i32, %c0_i32_0 : i32, i32
  }
  func.func @transform_2(%arg0: i32) -> (i32, i32) {
    %c0_i32 = arith.constant 0 : i32
    %c0_i32_0 = arith.constant 0 : i32
    %c0_i32_1 = arith.constant 0 : i32
    return %c0_i32, %c0_i32_0 : i32, i32
  }
  func.func @transform_3(%arg0: i32) -> (i32, i32) {
    %c0_i32 = arith.constant 0 : i32
    %c0_i32_0 = arith.constant 0 : i32
    %c0_i32_1 = arith.constant 0 : i32
    return %c0_i32, %c0_i32_0 : i32, i32
  }
  func.func @transform_4(%arg0: i32) -> (i32, i32) {
    %c0_i32 = arith.constant 0 : i32
    %c0_i32_0 = arith.constant 0 : i32
    %c0_i32_1 = arith.constant 0 : i32
    return %c0_i32, %c0_i32_0 : i32, i32
  }
  func.func @transform_5(%arg0: i32) -> (i32, i32) {
    %c1_i32 = arith.constant 1 : i32
    %c0_i32 = arith.constant 0 : i32
    return %arg0, %c1_i32 : i32, i32
  }
  func.func @transform_6(%arg0: i32) -> (i32, i32) {
    %c0_i32 = arith.constant 0 : i32
    %c0_i32_0 = arith.constant 0 : i32
    return %c0_i32, %arg0 : i32, i32
  }
}

module attributes {stable_mosaic.version = 11 : i64} {
  func.func @_coupling_kernel(%arg0: i32, %arg1: memref<256x256xf32, #tpu.memory_space<vmem>>, %arg2: memref<128x128xbf16, #tpu.memory_space<vmem>>, %arg3: memref<1x128xf32, #tpu.memory_space<vmem>>, %arg4: memref<128x256xbf16, #tpu.memory_space<vmem>>, %arg5: memref<1x256xf32, #tpu.memory_space<vmem>>, %arg6: memref<256x128xf32, #tpu.memory_space<vmem>>, %arg7: memref<8x256xf32, #tpu.memory_space<vmem>>) attributes {dimension_semantics = [#tpu.dimension_semantics<parallel>], iteration_bounds = array<i64: 2>, scalar_prefetch = 0 : i64, scratch_operands = 0 : i64, tpu.core_type = #tpu.core_type<tc>, window_params = [{transform_indices = @transform_0, window_bounds = array<i64: 256, 256>}, {pipeline_mode = #tpu.pipeline_mode<synchronous>, transform_indices = @transform_1, window_bounds = array<i64: 128, 128>}, {pipeline_mode = #tpu.pipeline_mode<synchronous>, transform_indices = @transform_2, window_bounds = array<i64: 1, 128>}, {pipeline_mode = #tpu.pipeline_mode<synchronous>, transform_indices = @transform_3, window_bounds = array<i64: 128, 256>}, {pipeline_mode = #tpu.pipeline_mode<synchronous>, transform_indices = @transform_4, window_bounds = array<i64: 1, 256>}, {transform_indices = @transform_5, window_bounds = array<i64: 256, 128>}, {transform_indices = @transform_6, window_bounds = array<i64: 8, 256>}]} {
    %c0 = arith.constant 0 : index
    %c0_0 = arith.constant 0 : index
    %0 = vector.load %arg1[%c0, %c0_0] : memref<256x256xf32, #tpu.memory_space<vmem>>, vector<256x256xf32>
    %1 = vector.extract_strided_slice %0 {offsets = [0, 0], sizes = [256, 128], strides = [1, 1]} : vector<256x256xf32> to vector<256x128xf32>
    %2 = vector.extract_strided_slice %0 {offsets = [0, 128], sizes = [256, 128], strides = [1, 1]} : vector<256x256xf32> to vector<256x128xf32>
    %3 = arith.truncf %1 : vector<256x128xf32> to vector<256x128xbf16>
    %c0_1 = arith.constant 0 : index
    %c0_2 = arith.constant 0 : index
    %4 = vector.load %arg2[%c0_1, %c0_2] : memref<128x128xbf16, #tpu.memory_space<vmem>>, vector<128x128xbf16>
    %cst = arith.constant dense<0.000000e+00> : vector<256x128xf32>
    %5 = tpu.matmul %3, %4, %cst {dimension_numbers = #tpu.dot_dimension_numbers<[1], [0], [0], [1], [0, 0, 1, 1], [], []>} : vector<256x128xbf16>, vector<128x128xbf16>, vector<256x128xf32> -> vector<256x128xf32>
    %c0_3 = arith.constant 0 : index
    %c0_4 = arith.constant 0 : index
    %6 = vector.load %arg3[%c0_3, %c0_4] : memref<1x128xf32, #tpu.memory_space<vmem>>, vector<1x128xf32>
    %7 = vector.broadcast %6 : vector<1x128xf32> to vector<256x128xf32>
    %8 = arith.addf %5, %7 : vector<256x128xf32>
    %cst_5 = arith.constant 0.000000e+00 : f32
    %9 = vector.broadcast %cst_5 : f32 to vector<256x128xf32>
    %10 = arith.maximumf %8, %9 : vector<256x128xf32>
    %11 = arith.truncf %10 : vector<256x128xf32> to vector<256x128xbf16>
    %c0_6 = arith.constant 0 : index
    %c0_7 = arith.constant 0 : index
    %12 = vector.load %arg4[%c0_6, %c0_7] : memref<128x256xbf16, #tpu.memory_space<vmem>>, vector<128x256xbf16>
    %cst_8 = arith.constant dense<0.000000e+00> : vector<256x256xf32>
    %13 = tpu.matmul %11, %12, %cst_8 {dimension_numbers = #tpu.dot_dimension_numbers<[1], [0], [0], [1], [0, 0, 1, 1], [], []>} : vector<256x128xbf16>, vector<128x256xbf16>, vector<256x256xf32> -> vector<256x256xf32>
    %c0_9 = arith.constant 0 : index
    %c0_10 = arith.constant 0 : index
    %14 = vector.load %arg5[%c0_9, %c0_10] : memref<1x256xf32, #tpu.memory_space<vmem>>, vector<1x256xf32>
    %15 = vector.broadcast %14 : vector<1x256xf32> to vector<256x256xf32>
    %16 = arith.addf %13, %15 : vector<256x256xf32>
    %17 = vector.extract_strided_slice %16 {offsets = [0, 0], sizes = [256, 128], strides = [1, 1]} : vector<256x256xf32> to vector<256x128xf32>
    %cst_11 = arith.constant 5.000000e-01 : f32
    %18 = vector.broadcast %cst_11 : f32 to vector<256x128xf32>
    %19 = arith.mulf %18, %17 : vector<256x128xf32>
    %20 = math.tanh %19 : vector<256x128xf32>
    %cst_12 = arith.constant 4.900000e-01 : f32
    %21 = vector.broadcast %cst_12 : f32 to vector<256x128xf32>
    %22 = arith.mulf %21, %20 : vector<256x128xf32>
    %cst_13 = arith.constant 5.000000e-01 : f32
    %23 = vector.broadcast %cst_13 : f32 to vector<256x128xf32>
    %24 = arith.addf %22, %23 : vector<256x128xf32>
    %25 = vector.extract_strided_slice %16 {offsets = [0, 128], sizes = [256, 128], strides = [1, 1]} : vector<256x256xf32> to vector<256x128xf32>
    %26 = arith.mulf %2, %24 : vector<256x128xf32>
    %cst_14 = arith.constant 1.000000e+00 : f32
    %27 = vector.broadcast %cst_14 : f32 to vector<256x128xf32>
    %28 = arith.subf %27, %24 : vector<256x128xf32>
    %29 = arith.mulf %25, %28 : vector<256x128xf32>
    %30 = arith.addf %26, %29 : vector<256x128xf32>
    %c0_15 = arith.constant 0 : index
    %c0_16 = arith.constant 0 : index
    %31 = vector.load %arg6[%c0_15, %c0_16] : memref<256x128xf32, #tpu.memory_space<vmem>>, vector<256x128xf32>
    tpu.vector_store %arg6[%c0_15, %c0_16], %30 {strides = array<i32>} : memref<256x128xf32, #tpu.memory_space<vmem>>, vector<256x128xf32>,
    %32 = math.log %24 : vector<256x128xf32>
    %cst_17 = arith.constant 1.000000e+00 : f32
    %33 = vector.broadcast %cst_17 : f32 to vector<8x128xf32>
    %cst_18 = arith.constant dense<0.000000e+00> : vector<8x256xf32>
    %34 = tpu.matmul %33, %32, %cst_18 {dimension_numbers = #tpu.dot_dimension_numbers<[1], [1], [0], [0], [0, 0, 1, 0], [], []>} : vector<8x128xf32>, vector<256x128xf32>, vector<8x256xf32> -> vector<8x256xf32>
    %c0_19 = arith.constant 0 : index
    %c0_20 = arith.constant 0 : index
    %35 = vector.load %arg7[%c0_19, %c0_20] : memref<8x256xf32, #tpu.memory_space<vmem>>, vector<8x256xf32>
    tpu.vector_store %arg7[%c0_19, %c0_20], %34 {strides = array<i32>} : memref<8x256xf32, #tpu.memory_space<vmem>>, vector<8x256xf32>,
    return
  }
  func.func @transform_0(%arg0: i32) -> (i32, i32) {
    %c0_i32 = arith.constant 0 : i32
    %c0_i32_0 = arith.constant 0 : i32
    return %arg0, %c0_i32 : i32, i32
  }
  func.func @transform_1(%arg0: i32) -> (i32, i32) {
    %c0_i32 = arith.constant 0 : i32
    %c0_i32_0 = arith.constant 0 : i32
    %c0_i32_1 = arith.constant 0 : i32
    return %c0_i32, %c0_i32_0 : i32, i32
  }
  func.func @transform_2(%arg0: i32) -> (i32, i32) {
    %c0_i32 = arith.constant 0 : i32
    %c0_i32_0 = arith.constant 0 : i32
    %c0_i32_1 = arith.constant 0 : i32
    return %c0_i32, %c0_i32_0 : i32, i32
  }
  func.func @transform_3(%arg0: i32) -> (i32, i32) {
    %c0_i32 = arith.constant 0 : i32
    %c0_i32_0 = arith.constant 0 : i32
    %c0_i32_1 = arith.constant 0 : i32
    return %c0_i32, %c0_i32_0 : i32, i32
  }
  func.func @transform_4(%arg0: i32) -> (i32, i32) {
    %c0_i32 = arith.constant 0 : i32
    %c0_i32_0 = arith.constant 0 : i32
    %c0_i32_1 = arith.constant 0 : i32
    return %c0_i32, %c0_i32_0 : i32, i32
  }
  func.func @transform_5(%arg0: i32) -> (i32, i32) {
    %c1_i32 = arith.constant 1 : i32
    %c0_i32 = arith.constant 0 : i32
    return %arg0, %c1_i32 : i32, i32
  }
  func.func @transform_6(%arg0: i32) -> (i32, i32) {
    %c0_i32 = arith.constant 0 : i32
    %c0_i32_0 = arith.constant 0 : i32
    return %c0_i32, %arg0 : i32, i32
  }
}

</mosaic_0001>

<bundles_post_ra>
// kernel: tpu_custom_call.1
= control target key start
LH: loop header
LB: loop body
LE: loop exit
PB: predicated region body
PF: predicated region fallthrough
CT: control target
= control target key end

     0   :  { %s2749_s0 = inlined_call_operand.hbm [shape: f32[512,256], index: 0, kind: input, shape index: {}, may-alias: {0,5}]   ;;  %s2750_s1 = inlined_call_operand.vmem [shape: bf16[128,128], index: 1, kind: input, shape index: {}]   ;;  %s2751_s2 = inlined_call_operand.vmem [shape: f32[1,128], index: 2, kind: input, shape index: {}]   ;;  %s2752_s3 = inlined_call_operand.vmem [shape: bf16[128,256], index: 3, kind: input, shape index: {}]   ;;  %s2753_s4 = inlined_call_operand.vmem [shape: f32[1,256], index: 4, kind: input, shape index: {}]   ;;  %s2754_s5 = inlined_call_operand.hbm [shape: f32[512,256], index: 5, kind: output, shape index: {0}, may-alias: {0,5}]   ;;  %s2755_s6 = inlined_call_operand.hbm [shape: f32[8,512], index: 6, kind: output, shape index: {1}]  }
   0x1   :  { %2758 = sst [smem:[#allocation11_spill]] %s2749_s0 }
   0x2   :  { %12 = vsyncpa [#allocation3], 0 }
   0x3   :  { %14 = vsyncpa [#allocation3 + $0x1], 0 }
   0x4   :  { %15 = vsyncpa [#allocation4], 0 }
   0x5   :  { %17 = vsyncpa [#allocation4 + $0x1], 0 }
   0x6   :  { %18 = vsyncpa [#allocation7], 0 }
   0x7   :  { %20 = vsyncpa [#allocation7 + $0x1], 0  ;;  %s2056_s21 = smov 0   ;;  %s2058_s22 = smov 0  }
   0x8   :  { %s2060_s23 = smov 0   ;;  %s2062_s24 = smov 0  }
   0x9 LB: > { %s2077_s25 = sadd.s32 4294967295, %s2009_s24   ;;  %s1514_s26 = sadd.s32 4294967294, %s2009_s24   ;;  %s2009_s24 = sphi %s2062_s24, %s2772_s24   ;;  %s2005_s23 = sphi %s2060_s23, %s2771_s23   ;;  %s2001_s22 = sphi %s2058_s22, %s2770_s22   ;;  %s1997_s21 = sphi %s2056_s21, %s2769_s21  }
   0xa   : > { %s2081_s27 = sadd.s32 1, %s2009_s24   ;;  %s33_s28 = sadd.s32 1, %s2005_s23 }
   0xb   : > { %s30_s29 = ssub.s32 %s2009_s24, %s2081_s27  ;;  %p40_p0 = scmp.ne.s32.totalorder %s2005_s23, %s2001_s22 }
   0xc   : > { %p31_p1 = scmp.eq.s32.totalorder %s30_s29, 0  ;;  %p41_p2 = scmp.eq.s32.totalorder %s2009_s24, 0 }
   0xd   : > { %p46_p3 = scmp.ne.s32.totalorder %s2001_s22, %s1997_s21  ;;  %p47_p4 = scmp.eq.s32.totalorder %s2077_s25, 0 }
   0xe   : > { %s2093_s30 = scalar_select %p31_p1, %s2005_s23, %s33_s28  }
   0xf   : > { %p2095_p5 = por %p41_p2, %p40_p0  ;;  %p2099_p6 = por %p47_p4, %p46_p3 }
  0x10   : > { %p154_p7 = scmp.eq.s32.totalorder %s2077_s25, 1  ;;  %p160_p8 = scmp.eq.s32.totalorder %s1514_s26, 1 }
  0x11   : > { %s2760_s8 = scalar_select %p2099_p6, 1, 0 }
  0x12   : > { %p1685_p10 = scmp.lt.s32.totalorder %s2009_s24, 2  ;;  %p2106_p11 = por %p154_p7, %p40_p0 }
  0x13   : > { %p2110_p12 = por %p160_p8, %p46_p3  ;;  %s218_s11 = sand.u32 1, %s2005_s23  }
  0x14   : > { %s2761_s9 = scalar_select %p2106_p11, 1, 0 }
  0x15   : > { %s2762_s10 = scalar_select %p2110_p12, 1, 0 }
  0x16   : > { %s1559_s12 = sshll.u32 %s2009_s24, 13  ;;  %s1517_s13 = sshll.u32 %s218_s11, 9 }
  0x17   : > { %s2763_s0 = sld [smem:[#allocation11_spill]]  ;;  %s222_s17 = scalar_lea.vmem [#allocation2], %s1517_s13 }
  0x18   : > { %s230_s18 = sshll.u32 %s222_s17, 4  ;;  %p2123_p13 = pnand %p1685_p10, %p2095_p5  ;;  %s2127_s18 = int_to_ptr.vmem [resolvable:$true] %s230_s18 }
  0x19   : > { %s2129_s20 = scalar_lea.sflag [#allocation3], %s218_s11 }
  0x1a   : > { %p1888_p1 = pneg %p2123_p13 }
  0x1d   : > { %s2119_s16 = scalar_lea.hbm %s2763_s0, %s1559_s12  ;;  %s1891_s12 = scalar_lea.hbm %s2763_s0, 16384 }
  0x1e   : > { %s1886_s26 = scalar_lea.hbm %s2119_s16, 8192  ;;  %p1892_p4 = scmp.lt.s32.totalorder %s2119_s16, %s2763_s0 }
  0x1f   : > { %p1887_p0 = scmp.ne.s32.totalorder %s2119_s16, %s1886_s26  ;;  %p1893_p5 = scmp.lt.s32.totalorder %s1891_s12, %s1886_s26 }
  0x21   : > { %p1889_p2 = pnand %p1888_p1, %p1887_p0  ;;  %p1894_p7 = por %p1893_p5, %p1892_p4 }
  0x23   : > { %p1890_p3 = pneg %p1889_p2 }
  0x25   : > { %p1895_p8 = pnand %p1894_p7, %p1890_p3 }
  0x27   : > { %1898 = shalt.err (!%p1895_p8)
}
  0x28   : > { %s1899_s11 = scalar_lea.vmem %s2127_s18, 8192  ;;  %s2011_s14 = smov [#allocation2]  }
  0x29   : > { %p1900_p10 = scmp.ne.s32.totalorder %s2127_s18, %s1899_s11  ;;  %s1904_s15 = sshll.u32 %s2011_s14, 4  ;;  %s1905_s15 = int_to_ptr.vmem [resolvable:$false] %s1904_s15 }
  0x2a   : > { %s1906_s17 = scalar_lea.vmem %s1905_s15, 16384  ;;  %p1907_p2 = scmp.lt.s32.totalorder %s2127_s18, %s1905_s15 }
  0x2b   : > { %p1902_p9 = pnand %p1900_p10, %p1888_p1  ;;  %p1908_p12 = scmp.lt.s32.totalorder %s1906_s17, %s1899_s11 }
  0x2d   : > { %p1903_p0 = pneg %p1902_p9  ;;  %p1909_p11 = por %p1908_p12, %p1907_p2 }
  0x2f   : > { %p1910_p6 = pnand %p1909_p11, %p1903_p0 }
  0x31   : > { %1913 = shalt.err (!%p1910_p6)
}
  0x32   : > { %s2012_s26 = smov 256   ;;  %s2013_s28 = smov 16  }
  0x33   : > { %1677 = dma.hbm_to_vmem [thread:$0]  (!%p2123_p13), %s2119_s16, 8192, %s2127_s18, %s2129_s20, %s2012_s26, %s2012_s26, %s2013_s28  }
  0x34   : > { %p1521_p9 = scmp.ge.s32.totalorder %s2009_s24, 1  ;;  %p238_p1 = scmp.lt.s32.totalorder %s2009_s24, 3 }
  0x36   : > { %p239_p3 = pnand %p1521_p9, %p238_p1 }
  0x37   : > { %s2153_s29 = sand.u32 (!%p239_p3), 1, %s2001_s22   ;;  %p2765_p6 = scmp.ne.s32.totalorder (!%p239_p3), %s2760_s8, 0 }
  0x38   : > { %242 = sbr.rel (%p239_p3) target bundleno = 927 (0x39f), region = 40  ;;  %s1522_s12 = sshll.u32 (!%p239_p3), %s2153_s29, 9 }
  0x39   : > { %s245_s7 = scalar_lea.sflag (!%p239_p3), [#allocation3], %s2153_s29  ;;  %s2157_s13 = scalar_lea.vmem (!%p239_p3), [#allocation2], %s1522_s12 }
  0x3d   : > { %1984 = dma.done.wait (%p2765_p6), %s245_s7, 8192  }
  0x3e   : > { %1986 = vsyncadd (%p2765_p6), %s245_s7, 4294959104  ;;  %v1726_v0 = vld [vmem:[%s2750_s1 + $0x38] sm:$0xff]   ;;  %v1727_v1 = vld [vmem:[%s2750_s1 + $0x30] sm:$0xff]   ;;  %s1523_s16 = sshll.u32 %s2153_s29, 8  ;;  %s1373_s15 = scalar_lea.sflag [#allocation4], %s2153_s29 }
  0x3f   : > { %1620 = vmatprep.subr.bf16.mxu0 %v1726_v0  ;;  %v1728_v2 = vld [vmem:[%s2750_s1 + $0x28] sm:$0xff]   ;;  %v1729_v3 = vld [vmem:[%s2750_s1 + $0x20] sm:$0xff]   ;;  %v288_v5 = vld [vmem:[%s2157_s13 + $0x10] sm:$0xff]  ;;  %s2354_s18 = scalar_lea.vmem [#allocation5], %s1523_s16  ;;  %p2766_p12 = scmp.ne.s32.totalorder %s2761_s9, 0 }
  0x40   : > { %1621 = vmatpush3.bf16.msra.mxu0 %v1726_v0  ;;  %v286_v4 = vld [vmem:[%s2157_s13] sm:$0xff]  ;;  %v1730_v7 = vld [vmem:[%s2750_s1 + $0x18] sm:$0xff]   ;;  %v1731_v8 = vld [vmem:[%s2750_s1 + $0x10] sm:$0xff]   ;;  %s1393_s14 = sshll.u32 %s2354_s18, 4  ;;  %s2016_s26 = smov [#allocation5]   ;;  %s2683_s14 = int_to_ptr.vmem [resolvable:$true] %s1393_s14 }
  0x41   : > { %1622 = vmatprep.subr.bf16.mxu0 %v1727_v1  ;;  %v350_v6 = vpack.c.bf16 %v288_v5, %v286_v4  ;;  %v1732_v9 = vld [vmem:[%s2750_s1 + $0x8] sm:$0xff]   ;;  %v1734_v10 = vld [vmem:[%s2752_s3 + $0x74] ss:$8 sps:$4 sm:$0xff]   ;;  %v1736_v11 = vld [vmem:[%s2752_s3 + $0x70] ss:$8 sps:$4 sm:$0xff]   ;;  %s1914_s17 = scalar_lea.vmem %s2683_s14, 4096 }
  0x42   : > { %v1737_v12 = vld [vmem:[%s2752_s3 + $0x64] ss:$8 sps:$4 sm:$0xff]   ;;  %754 = vmatprep.subr.bf16.mxu1 %v1734_v10  ;;  %v1739_v13 = vld [vmem:[%s2752_s3 + $0x60] ss:$8 sps:$4 sm:$0xff]   ;;  %v1740_v14 = vld [vmem:[%s2752_s3 + $0x54] ss:$8 sps:$4 sm:$0xff]   ;;  %p1915_p11 = scmp.ne.s32.totalorder %s2683_s14, %s1914_s17 }
  0x43   : > { %1636 = vmatprep.mubr.bf16.mxu0 %v350_v6  ;;  %755 = vmatpush1.bf16.msra.mxu1 %v1736_v11  ;;  %v1733_v15 = vld [vmem:[%s2750_s1] sm:$0xff]   ;;  %v1742_v17 = vld [vmem:[%s2752_s3 + $0x50] ss:$8 sps:$4 sm:$0xff]   ;;  %v1746_v25 = vld [vmem:[%s2752_s3 + $0x34] ss:$8 sps:$4 sm:$0xff]   ;;  %s1918_s28 = sshll.u32 %s2016_s26, 4  ;;  %s1919_s28 = int_to_ptr.vmem [resolvable:$false] %s1918_s28 }
  0x44   : > { %1623 = vmatpush3.bf16.msra.mxu0 %v1727_v1  ;;  %756 = vmatprep.subr.bf16.mxu1 %v1737_v12  ;;  %v290_v16 = vld [vmem:[%s2157_s13 + $0x20] sm:$0xff]  ;;  %v292_v18 = vld [vmem:[%s2157_s13 + $0x30] sm:$0xff]  ;;  %p1916_p13 = pnand %p1915_p11, %p2766_p12  ;;  %s1920_s12 = scalar_lea.vmem %s1919_s28, 8192 }
  0x45   : > { %1624 = vmatprep.subr.bf16.mxu0 %v1728_v2  ;;  %v1743_v19 = vld [vmem:[%s2752_s3 + $0x44] ss:$8 sps:$4 sm:$0xff]   ;;  %v296_v21 = vld [vmem:[%s2157_s13 + $0x50] sm:$0xff]  ;;  %v351_v22 = vpack.c.bf16 %v292_v18, %v290_v16  ;;  %v1745_v23 = vld [vmem:[%s2752_s3 + $0x40] ss:$8 sps:$4 sm:$0xff]   ;;  %p1921_p5 = scmp.lt.s32.totalorder %s2683_s14, %s1919_s28  ;;  %p1922_p7 = scmp.lt.s32.totalorder %s1920_s12, %s1914_s17 }
  0x46   : > { %v294_v20 = vld [vmem:[%s2157_s13 + $0x40] sm:$0xff]  ;;  %v1748_v26 = vld [vmem:[%s2752_s3 + $0x30] ss:$8 sps:$4 sm:$0xff]   ;;  %v1752_v4 = vld [vmem:[%s2752_s3 + $0x14] ss:$8 sps:$4 sm:$0xff]   ;;  %p1917_p4 = pneg %p1916_p13 }
  0x47   : > { %757 = vmatpush1.bf16.msra.mxu1 %v1739_v13  ;;  %v352_v24 = vpack.c.bf16 %v296_v21, %v294_v20  ;;  %v298_v27 = vld [vmem:[%s2157_s13 + $0x60] sm:$0xff]  ;;  %v300_v28 = vld [vmem:[%s2157_s13 + $0x70] sm:$0xff]  ;;  %p1923_p8 = por %p1922_p7, %p1921_p5 }
  0x48   : > { %1625 = vmatpush3.bf16.msra.mxu0 %v1728_v2  ;;  %758 = vmatprep.subr.bf16.mxu1 %v1740_v14  ;;  %v302_v29 = vld [vmem:[%s2157_s13 + $0x80] sm:$0xff]  ;;  %v304_v30 = vld [vmem:[%s2157_s13 + $0x90] sm:$0xff]  ;;  %v353_v31 = vpack.c.bf16 %v300_v28, %v298_v27 }
  0x49   : > { %1626 = vmatprep.subr.bf16.mxu0 %v1729_v3  ;;  %v354_v32 = vpack.c.bf16 %v304_v30, %v302_v29  ;;  %v306_v33 = vld [vmem:[%s2157_s13 + $0xa0] sm:$0xff]  ;;  %v308_v34 = vld [vmem:[%s2157_s13 + $0xb0] sm:$0xff]  ;;  %p1924_p10 = pnand %p1923_p8, %p1917_p4 }
  0x4a   : > { %v310_v35 = vld [vmem:[%s2157_s13 + $0xc0] sm:$0xff]  ;;  %v312_v36 = vld [vmem:[%s2157_s13 + $0xd0] sm:$0xff]  ;;  %v355_v37 = vpack.c.bf16 %v308_v34, %v306_v33 }
  0x4b   : > { %759 = vmatpush1.bf16.msra.mxu1 %v1742_v17  ;;  %v356_v38 = vpack.c.bf16 %v312_v36, %v310_v35  ;;  %v314_v39 = vld [vmem:[%s2157_s13 + $0xe0] sm:$0xff]  ;;  %v316_v40 = vld [vmem:[%s2157_s13 + $0xf0] sm:$0xff] }
  0x4c   : > { %1627 = vmatpush3.bf16.msra.mxu0 %v1729_v3  ;;  %760 = vmatprep.subr.bf16.mxu1 %v1743_v19  ;;  %v318_v41 = vld [vmem:[%s2157_s13 + $0x100] sm:$0xff]  ;;  %v320_v42 = vld [vmem:[%s2157_s13 + $0x110] sm:$0xff]  ;;  %v357_v43 = vpack.c.bf16 %v316_v40, %v314_v39 }
  0x4d   : > { %1628 = vmatprep.subr.bf16.mxu0 %v1730_v7  ;;  %v358_v44 = vpack.c.bf16 %v320_v42, %v318_v41  ;;  %v322_v45 = vld [vmem:[%s2157_s13 + $0x120] sm:$0xff]  ;;  %v324_v46 = vld [vmem:[%s2157_s13 + $0x130] sm:$0xff] }
  0x4e   : > { %v326_v47 = vld [vmem:[%s2157_s13 + $0x140] sm:$0xff]  ;;  %v328_v48 = vld [vmem:[%s2157_s13 + $0x150] sm:$0xff]  ;;  %v359_v49 = vpack.c.bf16 %v324_v46, %v322_v45 }
  0x4f   : > { %761 = vmatpush1.bf16.msra.mxu1 %v1745_v23  ;;  %v360_v50 = vpack.c.bf16 %v328_v48, %v326_v47  ;;  %v330_v51 = vld [vmem:[%s2157_s13 + $0x160] sm:$0xff]  ;;  %v332_v52 = vld [vmem:[%s2157_s13 + $0x170] sm:$0xff] }
  0x50   : > { %1629 = vmatpush3.bf16.msra.mxu0 %v1730_v7  ;;  %762 = vmatprep.subr.bf16.mxu1 %v1746_v25  ;;  %v334_v53 = vld [vmem:[%s2157_s13 + $0x180] sm:$0xff]  ;;  %v336_v54 = vld [vmem:[%s2157_s13 + $0x190] sm:$0xff]  ;;  %v361_v55 = vpack.c.bf16 %v332_v52, %v330_v51 }
  0x51   : > { %1630 = vmatprep.subr.bf16.mxu0 %v1731_v8  ;;  %v362_v56 = vpack.c.bf16 %v336_v54, %v334_v53  ;;  %v338_v57 = vld [vmem:[%s2157_s13 + $0x1a0] sm:$0xff]  ;;  %v340_v58 = vld [vmem:[%s2157_s13 + $0x1b0] sm:$0xff] }
  0x52   : > { %v342_v59 = vld [vmem:[%s2157_s13 + $0x1c0] sm:$0xff]  ;;  %v344_v60 = vld [vmem:[%s2157_s13 + $0x1d0] sm:$0xff]  ;;  %v363_v61 = vpack.c.bf16 %v340_v58, %v338_v57 }
  0x53   : > { %763 = vmatpush1.bf16.msra.mxu1 %v1748_v26  ;;  %v364_v62 = vpack.c.bf16 %v344_v60, %v342_v59  ;;  %v346_v63 = vld [vmem:[%s2157_s13 + $0x1e0] sm:$0xff]  ;;  %v348_v0 = vld [vmem:[%s2157_s13 + $0x1f0] sm:$0xff] }
  0x54   : > { %1631 = vmatpush3.bf16.msra.mxu0 %v1731_v8  ;;  %v365_v1 = vpack.c.bf16 %v348_v0, %v346_v63  ;;  %v1749_v2 = vld [vmem:[%s2752_s3 + $0x24] ss:$8 sps:$4 sm:$0xff]   ;;  %v1751_v3 = vld [vmem:[%s2752_s3 + $0x20] ss:$8 sps:$4 sm:$0xff]   ;;  %v1754_v5 = vld [vmem:[%s2752_s3 + $0x10] ss:$8 sps:$4 sm:$0xff]  }
  0x55   : > { %1632 = vmatprep.subr.bf16.mxu0 %v1732_v9  ;;  %764 = vmatprep.subr.bf16.mxu1 %v1749_v2  ;;  %v1755_v6 = vld [vmem:[%s2752_s3 + $0x4] ss:$8 sps:$4 sm:$0xff]   ;;  %v1757_v7 = vld [vmem:[%s2752_s3] ss:$8 sps:$4 sm:$0xff]   ;;  %v2014_v8 = vmov 0  }
  0x56   : > { %786 = vmatprep.mubr.bf16.mxu1 %v2014_v8  ;;  %v2271_v11 = vld [vmem:[%s2751_s2] ss:$0 sm:$0xff] }
  0x57   : > { %765 = vmatpush1.bf16.msra.mxu1 %v1751_v3 }
  0x58   : > { %1633 = vmatpush3.bf16.msra.mxu0 %v1732_v9  ;;  %766 = vmatprep.subr.bf16.mxu1 %v1752_v4 }
  0x59   : > { %1634 = vmatprep.subr.bf16.mxu0 %v1733_v15 }
  0x5b   : > { %767 = vmatpush1.bf16.msra.mxu1 %v1754_v5 }
  0x5c   : > { %1635 = vmatpush3.bf16.msra.mxu0 %v1733_v15  ;;  %768 = vmatprep.subr.bf16.mxu1 %v1755_v6 }
  0x5f   : > { %1637 = vmatmul.mubr.bf16.vlgmr.msra.gmra.mxu0 %v351_v22  ;;  %769 = vmatpush1.bf16.msra.mxu1 %v1757_v7 }
  0x60   : > { %1640 = vmatprep.mubr.bf16.mxu0 %v352_v24 }
  0x67   : > { %1641 = vmatmul.mubr.bf16.gmra.mxu0 %v353_v31 }
  0x68   : > { %1644 = vmatprep.mubr.bf16.mxu0 %v354_v32 }
  0x6f   : > { %1645 = vmatmul.mubr.bf16.gmra.mxu0 %v355_v37 }
  0x70   : > { %1648 = vmatprep.mubr.bf16.mxu0 %v356_v38 }
  0x77   : > { %1649 = vmatmul.mubr.bf16.gmra.mxu0 %v357_v43 }
  0x78   : > { %1652 = vmatprep.mubr.bf16.mxu0 %v358_v44 }
  0x7f   : > { %1653 = vmatmul.mubr.bf16.gmra.mxu0 %v359_v49 }
  0x80   : > { %1656 = vmatprep.mubr.bf16.mxu0 %v360_v50 }
  0x87   : > { %1657 = vmatmul.mubr.bf16.gmra.mxu0 %v361_v55 }
  0x88   : > { %1660 = vmatprep.mubr.bf16.mxu0 %v362_v56 }
  0x8f   : > { %1661 = vmatmul.mubr.bf16.gmra.mxu0 %v363_v61 }
  0x90   : > { %1664 = vmatprep.mubr.bf16.mxu0 %v364_v62 }
  0x97   : > { %1665 = vmatmul.mubr.bf16.gmra.mxu0 %v365_v1 }
 0x11f   : > { %v1638_v9 = vpop.f32.mrf.mxu0 }
 0x120   : > { %v480_v23 = vadd.f32 %v1638_v9, %v2271_v11 }
 0x121   : > { %v471_v10 = vpop.f32.mrf.mxu0 }
 0x122   : > { %v472_v13 = vadd.f32 %v2271_v11, %v471_v10  ;;  %v600_v26 = vmax.f32 %v480_v23, 0.0 }
 0x123   : > { %v1639_v12 = vpop.f32.mrf.mxu0 }
 0x124   : > { %v598_v17 = vmax.f32 %v472_v13, 0.0  ;;  %v483_v20 = vadd.f32 %v1639_v12, %v2271_v11 }
 0x125   : > { %v474_v14 = vpop.f32.mrf.mxu0 }
 0x126   : > { %v475_v15 = vadd.f32 %v2271_v11, %v474_v14  ;;  %v601_v24 = vmax.f32 %v483_v20, 0.0 }
 0x127   : > { %v1642_v16 = vpop.f32.mrf.mxu0 }
 0x128   : > { %v599_v18 = vmax.f32 %v475_v15, 0.0  ;;  %v631_v27 = vpack.c.bf16 %v601_v24, %v600_v26  ;;  %v496_v34 = vadd.f32 %v1642_v16, %v2271_v11 }
 0x129   : > { %v487_v19 = vpop.f32.mrf.mxu0 }
 0x12a   : > { %v630_v21 = vpack.c.bf16 %v599_v18, %v598_v17  ;;  %v488_v28 = vadd.f32 %v2271_v11, %v487_v19  ;;  %v604_v38 = vmax.f32 %v496_v34, 0.0 }
 0x12b   : > { %v1643_v22 = vpop.f32.mrf.mxu0 }
 0x12c   : > { %787 = vmatmul.mubr.bf16.vlgmr.msra.gmra.mxu1 %v630_v21  ;;  %v602_v31 = vmax.f32 %v488_v28, 0.0  ;;  %v499_v35 = vadd.f32 %v1643_v22, %v2271_v11 }
 0x12d   : > { %796 = vmatprep.mubr.bf16.mxu1 %v2014_v8  ;;  %v490_v25 = vpop.f32.mrf.mxu0 }
 0x12e   : > { %v491_v29 = vadd.f32 %v2271_v11, %v490_v25  ;;  %v605_v39 = vmax.f32 %v499_v35, 0.0 }
 0x12f   : > { %v1646_v30 = vpop.f32.mrf.mxu0 }
 0x130   : > { %v603_v32 = vmax.f32 %v491_v29, 0.0  ;;  %v633_v41 = vpack.c.bf16 %v605_v39, %v604_v38  ;;  %v512_v48 = vadd.f32 %v1646_v30, %v2271_v11 }
 0x131   : > { %v503_v33 = vpop.f32.mrf.mxu0 }
 0x132   : > { %v632_v36 = vpack.c.bf16 %v603_v32, %v602_v31  ;;  %v504_v42 = vadd.f32 %v2271_v11, %v503_v33  ;;  %v608_v52 = vmax.f32 %v512_v48, 0.0 }
 0x133   : > { %v1647_v37 = vpop.f32.mrf.mxu0 }
 0x134   : > { %797 = vmatmul.mubr.bf16.gmra.mxu1 %v631_v27  ;;  %v606_v45 = vmax.f32 %v504_v42, 0.0  ;;  %v515_v49 = vadd.f32 %v1647_v37, %v2271_v11 }
 0x135   : > { %806 = vmatprep.mubr.bf16.mxu1 %v2014_v8  ;;  %v506_v40 = vpop.f32.mrf.mxu0 }
 0x136   : > { %v507_v43 = vadd.f32 %v2271_v11, %v506_v40  ;;  %v609_v53 = vmax.f32 %v515_v49, 0.0 }
 0x137   : > { %v1650_v44 = vpop.f32.mrf.mxu0 }
 0x138   : > { %v607_v46 = vmax.f32 %v507_v43, 0.0  ;;  %v635_v55 = vpack.c.bf16 %v609_v53, %v608_v52  ;;  %v528_v62 = vadd.f32 %v1650_v44, %v2271_v11 }
 0x139   : > { %v519_v47 = vpop.f32.mrf.mxu0 }
 0x13a   : > { %v634_v50 = vpack.c.bf16 %v607_v46, %v606_v45  ;;  %v520_v56 = vadd.f32 %v2271_v11, %v519_v47  ;;  %v612_v2 = vmax.f32 %v528_v62, 0.0 }
 0x13b   : > { %v1651_v51 = vpop.f32.mrf.mxu0 }
 0x13c   : > { %807 = vmatmul.mubr.bf16.gmra.mxu1 %v632_v36  ;;  %v610_v59 = vmax.f32 %v520_v56, 0.0  ;;  %v531_v63 = vadd.f32 %v1651_v51, %v2271_v11 }
 0x13d   : > { %816 = vmatprep.mubr.bf16.mxu1 %v2014_v8  ;;  %v522_v54 = vpop.f32.mrf.mxu0 }
 0x13e   : > { %v523_v57 = vadd.f32 %v2271_v11, %v522_v54  ;;  %v613_v3 = vmax.f32 %v531_v63, 0.0  ;;  %v662_v63 = vld [vmem:[%s2753_s4] sm:$0x3] }
 0x13f   : > { %v1654_v58 = vpop.f32.mrf.mxu0 }
 0x140   : > { %v611_v60 = vmax.f32 %v523_v57, 0.0  ;;  %v637_v5 = vpack.c.bf16 %v613_v3, %v612_v2  ;;  %v544_v14 = vadd.f32 %v1654_v58, %v2271_v11 }
 0x141   : > { %v535_v61 = vpop.f32.mrf.mxu0 }
 0x142   : > { %v636_v0 = vpack.c.bf16 %v611_v60, %v610_v59  ;;  %v536_v6 = vadd.f32 %v2271_v11, %v535_v61  ;;  %v616_v18 = vmax.f32 %v544_v14, 0.0  ;;  %v664_v60 = vlaneseq }
 0x143   : > { %v1655_v1 = vpop.f32.mrf.mxu0 }
 0x144   : > { %817 = vmatmul.mubr.bf16.gmra.mxu1 %v633_v41  ;;  %v614_v10 = vmax.f32 %v536_v6, 0.0  ;;  %v547_v15 = vadd.f32 %v1655_v1, %v2271_v11  ;;  %v665_v61 = vshrl.u32 %v664_v60, 7 }
 0x145   : > { %826 = vmatprep.mubr.bf16.mxu1 %v2014_v8  ;;  %v538_v4 = vpop.f32.mrf.mxu0 }
 0x146   : > { %v539_v7 = vadd.f32 %v2271_v11, %v538_v4  ;;  %v617_v19 = vmax.f32 %v547_v15, 0.0  ;;  %v666_v62 = vsub.s32 0, %v665_v61 }
 0x147   : > { %v1658_v9 = vpop.f32.mrf.mxu0 }
 0x148   : > { %v615_v12 = vmax.f32 %v539_v7, 0.0  ;;  %v639_v21 = vpack.c.bf16 %v617_v19, %v616_v18  ;;  %v560_v28 = vadd.f32 %v1658_v9, %v2271_v11 }
 0x149   : > { %v551_v13 = vpop.f32.mrf.mxu0 }
 0x14a   : > { %v638_v16 = vpack.c.bf16 %v615_v12, %v614_v10  ;;  %v552_v22 = vadd.f32 %v2271_v11, %v551_v13  ;;  %v620_v32 = vmax.f32 %v560_v28, 0.0 }
 0x14b   : > { %v1659_v17 = vpop.f32.mrf.mxu0 }
 0x14c   : > { %827 = vmatmul.mubr.bf16.gmra.mxu1 %v634_v50  ;;  %v618_v25 = vmax.f32 %v552_v22, 0.0  ;;  %v563_v29 = vadd.f32 %v1659_v17, %v2271_v11 }
 0x14d   : > { %836 = vmatprep.mubr.bf16.mxu1 %v2014_v8  ;;  %v554_v20 = vpop.f32.mrf.mxu0 }
 0x14e   : > { %v555_v23 = vadd.f32 %v2271_v11, %v554_v20  ;;  %v621_v33 = vmax.f32 %v563_v29, 0.0  ;;  %v287_v29 = vld [vmem:[%s2157_s13 + $0x8] sm:$0xff] }
 0x14f   : > { %v1662_v24 = vpop.f32.mrf.mxu0 }
 0x150   : > { %v619_v26 = vmax.f32 %v555_v23, 0.0  ;;  %v641_v35 = vpack.c.bf16 %v621_v33, %v620_v32  ;;  %v576_v42 = vadd.f32 %v1662_v24, %v2271_v11 }
 0x151   : > { %v567_v27 = vpop.f32.mrf.mxu0 }
 0x152   : > { %v640_v30 = vpack.c.bf16 %v619_v26, %v618_v25  ;;  %v568_v36 = vadd.f32 %v2271_v11, %v567_v27  ;;  %v624_v46 = vmax.f32 %v576_v42, 0.0 }
 0x153   : > { %v1663_v31 = vpop.f32.mrf.mxu0 }
 0x154   : > { %837 = vmatmul.mubr.bf16.gmra.mxu1 %v635_v55  ;;  %v622_v39 = vmax.f32 %v568_v36, 0.0  ;;  %v579_v43 = vadd.f32 %v1663_v31, %v2271_v11 }
 0x155   : > { %846 = vmatprep.mubr.bf16.mxu1 %v2014_v8  ;;  %v570_v34 = vpop.f32.mrf.mxu0 }
 0x156   : > { %v571_v37 = vadd.f32 %v2271_v11, %v570_v34  ;;  %v625_v47 = vmax.f32 %v579_v43, 0.0 }
 0x157   : > { %v1666_v38 = vpop.f32.mrf.mxu0 }
 0x158   : > { %v623_v40 = vmax.f32 %v571_v37, 0.0  ;;  %v643_v49 = vpack.c.bf16 %v625_v47, %v624_v46  ;;  %v592_v54 = vadd.f32 %v1666_v38, %v2271_v11 }
 0x159   : > { %v583_v41 = vpop.f32.mrf.mxu0 }
 0x15a   : > { %v642_v44 = vpack.c.bf16 %v623_v40, %v622_v39  ;;  %v584_v50 = vadd.f32 %v2271_v11, %v583_v41  ;;  %v628_v57 = vmax.f32 %v592_v54, 0.0  ;;  %v289_v41 = vld [vmem:[%s2157_s13 + $0x18] sm:$0xff] }
 0x15b   : > { %v1667_v45 = vpop.f32.mrf.mxu0 }
 0x15c   : > { %847 = vmatmul.mubr.bf16.gmra.mxu1 %v636_v0  ;;  %v626_v52 = vmax.f32 %v584_v50, 0.0  ;;  %v595_v55 = vadd.f32 %v1667_v45, %v2271_v11  ;;  %v2323_v0 = vrot.slane %v662_v63, %v666_v62 }
 0x15d   : > { %856 = vmatprep.mubr.bf16.mxu1 %v2014_v8  ;;  %v586_v48 = vpop.f32.mrf.mxu0 }
 0x15e   : > { %v587_v51 = vadd.f32 %v2271_v11, %v586_v48  ;;  %v629_v58 = vmax.f32 %v595_v55, 0.0 }
 0x160   : > { %v627_v53 = vmax.f32 %v587_v51, 0.0  ;;  %v645_v59 = vpack.c.bf16 %v629_v58, %v628_v57 }
 0x162   : > { %v644_v56 = vpack.c.bf16 %v627_v53, %v626_v52 }
 0x164   : > { %857 = vmatmul.mubr.bf16.gmra.mxu1 %v637_v5 }
 0x165   : > { %866 = vmatprep.mubr.bf16.mxu1 %v2014_v8 }
 0x16c   : > { %867 = vmatmul.mubr.bf16.gmra.mxu1 %v638_v16  ;;  %v670_v16 = vsub.s32 1, %v665_v61 }
 0x16d   : > { %876 = vmatprep.mubr.bf16.mxu1 %v2014_v8 }
 0x16e   : > { %v2334_v23 = vrot.slane %v662_v63, %v670_v16 }
 0x174   : > { %877 = vmatmul.mubr.bf16.gmra.mxu1 %v639_v21 }
 0x175   : > { %886 = vmatprep.mubr.bf16.mxu1 %v2014_v8 }
 0x17c   : > { %887 = vmatmul.mubr.bf16.gmra.mxu1 %v640_v30 }
 0x17d   : > { %896 = vmatprep.mubr.bf16.mxu1 %v2014_v8 }
 0x184   : > { %897 = vmatmul.mubr.bf16.gmra.mxu1 %v641_v35 }
 0x185   : > { %906 = vmatprep.mubr.bf16.mxu1 %v2014_v8 }
 0x18c   : > { %907 = vmatmul.mubr.bf16.gmra.mxu1 %v642_v44 }
 0x18d   : > { %916 = vmatprep.mubr.bf16.mxu1 %v2014_v8 }
 0x194   : > { %917 = vmatmul.mubr.bf16.gmra.mxu1 %v643_v49 }
 0x195   : > { %926 = vmatprep.mubr.bf16.mxu1 %v2014_v8 }
 0x19c   : > { %927 = vmatmul.mubr.bf16.gmra.mxu1 %v644_v56  ;;  %v291_v56 = vld [vmem:[%s2157_s13 + $0x28] sm:$0xff] }
 0x19d   : > { %936 = vmatprep.mubr.bf16.mxu1 %v2014_v8 }
 0x1a4   : > { %937 = vmatmul.mubr.bf16.gmra.mxu1 %v645_v59 }
 0x1ec   : > { %v788_v1 = vpop.f32.mrf.mxu1 }
 0x1ed   : > { %v789_v11 = vadd.f32 %v788_v1, %v2323_v0 }
 0x1ee   : > { %v790_v2 = vpop.f32.mrf.mxu1 }
 0x1ef   : > { %v947_v3 = vmul.f32 0.5, %v789_v11  ;;  %v791_v31 = vadd.f32 %v790_v2, %v2334_v23 }
 0x1f0   : > { %v792_v4 = vpop.f32.mrf.mxu1 }
 0x1f1   : > { %1758 = vtanh.f32 %v947_v3  ;;  %v793_v8 = vadd.f32 %v792_v4, %v2323_v0  ;;  %v293_v3 = vld [vmem:[%s2157_s13 + $0x38] sm:$0xff] }
 0x1f2   : > { %v794_v5 = vpop.f32.mrf.mxu1 }
 0x1f3   : > { %v948_v6 = vmul.f32 0.5, %v793_v8  ;;  %v795_v44 = vadd.f32 %v794_v5, %v2334_v23 }
 0x1f4   : > { %v798_v7 = vpop.f32.mrf.mxu1 }
 0x1f5   : > { %1760 = vtanh.f32 %v948_v6  ;;  %v799_v9 = vadd.f32 %v798_v7, %v2323_v0 }
 0x1f6   : > { %v800_v10 = vpop.f32.mrf.mxu1 }
 0x1f7   : > { %v949_v12 = vmul.f32 0.5, %v799_v9  ;;  %v801_v59 = vadd.f32 %v800_v10, %v2334_v23 }
 0x1f8   : > { %v802_v13 = vpop.f32.mrf.mxu1 }
 0x1f9   : > { %1762 = vtanh.f32 %v949_v12  ;;  %v803_v14 = vadd.f32 %v802_v13, %v2323_v0 }
 0x1fa   : > { %v2329_v15 = vpop.f32.mrf.mxu1 }
 0x1fb   : > { %v950_v17 = vmul.f32 0.5, %v803_v14  ;;  %v805_v8 = vadd.f32 %v2329_v15, %v2334_v23 }
 0x1fc   : > { %v808_v18 = vpop.f32.mrf.mxu1 }
 0x1fd   : > { %1764 = vtanh.f32 %v950_v17  ;;  %v809_v19 = vadd.f32 %v808_v18, %v2323_v0  ;;  %v295_v17 = vld [vmem:[%s2157_s13 + $0x48] sm:$0xff] }
 0x1fe   : > { %v1759_v20 = vpop.eup %1758  ;;  %v2332_v21 = vpop.f32.mrf.mxu1 }
 0x1ff   : > { %v1011_v22 = vmul.f32 0.49, %v1759_v20  ;;  %v951_v24 = vmul.f32 0.5, %v809_v19  ;;  %v811_v20 = vadd.f32 %v2332_v21, %v2334_v23 }
 0x200   : > { %v812_v25 = vpop.f32.mrf.mxu1 }
 0x201   : > { %v2336_v26 = vadd.f32 0.5, %v1011_v22  ;;  %1766 = vtanh.f32 %v951_v24  ;;  %v813_v27 = vadd.f32 %v812_v25, %v2323_v0 }
 0x202   : > { %v1761_v28 = vpop.eup %1760  ;;  %v2340_v30 = vpop.f32.mrf.mxu1 }
 0x203   : > { %v1107_v32 = vsub.f32 1.0, %v2336_v26  ;;  %v1012_v33 = vmul.f32 0.49, %v1761_v28  ;;  %v952_v34 = vmul.f32 0.5, %v813_v27  ;;  %v1075_v36 = vmul.f32 %v2336_v26, %v287_v29 }
 0x204   : > { %v818_v35 = vpop.f32.mrf.mxu1 }
 0x205   : > { %v1139_v37 = vmul.f32 %v1107_v32, %v791_v31  ;;  %v2346_v38 = vadd.f32 0.5, %v1012_v33  ;;  %v819_v39 = vadd.f32 %v818_v35, %v2323_v0  ;;  %1768 = vtanh.f32 %v952_v34  ;;  %v297_v35 = vld [vmem:[%s2157_s13 + $0x58] sm:$0xff] }
 0x206   : > { %v1763_v40 = vpop.eup %1762  ;;  %v2350_v42 = vpop.f32.mrf.mxu1 }
 0x207   : > { %v1171_v43 = vadd.f32 %v1139_v37, %v1075_v36  ;;  %v1108_v45 = vsub.f32 1.0, %v2346_v38  ;;  %v1013_v46 = vmul.f32 0.49, %v1763_v40  ;;  %v953_v47 = vmul.f32 0.5, %v819_v39 }
 0x208   : > { %v822_v48 = vpop.f32.mrf.mxu1  ;;  %v1076_v49 = vmul.f32 %v2346_v38, %v289_v41  ;;  %v815_v37 = vadd.f32 %v2340_v30, %v2334_v23 }
 0x209   : > { %1203 = vst [vmem:[%s2354_s18] sm:$0xff] %v1171_v43  ;;  %v1140_v50 = vmul.f32 %v1108_v45, %v795_v44  ;;  %v823_v51 = vadd.f32 %v822_v48, %v2323_v0  ;;  %v2359_v53 = vadd.f32 0.5, %v1013_v46  ;;  %1770 = vtanh.f32 %v953_v47 }
 0x20a   : > { %v1765_v52 = vpop.eup %1764  ;;  %v2361_v54 = vpop.f32.mrf.mxu1 }
 0x20b   : > { %v1172_v55 = vadd.f32 %v1140_v50, %v1076_v49  ;;  %v1014_v57 = vmul.f32 0.49, %v1765_v52  ;;  %v954_v58 = vmul.f32 0.5, %v823_v51  ;;  %v1109_v60 = vsub.f32 1.0, %v2359_v53  ;;  %v299_v49 = vld [vmem:[%s2157_s13 + $0x68] sm:$0xff] }
 0x20c   : > { %v828_v61 = vpop.f32.mrf.mxu1  ;;  %v1077_v11 = vmul.f32 %v2359_v53, %v291_v56  ;;  %v821_v52 = vadd.f32 %v2350_v42, %v2334_v23  ;;  %v825_v42 = vadd.f32 %v2361_v54, %v2334_v23 }
 0x20d   : > { %1204 = vst [vmem:[%s2354_s18 + $0x8] sm:$0xff] %v1172_v55  ;;  %v2367_v62 = vadd.f32 0.5, %v1014_v57  ;;  %1772 = vtanh.f32 %v954_v58  ;;  %v829_v63 = vadd.f32 %v828_v61, %v2323_v0  ;;  %v1141_v2 = vmul.f32 %v1109_v60, %v801_v59  ;;  %v301_v61 = vld [vmem:[%s2157_s13 + $0x78] sm:$0xff] }
 0x20e   : > { %v1767_v1 = vpop.eup %1766  ;;  %v2372_v4 = vpop.f32.mrf.mxu1 }
 0x20f   : > { %v1110_v5 = vsub.f32 1.0, %v2367_v62  ;;  %v1015_v6 = vmul.f32 0.49, %v1767_v1  ;;  %v1173_v7 = vadd.f32 %v1141_v2, %v1077_v11  ;;  %v955_v9 = vmul.f32 0.5, %v829_v63 }
 0x210   : > { %v832_v10 = vpop.f32.mrf.mxu1  ;;  %v1078_v12 = vmul.f32 %v2367_v62, %v293_v3 }
 0x211   : > { %v1142_v13 = vmul.f32 %v1110_v5, %v805_v8  ;;  %v2378_v14 = vadd.f32 0.5, %v1015_v6  ;;  %v833_v16 = vadd.f32 %v832_v10, %v2323_v0  ;;  %1205 = vst [vmem:[%s2354_s18 + $0x10] sm:$0xff] %v1173_v7  ;;  %1774 = vtanh.f32 %v955_v9 }
 0x212   : > { %v2383_v18 = vpop.f32.mrf.mxu1  ;;  %v1769_v15 = vpop.eup %1768 }
 0x213   : > { %v1174_v19 = vadd.f32 %v1142_v13, %v1078_v12  ;;  %v1111_v22 = vsub.f32 1.0, %v2378_v14  ;;  %v1016_v24 = vmul.f32 0.49, %v1769_v15  ;;  %v956_v25 = vmul.f32 0.5, %v833_v16  ;;  %v303_v16 = vld [vmem:[%s2157_s13 + $0x88] sm:$0xff] }
 0x214   : > { %v838_v27 = vpop.f32.mrf.mxu1  ;;  %v1079_v28 = vmul.f32 %v2378_v14, %v295_v17  ;;  %v831_v15 = vadd.f32 %v2372_v4, %v2334_v23 }
 0x215   : > { %1206 = vst [vmem:[%s2354_s18 + $0x18] sm:$0xff] %v1174_v19  ;;  %v1143_v29 = vmul.f32 %v1111_v22, %v811_v20  ;;  %v839_v31 = vadd.f32 %v838_v27, %v2323_v0  ;;  %v2391_v32 = vadd.f32 0.5, %v1016_v24  ;;  %1776 = vtanh.f32 %v956_v25 }
 0x216   : > { %v2393_v33 = vpop.f32.mrf.mxu1  ;;  %v1771_v34 = vpop.eup %1770 }
 0x217   : > { %v1175_v21 = vadd.f32 %v1143_v29, %v1079_v28  ;;  %v957_v36 = vmul.f32 0.5, %v839_v31  ;;  %v1112_v39 = vsub.f32 1.0, %v2391_v32  ;;  %v1017_v40 = vmul.f32 0.49, %v1771_v34  ;;  %v305_v34 = vld [vmem:[%s2157_s13 + $0x98] sm:$0xff] }
 0x218   : > { %v842_v41 = vpop.f32.mrf.mxu1  ;;  %v1080_v45 = vmul.f32 %v2391_v32, %v297_v35 }
 0x219   : > { %1207 = vst [vmem:[%s2354_s18 + $0x20] sm:$0xff] %v1175_v21  ;;  %1778 = vtanh.f32 %v957_v36  ;;  %v843_v43 = vadd.f32 %v842_v41, %v2323_v0  ;;  %v1144_v46 = vmul.f32 %v1112_v39, %v815_v37  ;;  %v2402_v47 = vadd.f32 0.5, %v1017_v40 }
 0x21a   : > { %v1773_v44 = vpop.eup %1772  ;;  %v2404_v48 = vpop.f32.mrf.mxu1  ;;  %v835_v36 = vadd.f32 %v2383_v18, %v2334_v23  ;;  %v841_v18 = vadd.f32 %v2393_v33, %v2334_v23 }
 0x21b   : > { %v1018_v30 = vmul.f32 0.49, %v1773_v44  ;;  %v958_v50 = vmul.f32 0.5, %v843_v43  ;;  %v1176_v51 = vadd.f32 %v1144_v46, %v1080_v45  ;;  %v1113_v55 = vsub.f32 1.0, %v2402_v47  ;;  %v307_v46 = vld [vmem:[%s2157_s13 + $0xa8] sm:$0xff] }
 0x21c   : > { %v848_v56 = vpop.f32.mrf.mxu1  ;;  %v1081_v59 = vmul.f32 %v2402_v47, %v299_v49 }
 0x21d   : > { %v2410_v57 = vadd.f32 0.5, %v1018_v30  ;;  %1780 = vtanh.f32 %v958_v50  ;;  %v849_v58 = vadd.f32 %v848_v56, %v2323_v0  ;;  %1208 = vst [vmem:[%s2354_s18 + $0x28] sm:$0xff] %v1176_v51  ;;  %v1145_v60 = vmul.f32 %v1113_v55, %v821_v52 }
 0x21e   : > { %v2416_v63 = vpop.f32.mrf.mxu1  ;;  %v1775_v1 = vpop.eup %1774 }
 0x21f   : > { %v1114_v11 = vsub.f32 1.0, %v2410_v57  ;;  %v959_v2 = vmul.f32 0.5, %v849_v58  ;;  %v1177_v3 = vadd.f32 %v1145_v60, %v1081_v59  ;;  %v1019_v8 = vmul.f32 0.49, %v1775_v1  ;;  %v309_v1 = vld [vmem:[%s2157_s13 + $0xb8] sm:$0xff] }
 0x220   : > { %v852_v5 = vpop.f32.mrf.mxu1  ;;  %v1082_v6 = vmul.f32 %v2410_v57, %v301_v61 }
 0x221   : > { %v1146_v7 = vmul.f32 %v1114_v11, %v825_v42  ;;  %1782 = vtanh.f32 %v959_v2  ;;  %v853_v9 = vadd.f32 %v852_v5, %v2323_v0  ;;  %1209 = vst [vmem:[%s2354_s18 + $0x30] sm:$0xff] %v1177_v3  ;;  %v2424_v10 = vadd.f32 0.5, %v1019_v8 }
 0x222   : > { %v2426_v12 = vpop.f32.mrf.mxu1  ;;  %v1777_v13 = vpop.eup %1776  ;;  %v845_v11 = vadd.f32 %v2404_v48, %v2334_v23 }
 0x223   : > { %v1178_v54 = vadd.f32 %v1146_v7, %v1082_v6  ;;  %v960_v17 = vmul.f32 0.5, %v853_v9  ;;  %v1115_v19 = vsub.f32 1.0, %v2424_v10  ;;  %v1020_v20 = vmul.f32 0.49, %v1777_v13 }
 0x224   : > { %v858_v22 = vpop.f32.mrf.mxu1  ;;  %v1083_v27 = vmul.f32 %v2424_v10, %v303_v16 }
 0x225   : > { %1210 = vst [vmem:[%s2354_s18 + $0x38] sm:$0xff] %v1178_v54  ;;  %1784 = vtanh.f32 %v960_v17  ;;  %v859_v24 = vadd.f32 %v858_v22, %v2323_v0  ;;  %v1147_v28 = vmul.f32 %v1115_v19, %v831_v15  ;;  %v2435_v29 = vadd.f32 0.5, %v1020_v20  ;;  %v311_v17 = vld [vmem:[%s2157_s13 + $0xc8] sm:$0xff] }
 0x226   : > { %v1779_v25 = vpop.eup %1778  ;;  %v2437_v31 = vpop.f32.mrf.mxu1  ;;  %v851_v20 = vadd.f32 %v2416_v63, %v2334_v23  ;;  %v855_v63 = vadd.f32 %v2426_v12, %v2334_v23 }
 0x227   : > { %v1021_v4 = vmul.f32 0.49, %v1779_v25  ;;  %v961_v21 = vmul.f32 0.5, %v859_v24  ;;  %v1179_v35 = vadd.f32 %v1147_v28, %v1083_v27  ;;  %v1116_v37 = vsub.f32 1.0, %v2435_v29 }
 0x228   : > { %v862_v39 = vpop.f32.mrf.mxu1  ;;  %v1084_v44 = vmul.f32 %v2435_v29, %v305_v34 }
 0x229   : > { %v2443_v40 = vadd.f32 0.5, %v1021_v4  ;;  %1786 = vtanh.f32 %v961_v21  ;;  %v863_v41 = vadd.f32 %v862_v39, %v2323_v0  ;;  %1211 = vst [vmem:[%s2354_s18 + $0x40] sm:$0xff] %v1179_v35  ;;  %v1148_v45 = vmul.f32 %v1116_v37, %v835_v36  ;;  %v313_v21 = vld [vmem:[%s2157_s13 + $0xd8] sm:$0xff] }
 0x22a   : > { %v1781_v43 = vpop.eup %1780  ;;  %v2449_v49 = vpop.f32.mrf.mxu1 }
 0x22b   : > { %v1117_v30 = vsub.f32 1.0, %v2443_v40  ;;  %v1022_v50 = vmul.f32 0.49, %v1781_v43  ;;  %v1180_v51 = vadd.f32 %v1148_v45, %v1084_v44  ;;  %v962_v52 = vmul.f32 0.5, %v863_v41 }
 0x22c   : > { %v868_v55 = vpop.f32.mrf.mxu1  ;;  %v1085_v56 = vmul.f32 %v2443_v40, %v307_v46 }
 0x22d   : > { %v1149_v58 = vmul.f32 %v1117_v30, %v841_v18  ;;  %v2455_v59 = vadd.f32 0.5, %v1022_v50  ;;  %v869_v60 = vadd.f32 %v868_v55, %v2323_v0  ;;  %1212 = vst [vmem:[%s2354_s18 + $0x48] sm:$0xff] %v1180_v51  ;;  %1788 = vtanh.f32 %v962_v52  ;;  %v315_v30 = vld [vmem:[%s2157_s13 + $0xe8] sm:$0xff] }
 0x22e   : > { %v1783_v61 = vpop.eup %1782  ;;  %v2460_v42 = vpop.f32.mrf.mxu1  ;;  %v861_v52 = vadd.f32 %v2437_v31, %v2334_v23 }
 0x22f   : > { %v1181_v33 = vadd.f32 %v1149_v58, %v1085_v56  ;;  %v1118_v2 = vsub.f32 1.0, %v2455_v59  ;;  %v1023_v3 = vmul.f32 0.49, %v1783_v61  ;;  %v963_v8 = vmul.f32 0.5, %v869_v60 }
 0x230   : > { %v872_v5 = vpop.f32.mrf.mxu1  ;;  %v1086_v6 = vmul.f32 %v2455_v59, %v309_v1 }
 0x231   : > { %1213 = vst [vmem:[%s2354_s18 + $0x50] sm:$0xff] %v1181_v33  ;;  %v1150_v7 = vmul.f32 %v1118_v2, %v845_v11  ;;  %v873_v9 = vadd.f32 %v872_v5, %v2323_v0  ;;  %v2468_v54 = vadd.f32 0.5, %v1023_v3  ;;  %1790 = vtanh.f32 %v963_v8  ;;  %v317_v8 = vld [vmem:[%s2157_s13 + $0xf8] sm:$0xff] }
 0x232   : > { %v1785_v13 = vpop.eup %1784  ;;  %v2470_v16 = vpop.f32.mrf.mxu1 }
 0x233   : > { %v1182_v48 = vadd.f32 %v1150_v7, %v1086_v6  ;;  %v1024_v15 = vmul.f32 0.49, %v1785_v13  ;;  %v964_v19 = vmul.f32 0.5, %v873_v9  ;;  %v1119_v22 = vsub.f32 1.0, %v2468_v54 }
 0x234   : > { %v878_v24 = vpop.f32.mrf.mxu1  ;;  %v1087_v34 = vmul.f32 %v2468_v54, %v311_v17  ;;  %v865_v6 = vadd.f32 %v2449_v49, %v2334_v23 }
 0x235   : > { %1214 = vst [vmem:[%s2354_s18 + $0x58] sm:$0xff] %v1182_v48  ;;  %v2477_v25 = vadd.f32 0.5, %v1024_v15  ;;  %1792 = vtanh.f32 %v964_v19  ;;  %v879_v27 = vadd.f32 %v878_v24, %v2323_v0  ;;  %v1151_v4 = vmul.f32 %v1119_v22, %v851_v20  ;;  %v319_v24 = vld [vmem:[%s2157_s13 + $0x108] sm:$0xff] }
 0x236   : > { %v1787_v28 = vpop.eup %1786  ;;  %v2482_v35 = vpop.f32.mrf.mxu1 }
 0x237   : > { %v1120_v36 = vsub.f32 1.0, %v2477_v25  ;;  %v1025_v37 = vmul.f32 0.49, %v1787_v28  ;;  %v1183_v39 = vadd.f32 %v1151_v4, %v1087_v34  ;;  %v965_v41 = vmul.f32 0.5, %v879_v27 }
 0x238   : > { %v882_v43 = vpop.f32.mrf.mxu1  ;;  %v1088_v44 = vmul.f32 %v2477_v25, %v313_v21  ;;  %v871_v34 = vadd.f32 %v2460_v42, %v2334_v23  ;;  %v875_v42 = vadd.f32 %v2470_v16, %v2334_v23 }
 0x239   : > { %v1152_v45 = vmul.f32 %v1120_v36, %v855_v63  ;;  %v2488_v46 = vadd.f32 0.5, %v1025_v37  ;;  %v883_v18 = vadd.f32 %v882_v43, %v2323_v0  ;;  %1215 = vst [vmem:[%s2354_s18 + $0x60] sm:$0xff] %v1183_v39  ;;  %1794 = vtanh.f32 %v965_v41  ;;  %v321_v41 = vld [vmem:[%s2157_s13 + $0x118] sm:$0xff] }
 0x23a   : > { %v2493_v50 = vpop.f32.mrf.mxu1  ;;  %v1789_v12 = vpop.eup %1788 }
 0x23b   : > { %v1184_v51 = vadd.f32 %v1152_v45, %v1088_v44  ;;  %v1121_v55 = vsub.f32 1.0, %v2488_v46  ;;  %v1026_v56 = vmul.f32 0.49, %v1789_v12  ;;  %v966_v58 = vmul.f32 0.5, %v883_v18 }
 0x23c   : > { %v888_v60 = vpop.f32.mrf.mxu1  ;;  %v1089_v61 = vmul.f32 %v2488_v46, %v315_v30 }
 0x23d   : > { %1216 = vst [vmem:[%s2354_s18 + $0x68] sm:$0xff] %v1184_v51  ;;  %v1153_v1 = vmul.f32 %v1121_v55, %v861_v52  ;;  %v889_v33 = vadd.f32 %v888_v60, %v2323_v0  ;;  %v2501_v11 = vadd.f32 0.5, %v1026_v56  ;;  %1796 = vtanh.f32 %v966_v58 }
 0x23e   : > { %v2503_v2 = vpop.f32.mrf.mxu1  ;;  %v1791_v3 = vpop.eup %1790 }
 0x23f   : > { %v1185_v31 = vadd.f32 %v1153_v1, %v1089_v61  ;;  %v967_v5 = vmul.f32 0.5, %v889_v33  ;;  %v1122_v7 = vsub.f32 1.0, %v2501_v11  ;;  %v1027_v9 = vmul.f32 0.49, %v1791_v3  ;;  %v323_v1 = vld [vmem:[%s2157_s13 + $0x128] sm:$0xff] }
 0x240   : > { %v892_v13 = vpop.f32.mrf.mxu1  ;;  %v1090_v15 = vmul.f32 %v2501_v11, %v317_v8  ;;  %v881_v3 = vadd.f32 %v2482_v35, %v2334_v23  ;;  %v325_v35 = vld [vmem:[%s2157_s13 + $0x138] sm:$0xff] }
 0x241   : > { %1217 = vst [vmem:[%s2354_s18 + $0x70] sm:$0xff] %v1185_v31  ;;  %1798 = vtanh.f32 %v967_v5  ;;  %v893_v48 = vadd.f32 %v892_v13, %v2323_v0  ;;  %v1154_v19 = vmul.f32 %v1122_v7, %v865_v6  ;;  %v2512_v20 = vadd.f32 0.5, %v1027_v9 }
 0x242   : > { %v1793_v17 = vpop.eup %1792  ;;  %v2514_v22 = vpop.f32.mrf.mxu1 }
 0x243   : > { %v1028_v49 = vmul.f32 0.49, %v1793_v17  ;;  %v968_v27 = vmul.f32 0.5, %v893_v48  ;;  %v1186_v28 = vadd.f32 %v1154_v19, %v1090_v15  ;;  %v1123_v4 = vsub.f32 1.0, %v2512_v20 }
 0x244   : > { %v898_v21 = vpop.f32.mrf.mxu1  ;;  %v1091_v37 = vmul.f32 %v2512_v20, %v319_v24  ;;  %v2015_v15 = vmov 1.0  }
 0x245   : > { %v2520_v63 = vadd.f32 0.5, %v1028_v49  ;;  %1800 = vtanh.f32 %v968_v27  ;;  %v899_v36 = vadd.f32 %v898_v21, %v2323_v0  ;;  %1218 = vst [vmem:[%s2354_s18 + $0x78] sm:$0xff] %v1186_v28  ;;  %v1155_v39 = vmul.f32 %v1123_v4, %v871_v34  ;;  %1618 = vmatprep.mubr.f32.mxu0 %v2015_v15  ;;  %v327_v21 = vld [vmem:[%s2157_s13 + $0x148] sm:$0xff] }
 0x246   : > { %v2526_v43 = vpop.f32.mrf.mxu1  ;;  %v1795_v44 = vpop.eup %1794  ;;  %v885_v27 = vadd.f32 %v2493_v50, %v2334_v23  ;;  %v891_v50 = vadd.f32 %v2503_v2, %v2334_v23 }
 0x247   : > { %v1124_v45 = vsub.f32 1.0, %v2520_v63  ;;  %v969_v18 = vmul.f32 0.5, %v899_v36  ;;  %v1187_v30 = vadd.f32 %v1155_v39, %v1091_v37  ;;  %v1029_v12 = vmul.f32 0.49, %v1795_v44 }
 0x248   : > { %v902_v51 = vpop.f32.mrf.mxu1  ;;  %v1092_v52 = vmul.f32 %v2520_v63, %v321_v41 }
 0x249   : > { %v1156_v55 = vmul.f32 %v1124_v45, %v875_v42  ;;  %1802 = vtanh.f32 %v969_v18  ;;  %v903_v56 = vadd.f32 %v902_v51, %v2323_v0  ;;  %1219 = vst [vmem:[%s2354_s18 + $0x80] sm:$0xff] %v1187_v30  ;;  %v2534_v58 = vadd.f32 0.5, %v1029_v12 }
 0x24a   : > { %v2536_v60 = vpop.f32.mrf.mxu1  ;;  %v1797_v61 = vpop.eup %1796 }
 0x24b   : > { %v1188_v16 = vadd.f32 %v1156_v55, %v1092_v52  ;;  %v970_v33 = vmul.f32 0.5, %v903_v56  ;;  %v1125_v31 = vsub.f32 1.0, %v2534_v58  ;;  %v1030_v8 = vmul.f32 0.49, %v1797_v61 }
 0x24c   : > { %v908_v5 = vpop.f32.mrf.mxu1  ;;  %v1093_v9 = vmul.f32 %v2534_v58, %v323_v1 }
 0x24d   : > { %1220 = vst [vmem:[%s2354_s18 + $0x88] sm:$0xff] %v1188_v16  ;;  %1804 = vtanh.f32 %v970_v33  ;;  %v909_v6 = vadd.f32 %v908_v5, %v2323_v0  ;;  %v1157_v13 = vmul.f32 %v1125_v31, %v881_v3  ;;  %v2545_v48 = vadd.f32 0.5, %v1030_v8  ;;  %v329_v16 = vld [vmem:[%s2157_s13 + $0x158] sm:$0xff] }
 0x24e   : > { %v1799_v7 = vpop.eup %1798  ;;  %v2547_v17 = vpop.f32.mrf.mxu1  ;;  %v895_v33 = vadd.f32 %v2514_v22, %v2334_v23 }
 0x24f   : > { %v1031_v19 = vmul.f32 0.49, %v1799_v7  ;;  %v971_v24 = vmul.f32 0.5, %v909_v6  ;;  %v1189_v49 = vadd.f32 %v1157_v13, %v1093_v9  ;;  %v1126_v28 = vsub.f32 1.0, %v2545_v48 }
 0x250   : > { %v912_v34 = vpop.f32.mrf.mxu1  ;;  %v1094_v39 = vmul.f32 %v2545_v48, %v325_v35 }
 0x251   : > { %v2554_v4 = vadd.f32 0.5, %v1031_v19  ;;  %1806 = vtanh.f32 %v971_v24  ;;  %v913_v36 = vadd.f32 %v912_v34, %v2323_v0  ;;  %1221 = vst [vmem:[%s2354_s18 + $0x90] sm:$0xff] %v1189_v49  ;;  %v1158_v41 = vmul.f32 %v1126_v28, %v885_v27  ;;  %v331_v19 = vld [vmem:[%s2157_s13 + $0x168] sm:$0xff] }
 0x252   : > { %v1801_v37 = vpop.eup %1800  ;;  %v2560_v44 = vpop.f32.mrf.mxu1  ;;  %v901_v49 = vadd.f32 %v2526_v43, %v2334_v23 }
 0x253   : > { %v1127_v42 = vsub.f32 1.0, %v2554_v4  ;;  %v1032_v45 = vmul.f32 0.49, %v1801_v37  ;;  %v972_v18 = vmul.f32 0.5, %v913_v36  ;;  %v1190_v30 = vadd.f32 %v1158_v41, %v1094_v39 }
 0x254   : > { %v1095_v12 = vmul.f32 %v2554_v4, %v327_v21  ;;  %v918_v51 = vpop.f32.mrf.mxu1 }
 0x255   : > { %v1159_v52 = vmul.f32 %v1127_v42, %v891_v50  ;;  %v2566_v55 = vadd.f32 0.5, %v1032_v45  ;;  %1808 = vtanh.f32 %v972_v18  ;;  %v919_v56 = vadd.f32 %v918_v51, %v2323_v0  ;;  %1222 = vst [vmem:[%s2354_s18 + $0x98] sm:$0xff] %v1190_v30  ;;  %v333_v42 = vld [vmem:[%s2157_s13 + $0x178] sm:$0xff] }
 0x256   : > { %v1803_v61 = vpop.eup %1802  ;;  %v2571_v2 = vpop.f32.mrf.mxu1  ;;  %v905_v18 = vadd.f32 %v2536_v60, %v2334_v23 }
 0x257   : > { %v1191_v1 = vadd.f32 %v1159_v52, %v1095_v12  ;;  %v1128_v3 = vsub.f32 1.0, %v2566_v55  ;;  %v1033_v31 = vmul.f32 0.49, %v1803_v61  ;;  %v973_v8 = vmul.f32 0.5, %v919_v56 }
 0x258   : > { %v922_v5 = vpop.f32.mrf.mxu1  ;;  %v1096_v6 = vmul.f32 %v2566_v55, %v329_v16 }
 0x259   : > { %1223 = vst [vmem:[%s2354_s18 + $0xa0] sm:$0xff] %v1191_v1  ;;  %v1160_v7 = vmul.f32 %v1128_v3, %v895_v33  ;;  %v2578_v9 = vadd.f32 0.5, %v1033_v31  ;;  %v923_v13 = vadd.f32 %v922_v5, %v2323_v0  ;;  %1810 = vtanh.f32 %v973_v8  ;;  %v335_v3 = vld [vmem:[%s2157_s13 + $0x188] sm:$0xff] }
 0x25a   : > { %v1805_v35 = vpop.eup %1804  ;;  %v2582_v24 = vpop.f32.mrf.mxu1  ;;  %v911_v8 = vadd.f32 %v2547_v17, %v2334_v23 }
 0x25b   : > { %v1192_v22 = vadd.f32 %v1160_v7, %v1096_v6  ;;  %v1129_v27 = vsub.f32 1.0, %v2578_v9  ;;  %v1034_v28 = vmul.f32 0.49, %v1805_v35  ;;  %v974_v34 = vmul.f32 0.5, %v923_v13 }
 0x25c   : > { %v928_v21 = vpop.f32.mrf.mxu1  ;;  %v1097_v36 = vmul.f32 %v2578_v9, %v331_v19 }
 0x25d   : > { %1224 = vst [vmem:[%s2354_s18 + $0xa8] sm:$0xff] %v1192_v22  ;;  %v1161_v37 = vmul.f32 %v1129_v27, %v901_v49  ;;  %v2589_v39 = vadd.f32 0.5, %v1034_v28  ;;  %v929_v41 = vadd.f32 %v928_v21, %v2323_v0  ;;  %1812 = vtanh.f32 %v974_v34  ;;  %v337_v27 = vld [vmem:[%s2157_s13 + $0x198] sm:$0xff] }
 0x25e   : > { %v1807_v50 = vpop.eup %1806  ;;  %v2593_v45 = vpop.f32.mrf.mxu1  ;;  %v915_v21 = vadd.f32 %v2560_v44, %v2334_v23 }
 0x25f   : > { %v1193_v43 = vadd.f32 %v1161_v37, %v1097_v36  ;;  %v1130_v30 = vsub.f32 1.0, %v2589_v39  ;;  %v1035_v12 = vmul.f32 0.49, %v1807_v50  ;;  %v975_v51 = vmul.f32 0.5, %v929_v41 }
 0x260   : > { %v932_v52 = vpop.f32.mrf.mxu1  ;;  %v1098_v56 = vmul.f32 %v2589_v39, %v333_v42 }
 0x261   : > { %1225 = vst [vmem:[%s2354_s18 + $0xb0] sm:$0xff] %v1193_v43  ;;  %v1162_v61 = vmul.f32 %v1130_v30, %v905_v18  ;;  %v2600_v16 = vadd.f32 0.5, %v1035_v12  ;;  %v933_v1 = vadd.f32 %v932_v52, %v2323_v0  ;;  %1814 = vtanh.f32 %v975_v51  ;;  %v339_v52 = vld [vmem:[%s2157_s13 + $0x1a8] sm:$0xff] }
 0x262   : > { %v1809_v33 = vpop.eup %1808  ;;  %v2604_v31 = vpop.f32.mrf.mxu1 }
 0x263   : > { %v1194_v60 = vadd.f32 %v1162_v61, %v1098_v56  ;;  %v1131_v5 = vsub.f32 1.0, %v2600_v16  ;;  %v1036_v6 = vmul.f32 0.49, %v1809_v33  ;;  %v976_v7 = vmul.f32 0.5, %v933_v1 }
 0x264   : > { %v938_v13 = vpop.f32.mrf.mxu1  ;;  %v1099_v35 = vmul.f32 %v2600_v16, %v335_v3  ;;  %v921_v56 = vadd.f32 %v2571_v2, %v2334_v23 }
 0x265   : > { %1226 = vst [vmem:[%s2354_s18 + $0xb8] sm:$0xff] %v1194_v60  ;;  %v1163_v19 = vmul.f32 %v1131_v5, %v911_v8  ;;  %v2611_v22 = vadd.f32 0.5, %v1036_v6  ;;  %v939_v49 = vadd.f32 %v938_v13, %v2323_v0  ;;  %1816 = vtanh.f32 %v976_v7  ;;  %v341_v8 = vld [vmem:[%s2157_s13 + $0x1b8] sm:$0xff] }
 0x266   : > { %v940_v28 = vpop.f32.mrf.mxu1  ;;  %v1811_v34 = vpop.eup %1810  ;;  %v925_v6 = vadd.f32 %v2582_v24, %v2334_v23 }
 0x267   : > { %v1195_v17 = vadd.f32 %v1163_v19, %v1099_v35  ;;  %v1132_v36 = vsub.f32 1.0, %v2611_v22  ;;  %v977_v37 = vmul.f32 0.5, %v939_v49  ;;  %v1037_v41 = vmul.f32 0.49, %v1811_v34 }
 0x268   : > { %v942_v50 = vpop.f32.mrf.mxu1  ;;  %v1100_v42 = vmul.f32 %v2611_v22, %v337_v27  ;;  %v343_v27 = vld [vmem:[%s2157_s13 + $0x1c8] sm:$0xff] }
 0x269   : > { %1227 = vst [vmem:[%s2354_s18 + $0xc0] sm:$0xff] %v1195_v17  ;;  %v1164_v43 = vmul.f32 %v1132_v36, %v915_v21  ;;  %1818 = vtanh.f32 %v977_v37  ;;  %v943_v18 = vadd.f32 %v942_v50, %v2323_v0  ;;  %v2621_v30 = vadd.f32 0.5, %v1037_v41 }
 0x26a   : > { %v1813_v12 = vpop.eup %1812  ;;  %v931_v17 = vadd.f32 %v2593_v45, %v2334_v23 }
 0x26b   : > { %v1196_v51 = vadd.f32 %v1164_v43, %v1100_v42  ;;  %v978_v44 = vmul.f32 0.5, %v943_v18  ;;  %v1133_v61 = vsub.f32 1.0, %v2621_v30  ;;  %v1038_v1 = vmul.f32 0.49, %v1813_v12  ;;  %v345_v42 = vld [vmem:[%s2157_s13 + $0x1d8] sm:$0xff] }
 0x26c   : > { %v1101_v33 = vmul.f32 %v2621_v30, %v339_v52  ;;  %v935_v12 = vadd.f32 %v2604_v31, %v2334_v23 }
 0x26d   : > { %1228 = vst [vmem:[%s2354_s18 + $0xc8] sm:$0xff] %v1196_v51  ;;  %1820 = vtanh.f32 %v978_v44  ;;  %v1165_v3 = vmul.f32 %v1133_v61, %v921_v56  ;;  %v1070_v0 = vadd.f32 0.5, %v1038_v1  ;;  %v347_v61 = vld [vmem:[%s2157_s13 + $0x1e8] sm:$0xff]  ;;  %v941_v1 = vadd.f32 %v940_v28, %v2334_v23 }
 0x26e   : > { %v1815_v60 = vpop.eup %1814  ;;  %1822 = vlog2.f32 %v2501_v11 }
 0x26f   : > { %v1197_v5 = vadd.f32 %v1165_v3, %v1101_v33  ;;  %v1134_v7 = vsub.f32 1.0, %v1070_v0  ;;  %v1039_v13 = vmul.f32 0.49, %v1815_v60  ;;  %v1102_v2 = vmul.f32 %v1070_v0, %v341_v8  ;;  %v944_v8 = vpop.f32.mrf.mxu1 }
 0x271   : > { %1229 = vst [vmem:[%s2354_s18 + $0xd0] sm:$0xff] %v1197_v5  ;;  %v1166_v35 = vmul.f32 %v1134_v7, %v925_v6  ;;  %v1071_v19 = vadd.f32 0.5, %v1039_v13  ;;  %v349_v7 = vld [vmem:[%s2157_s13 + $0x1f8] sm:$0xff]  ;;  %s1560_s13 = sshll.u32 %s2077_s25, 13 }
 0x272   : > { %v1817_v49 = vpop.eup %1816  ;;  %s1471_s11 = scalar_lea.hbm %s2754_s5, %s1560_s13 }
 0x273   : > { %v1198_v34 = vadd.f32 %v1166_v35, %v1102_v2  ;;  %v1135_v21 = vsub.f32 1.0, %v1071_v19  ;;  %v1040_v36 = vmul.f32 0.49, %v1817_v49  ;;  %v1103_v24 = vmul.f32 %v1071_v19, %v343_v27  ;;  %s2681_s8 = scalar_lea.hbm %s1471_s11, 128 }
 0x274   : > { %v945_v2 = vadd.f32 %v944_v8, %v2334_v23 }
 0x275   : > { %1230 = vst [vmem:[%s2354_s18 + $0xd8] sm:$0xff] %v1198_v34  ;;  %v1167_v41 = vmul.f32 %v1135_v21, %v931_v17  ;;  %v1072_v50 = vadd.f32 0.5, %v1040_v36 }
 0x276   : > { %v1819_v37 = vpop.eup %1818 }
 0x277   : > { %v1041_v43 = vmul.f32 0.49, %v1819_v37  ;;  %v1199_v18 = vadd.f32 %v1167_v41, %v1103_v24  ;;  %v1136_v51 = vsub.f32 1.0, %v1072_v50  ;;  %v1104_v45 = vmul.f32 %v1072_v50, %v345_v42 }
 0x279   : > { %v1073_v52 = vadd.f32 0.5, %v1041_v43  ;;  %1231 = vst [vmem:[%s2354_s18 + $0xe0] sm:$0xff] %v1199_v18  ;;  %v1168_v56 = vmul.f32 %v1136_v51, %v935_v12 }
 0x27a   : > { %v1821_v44 = vpop.eup %1820 }
 0x27b   : > { %v1137_v33 = vsub.f32 1.0, %v1073_v52  ;;  %v1042_v3 = vmul.f32 0.49, %v1821_v44  ;;  %v1200_v60 = vadd.f32 %v1168_v56, %v1104_v45  ;;  %v1105_v5 = vmul.f32 %v1073_v52, %v347_v61  ;;  %v1823_v11 = vpop.eup %1822 }
 0x27c   : > { %1824 = vlog2.f32 %v1073_v52  ;;  %v1266_v21 = vmul.f32 0.6931472, %v1823_v11 }
 0x27d   : > { %v1169_v31 = vmul.f32 %v1137_v33, %v941_v1  ;;  %v1074_v6 = vadd.f32 0.5, %v1042_v3  ;;  %1232 = vst [vmem:[%s2354_s18 + $0xe8] sm:$0xff] %v1200_v60 }
 0x27f   : > { %v1201_v13 = vadd.f32 %v1169_v31, %v1105_v5  ;;  %v1138_v35 = vsub.f32 1.0, %v1074_v6  ;;  %1826 = vlog2.f32 %v1074_v6  ;;  %v1106_v28 = vmul.f32 %v1074_v6, %v349_v7 }
 0x280   : > { %1828 = vlog2.f32 %v2488_v46 }
 0x281   : > { %1233 = vst [vmem:[%s2354_s18 + $0xf0] sm:$0xff] %v1201_v13  ;;  %v1170_v49 = vmul.f32 %v1138_v35, %v945_v2  ;;  %1830 = vlog2.f32 %v1072_v50 }
 0x282   : > { %1832 = vlog2.f32 %v2477_v25 }
 0x283   : > { %v1202_v27 = vadd.f32 %v1170_v49, %v1106_v28  ;;  %1834 = vlog2.f32 %v1071_v19 }
 0x284   : > { %1836 = vlog2.f32 %v2468_v54 }
 0x285   : > { %1234 = vst [vmem:[%s2354_s18 + $0xf8] sm:$0xff] %v1202_v27  ;;  %1838 = vlog2.f32 %v1070_v0 }
 0x286   : > { %1840 = vlog2.f32 %v2455_v59 }
 0x287   : > { %1842 = vlog2.f32 %v2621_v30 }
 0x288   : > { %1844 = vlog2.f32 %v2443_v40 }
 0x289   : > { %v1825_v34 = vpop.eup %1824  ;;  %1846 = vlog2.f32 %v2611_v22 }
 0x28a   : > { %v1296_v37 = vmul.f32 0.6931472, %v1825_v34  ;;  %1848 = vlog2.f32 %v2435_v29 }
 0x28b   : > { %1850 = vlog2.f32 %v2600_v16 }
 0x28c   : > { %v1827_v17 = vpop.eup %1826  ;;  %1852 = vlog2.f32 %v2424_v10 }
 0x28d   : > { %v1298_v23 = vmul.f32 0.6931472, %v1827_v17  ;;  %v1829_v36 = vpop.eup %1828  ;;  %1854 = vlog2.f32 %v2589_v39 }
 0x28e   : > { %v1831_v46 = vpop.eup %1830  ;;  %v1264_v25 = vmul.f32 0.6931472, %v1829_v36  ;;  %1856 = vlog2.f32 %v2410_v57 }
 0x28f   : > { %1586 = vmatprep.subr.mxu0 %v1298_v23  ;;  %v1833_v19 = vpop.eup %1832  ;;  %v1294_v54 = vmul.f32 0.6931472, %v1831_v46  ;;  %1858 = vlog2.f32 %v2578_v9 }
 0x290   : > { %1587 = vmatpush3.xpose.msra.mxu0 %v1266_v21  ;;  %v1835_v0 = vpop.eup %1834  ;;  %v1262_v59 = vmul.f32 0.6931472, %v1833_v19  ;;  %1860 = vlog2.f32 %v2402_v47 }
 0x291   : > { %1588 = vmatprep.subr.mxu0 %v1296_v37  ;;  %v1837_v24 = vpop.eup %1836  ;;  %v1292_v41 = vmul.f32 0.6931472, %v1835_v0  ;;  %1862 = vlog2.f32 %v2566_v55 }
 0x292   : > { %v1839_v30 = vpop.eup %1838  ;;  %v1260_v40 = vmul.f32 0.6931472, %v1837_v24  ;;  %1864 = vlog2.f32 %v2391_v32 }
 0x293   : > { %v1841_v50 = vpop.eup %1840  ;;  %v1290_v42 = vmul.f32 0.6931472, %v1839_v30  ;;  %1866 = vlog2.f32 %v2554_v4 }
 0x294   : > { %1589 = vmatpush3.xpose.msra.mxu0 %v1264_v25  ;;  %v1843_v22 = vpop.eup %1842  ;;  %v1258_v29 = vmul.f32 0.6931472, %v1841_v50  ;;  %1868 = vlog2.f32 %v2378_v14 }
 0x295   : > { %1590 = vmatprep.subr.mxu0 %v1294_v54  ;;  %v1845_v43 = vpop.eup %1844  ;;  %v1288_v18 = vmul.f32 0.6931472, %v1843_v22  ;;  %1870 = vlog2.f32 %v2545_v48 }
 0x296   : > { %v1847_v16 = vpop.eup %1846  ;;  %v1256_v10 = vmul.f32 0.6931472, %v1845_v43  ;;  %1872 = vlog2.f32 %v2367_v62 }
 0x297   : > { %v1849_v12 = vpop.eup %1848  ;;  %v1286_v51 = vmul.f32 0.6931472, %v1847_v16  ;;  %1874 = vlog2.f32 %v2534_v58 }
 0x298   : > { %1591 = vmatpush3.xpose.msra.mxu0 %v1262_v59  ;;  %v1851_v39 = vpop.eup %1850  ;;  %v1254_v57 = vmul.f32 0.6931472, %v1849_v12  ;;  %1876 = vlog2.f32 %v2359_v53 }
 0x299   : > { %1592 = vmatprep.subr.mxu0 %v1292_v41  ;;  %v1853_v52 = vpop.eup %1852  ;;  %v1284_v44 = vmul.f32 0.6931472, %v1851_v39  ;;  %1878 = vlog2.f32 %v2520_v63 }
 0x29a   : > { %v1855_v9 = vpop.eup %1854  ;;  %v1252_v47 = vmul.f32 0.6931472, %v1853_v52  ;;  %1880 = vlog2.f32 %v2346_v38 }
 0x29b   : > { %v1857_v45 = vpop.eup %1856  ;;  %v1282_v56 = vmul.f32 0.6931472, %v1855_v9  ;;  %1882 = vlog2.f32 %v2512_v20 }
 0x29c   : > { %1593 = vmatpush3.xpose.msra.mxu0 %v1260_v40  ;;  %v1859_v55 = vpop.eup %1858  ;;  %v1250_v32 = vmul.f32 0.6931472, %v1857_v45  ;;  %1884 = vlog2.f32 %v2336_v26 }
 0x29d   : > { %1594 = vmatprep.subr.mxu0 %v1290_v42  ;;  %v1861_v61 = vpop.eup %1860  ;;  %v1280_v1 = vmul.f32 0.6931472, %v1859_v55 }
 0x29e   : > { %v1863_v4 = vpop.eup %1862  ;;  %v1248_v14 = vmul.f32 0.6931472, %v1861_v61 }
 0x29f   : > { %v1865_v33 = vpop.eup %1864  ;;  %v1278_v3 = vmul.f32 0.6931472, %v1863_v4 }
 0x2a0   : > { %1595 = vmatpush3.xpose.msra.mxu0 %v1258_v29  ;;  %v1867_v48 = vpop.eup %1866  ;;  %v1246_v62 = vmul.f32 0.6931472, %v1865_v33 }
 0x2a1   : > { %1596 = vmatprep.subr.mxu0 %v1288_v18  ;;  %v1869_v60 = vpop.eup %1868  ;;  %v1276_v8 = vmul.f32 0.6931472, %v1867_v48 }
 0x2a2   : > { %v1871_v58 = vpop.eup %1870  ;;  %v1244_v53 = vmul.f32 0.6931472, %v1869_v60 }
 0x2a3   : > { %v1873_v5 = vpop.eup %1872  ;;  %v1274_v31 = vmul.f32 0.6931472, %v1871_v58 }
 0x2a4   : > { %1597 = vmatpush3.xpose.msra.mxu0 %v1256_v10  ;;  %v1875_v6 = vpop.eup %1874  ;;  %v1242_v63 = vmul.f32 0.6931472, %v1873_v5 }
 0x2a5   : > { %1598 = vmatprep.subr.mxu0 %v1286_v51  ;;  %v1877_v7 = vpop.eup %1876  ;;  %v1272_v13 = vmul.f32 0.6931472, %v1875_v6 }
 0x2a6   : > { %v1879_v38 = vpop.eup %1878  ;;  %v1240_v2 = vmul.f32 0.6931472, %v1877_v7 }
 0x2a7   : > { %v1881_v20 = vpop.eup %1880  ;;  %v1270_v35 = vmul.f32 0.6931472, %v1879_v38 }
 0x2a8   : > { %1599 = vmatpush3.xpose.msra.mxu0 %v1254_v57  ;;  %v1883_v28 = vpop.eup %1882  ;;  %v1238_v26 = vmul.f32 0.6931472, %v1881_v20 }
 0x2a9   : > { %1600 = vmatprep.subr.mxu0 %v1284_v44  ;;  %v1885_v49 = vpop.eup %1884  ;;  %v1268_v27 = vmul.f32 0.6931472, %v1883_v28 }
 0x2aa   : > { %v1236_v11 = vmul.f32 0.6931472, %v1885_v49 }
 0x2ac   : > { %1601 = vmatpush3.xpose.msra.mxu0 %v1252_v47 }
 0x2ad   : > { %1602 = vmatprep.subr.mxu0 %v1282_v56 }
 0x2b0   : > { %1603 = vmatpush3.xpose.msra.mxu0 %v1250_v32 }
 0x2b1   : > { %1604 = vmatprep.subr.mxu0 %v1280_v1 }
 0x2b4   : > { %1605 = vmatpush3.xpose.msra.mxu0 %v1248_v14 }
 0x2b5   : > { %1606 = vmatprep.subr.mxu0 %v1278_v3 }
 0x2b8   : > { %1607 = vmatpush3.xpose.msra.mxu0 %v1246_v62 }
 0x2b9   : > { %1608 = vmatprep.subr.mxu0 %v1276_v8 }
 0x2bc   : > { %1609 = vmatpush3.xpose.msra.mxu0 %v1244_v53 }
 0x2bd   : > { %1610 = vmatprep.subr.mxu0 %v1274_v31 }
 0x2c0   : > { %1611 = vmatpush3.xpose.msra.mxu0 %v1242_v63 }
 0x2c1   : > { %1612 = vmatprep.subr.mxu0 %v1272_v13 }
 0x2c4   : > { %1613 = vmatpush3.xpose.msra.mxu0 %v1240_v2 }
 0x2c5   : > { %1614 = vmatprep.subr.mxu0 %v1270_v35 }
 0x2c8   : > { %1615 = vmatpush3.xpose.msra.mxu0 %v1238_v26 }
 0x2c9   : > { %1616 = vmatprep.subr.mxu0 %v1268_v27 }
 0x2cc   : > { %1617 = vmatpush3.xpose.msra.mxu0 %v1236_v11 }
 0x2cf   : > { %1619 = vmatmul.mubr.f32.vlgmr.msra.gmra.mxu0 %v2015_v15 }
 0x2d0   : > { %1927 = shalt.err (!%p1924_p10)
}
 0x2d1   : > { %s1940_s7 = scalar_lea.hbm %s1471_s11, 4224  ;;  %s1932_s13 = scalar_lea.hbm %s2754_s5, 16384 }
 0x2d2   : > { %p1929_p0 = scmp.ne.s32.totalorder %s2681_s8, %s1940_s7  ;;  %p1933_p1 = scmp.lt.s32.totalorder %s2681_s8, %s2754_s5 }
 0x2d3   : > { %p1934_p3 = scmp.lt.s32.totalorder %s1932_s13, %s1940_s7 }
 0x2d4   : > { %p1930_p2 = pnand %p1929_p0, %p2766_p12 }
 0x2d5   : > { %p1935_p6 = por %p1934_p3, %p1933_p1 }
 0x2d6   : > { %p1931_p9 = pneg %p1930_p2 }
 0x2d8   : > { %p1936_p11 = pnand %p1935_p6, %p1931_p9 }
 0x2da   : > { %1939 = shalt.err (!%p1936_p11)
}
 0x2db   : > { %s2017_s11 = smov 128   ;;  %s2018_s17 = smov 256  }
 0x2dc   : > { %s2019_s26 = smov 8   ;;  %s1524_s28 = sshll.u32 %s2153_s29, 4 }
 0x2dd   : > { %1670 = dma.vmem_to_hbm [thread:$0]  (%p2766_p12), %s2683_s14, 4096, %s2681_s8, %s1373_s15, %s2017_s11, %s2018_s17, %s2019_s26  }
 0x2de   : > { %s281_s12 = scalar_lea.vmem [#allocation6], %s1524_s28  ;;  %s1561_s16 = sshll.u32 %s2077_s25, 8 }
 0x2df   : > { %s1410_s7 = sshll.u32 %s281_s12, 4  ;;  %s1408_s19 = scalar_lea.hbm %s2755_s6, %s1561_s16  ;;  %s2709_s7 = int_to_ptr.vmem [resolvable:$true] %s1410_s7 }
 0x2e0   : > { %s1378_s20 = scalar_lea.sflag [#allocation7], %s2153_s29  ;;  %s1941_s0 = scalar_lea.vmem %s2709_s7, 256 }
 0x2e1   : > { %p1942_p13 = scmp.ne.s32.totalorder %s2709_s7, %s1941_s0  ;;  %s2020_s25 = smov [#allocation6]  }
 0x2e2   : > { %s1945_s14 = sshll.u32 %s2020_s25, 4  ;;  %s1946_s14 = int_to_ptr.vmem [resolvable:$false] %s1945_s14 }
 0x2e3   : > { %p1943_p4 = pnand %p1942_p13, %p2766_p12  ;;  %s1947_s8 = scalar_lea.vmem %s1946_s14, 512 }
 0x2e4   : > { %p1948_p7 = scmp.lt.s32.totalorder %s2709_s7, %s1946_s14  ;;  %p1949_p8 = scmp.lt.s32.totalorder %s1947_s8, %s1941_s0 }
 0x2e5   : > { %p1944_p5 = pneg %p1943_p4 }
 0x2e6   : > { %p1950_p10 = por %p1949_p8, %p1948_p7 }
 0x2e8   : > { %p1951_p0 = pnand %p1950_p10, %p1944_p5 }
 0x38f   : > { %v1365_v15 = vpop.f32.mrf.mxu0 }
 0x390   : > { %1370 = vst [vmem:[%s281_s12] sm:$0xff] %v1365_v15 }
 0x391   : > { %v1367_v34 = vpop.f32.mrf.mxu0 }
 0x392   : > { %1371 = vst [vmem:[%s281_s12 + $0x8] sm:$0xff] %v1367_v34 }
 0x393   : > { %1954 = shalt.err (!%p1951_p0)
}
 0x394   : > { %s1955_s15 = scalar_lea.hbm %s1408_s19, 256  ;;  %s1959_s17 = scalar_lea.hbm %s2755_s6, 512 }
 0x395   : > { %p1956_p2 = scmp.ne.s32.totalorder %s1408_s19, %s1955_s15  ;;  %p1960_p3 = scmp.lt.s32.totalorder %s1408_s19, %s2755_s6 }
 0x396   : > { %p1961_p6 = scmp.lt.s32.totalorder %s1959_s17, %s1955_s15 }
 0x397   : > { %p1957_p9 = pnand %p1956_p2, %p2766_p12 }
 0x398   : > { %p1962_p11 = por %p1961_p6, %p1960_p3 }
 0x399   : > { %p1958_p1 = pneg %p1957_p9 }
 0x39b   : > { %p1963_p13 = pnand %p1962_p11, %p1958_p1 }
 0x39d   : > { %1966 = shalt.err (!%p1963_p13)
}
 0x39e   : > { %1671 = dma.vmem_to_hbm [thread:$0]  (%p2766_p12), %s2709_s7, 256, %s1408_s19, %s1378_s20  }
 0x39f PF: > { %s1422_s0 = sand.u32 1, %s1997_s21   ;;  %p2767_p4 = scmp.ne.s32.totalorder %s2762_s10, 0 }
 0x3a0   : > { %p2768_p5 = scmp.ge.s32.totalorder %s2009_s24, 2  ;;  %s1423_s12 = scalar_lea.sflag [#allocation4], %s1422_s0 }
 0x3a2   : > { %p1679_p7 = pnand %p2768_p5, %p2767_p4 }
 0x3a4   : > { %p1680_p8 = pneg %p1679_p7 }
 0x3a6   : > { %1988 = dma.done.wait (%p1680_p8), %s1423_s12, 4096  }
 0x3a7   : > { %1990 = vsyncadd (%p1680_p8), %s1423_s12, 4294963200  ;;  %s1432_s16 = scalar_lea.sflag [#allocation7], %s1422_s0 }
 0x3a8   : > { %1992 = dma.done.wait (%p1680_p8), %s1432_s16, 256  }
 0x3a9   : > { %1994 = vsyncadd (%p1680_p8), %s1432_s16, 4294967040  ;;  %p23_p12 = scmp.ge.s32.totalorder %s2081_s27, 4   ;;  %s2769_s21 = smov %s2001_s22 }
 0x3aa   : > { %s2770_s22 = smov %s2005_s23  ;;  %s2771_s23 = smov %s2093_s30 }
 0x3ab   : > { %s2772_s24 = smov %s2081_s27  ;;  %25 = sbr.rel (!%p23_p12) target bundleno = 9 (0x9), region = 102 }
 0x3b0   :  { %1437 = vsyncpa [#allocation3], 1 }
 0x3b1   :  { %1439 = vsyncpa [#allocation3 + $0x1], 1 }
 0x3b2   :  { %1440 = vsyncpa [#allocation4], 1 }
 0x3b3   :  { %1442 = vsyncpa [#allocation4 + $0x1], 1 }
 0x3b4   :  { %1443 = vsyncpa [#allocation7], 1 }
 0x3b5   :  { %1445 = vsyncpa [#allocation7 + $0x1], 1 }

// kernel: tpu_custom_call.1
= control target key start
LH: loop header
LB: loop body
LE: loop exit
PB: predicated region body
PF: predicated region fallthrough
CT: control target
= control target key end

     0   :  { %s2749_s0 = inlined_call_operand.hbm [shape: f32[512,256], index: 0, kind: input, shape index: {}, may-alias: {0,5}]   ;;  %s2750_s1 = inlined_call_operand.vmem [shape: bf16[128,128], index: 1, kind: input, shape index: {}]   ;;  %s2751_s2 = inlined_call_operand.vmem [shape: f32[1,128], index: 2, kind: input, shape index: {}]   ;;  %s2752_s3 = inlined_call_operand.vmem [shape: bf16[128,256], index: 3, kind: input, shape index: {}]   ;;  %s2753_s4 = inlined_call_operand.vmem [shape: f32[1,256], index: 4, kind: input, shape index: {}]   ;;  %s2754_s5 = inlined_call_operand.hbm [shape: f32[512,256], index: 5, kind: output, shape index: {0}, may-alias: {0,5}]   ;;  %s2755_s6 = inlined_call_operand.hbm [shape: f32[8,512], index: 6, kind: output, shape index: {1}]  }
   0x1   :  { %2758 = sst [smem:[#allocation11_spill]] %s2749_s0 }
   0x2   :  { %12 = vsyncpa [#allocation3], 0 }
   0x3   :  { %14 = vsyncpa [#allocation3 + $0x1], 0 }
   0x4   :  { %15 = vsyncpa [#allocation4], 0 }
   0x5   :  { %17 = vsyncpa [#allocation4 + $0x1], 0 }
   0x6   :  { %18 = vsyncpa [#allocation7], 0 }
   0x7   :  { %20 = vsyncpa [#allocation7 + $0x1], 0  ;;  %s2056_s21 = smov 0   ;;  %s2058_s22 = smov 0  }
   0x8   :  { %s2060_s23 = smov 0   ;;  %s2062_s24 = smov 0  }
   0x9 LB: > { %s2077_s25 = sadd.s32 4294967295, %s2009_s24   ;;  %s1514_s26 = sadd.s32 4294967294, %s2009_s24   ;;  %s2009_s24 = sphi %s2062_s24, %s2772_s24   ;;  %s2005_s23 = sphi %s2060_s23, %s2771_s23   ;;  %s2001_s22 = sphi %s2058_s22, %s2770_s22   ;;  %s1997_s21 = sphi %s2056_s21, %s2769_s21  }
   0xa   : > { %s2081_s27 = sadd.s32 1, %s2009_s24   ;;  %s33_s28 = sadd.s32 1, %s2005_s23 }
   0xb   : > { %s30_s29 = ssub.s32 %s2009_s24, %s2081_s27  ;;  %p40_p0 = scmp.ne.s32.totalorder %s2005_s23, %s2001_s22 }
   0xc   : > { %p31_p1 = scmp.eq.s32.totalorder %s30_s29, 0  ;;  %p41_p2 = scmp.eq.s32.totalorder %s2009_s24, 0 }
   0xd   : > { %p46_p3 = scmp.ne.s32.totalorder %s2001_s22, %s1997_s21  ;;  %p47_p4 = scmp.eq.s32.totalorder %s2077_s25, 0 }
   0xe   : > { %s2093_s30 = scalar_select %p31_p1, %s2005_s23, %s33_s28  }
   0xf   : > { %p2095_p5 = por %p41_p2, %p40_p0  ;;  %p2099_p6 = por %p47_p4, %p46_p3 }
  0x10   : > { %p154_p7 = scmp.eq.s32.totalorder %s2077_s25, 1  ;;  %p160_p8 = scmp.eq.s32.totalorder %s1514_s26, 1 }
  0x11   : > { %s2760_s8 = scalar_select %p2099_p6, 1, 0 }
  0x12   : > { %p1685_p10 = scmp.lt.s32.totalorder %s2009_s24, 2  ;;  %p2106_p11 = por %p154_p7, %p40_p0 }
  0x13   : > { %p2110_p12 = por %p160_p8, %p46_p3  ;;  %s218_s11 = sand.u32 1, %s2005_s23  }
  0x14   : > { %s2761_s9 = scalar_select %p2106_p11, 1, 0 }
  0x15   : > { %s2762_s10 = scalar_select %p2110_p12, 1, 0 }
  0x16   : > { %s1559_s12 = sshll.u32 %s2009_s24, 13  ;;  %s1517_s13 = sshll.u32 %s218_s11, 9 }
  0x17   : > { %s2763_s0 = sld [smem:[#allocation11_spill]]  ;;  %s222_s17 = scalar_lea.vmem [#allocation2], %s1517_s13 }
  0x18   : > { %s230_s18 = sshll.u32 %s222_s17, 4  ;;  %p2123_p13 = pnand %p1685_p10, %p2095_p5  ;;  %s2127_s18 = int_to_ptr.vmem [resolvable:$true] %s230_s18 }
  0x19   : > { %s2129_s20 = scalar_lea.sflag [#allocation3], %s218_s11 }
  0x1a   : > { %p1888_p1 = pneg %p2123_p13 }
  0x1d   : > { %s2119_s16 = scalar_lea.hbm %s2763_s0, %s1559_s12  ;;  %s1891_s12 = scalar_lea.hbm %s2763_s0, 16384 }
  0x1e   : > { %s1886_s26 = scalar_lea.hbm %s2119_s16, 8192  ;;  %p1892_p4 = scmp.lt.s32.totalorder %s2119_s16, %s2763_s0 }
  0x1f   : > { %p1887_p0 = scmp.ne.s32.totalorder %s2119_s16, %s1886_s26  ;;  %p1893_p5 = scmp.lt.s32.totalorder %s1891_s12, %s1886_s26 }
  0x21   : > { %p1889_p2 = pnand %p1888_p1, %p1887_p0  ;;  %p1894_p7 = por %p1893_p5, %p1892_p4 }
  0x23   : > { %p1890_p3 = pneg %p1889_p2 }
  0x25   : > { %p1895_p8 = pnand %p1894_p7, %p1890_p3 }
  0x27   : > { %1898 = shalt.err (!%p1895_p8)
}
  0x28   : > { %s1899_s11 = scalar_lea.vmem %s2127_s18, 8192  ;;  %s2011_s14 = smov [#allocation2]  }
  0x29   : > { %p1900_p10 = scmp.ne.s32.totalorder %s2127_s18, %s1899_s11  ;;  %s1904_s15 = sshll.u32 %s2011_s14, 4  ;;  %s1905_s15 = int_to_ptr.vmem [resolvable:$false] %s1904_s15 }
  0x2a   : > { %s1906_s17 = scalar_lea.vmem %s1905_s15, 16384  ;;  %p1907_p2 = scmp.lt.s32.totalorder %s2127_s18, %s1905_s15 }
  0x2b   : > { %p1902_p9 = pnand %p1900_p10, %p1888_p1  ;;  %p1908_p12 = scmp.lt.s32.totalorder %s1906_s17, %s1899_s11 }
  0x2d   : > { %p1903_p0 = pneg %p1902_p9  ;;  %p1909_p11 = por %p1908_p12, %p1907_p2 }
  0x2f   : > { %p1910_p6 = pnand %p1909_p11, %p1903_p0 }
  0x31   : > { %1913 = shalt.err (!%p1910_p6)
}
  0x32   : > { %s2012_s26 = smov 256   ;;  %s2013_s28 = smov 16  }
  0x33   : > { %1677 = dma.hbm_to_vmem [thread:$0]  (!%p2123_p13), %s2119_s16, 8192, %s2127_s18, %s2129_s20, %s2012_s26, %s2012_s26, %s2013_s28  }
  0x34   : > { %p1521_p9 = scmp.ge.s32.totalorder %s2009_s24, 1  ;;  %p238_p1 = scmp.lt.s32.totalorder %s2009_s24, 3 }
  0x36   : > { %p239_p3 = pnand %p1521_p9, %p238_p1 }
  0x37   : > { %s2153_s29 = sand.u32 (!%p239_p3), 1, %s2001_s22   ;;  %p2765_p6 = scmp.ne.s32.totalorder (!%p239_p3), %s2760_s8, 0 }
  0x38   : > { %242 = sbr.rel (%p239_p3) target bundleno = 927 (0x39f), region = 40  ;;  %s1522_s12 = sshll.u32 (!%p239_p3), %s2153_s29, 9 }
  0x39   : > { %s245_s7 = scalar_lea.sflag (!%p239_p3), [#allocation3], %s2153_s29  ;;  %s2157_s13 = scalar_lea.vmem (!%p239_p3), [#allocation2], %s1522_s12 }
  0x3d   : > { %1984 = dma.done.wait (%p2765_p6), %s245_s7, 8192  }
  0x3e   : > { %1986 = vsyncadd (%p2765_p6), %s245_s7, 4294959104  ;;  %v1726_v0 = vld [vmem:[%s2750_s1 + $0x38] sm:$0xff]   ;;  %v1727_v1 = vld [vmem:[%s2750_s1 + $0x30] sm:$0xff]   ;;  %s1523_s16 = sshll.u32 %s2153_s29, 8  ;;  %s1373_s15 = scalar_lea.sflag [#allocation4], %s2153_s29 }
  0x3f   : > { %1620 = vmatprep.subr.bf16.mxu0 %v1726_v0  ;;  %v1728_v2 = vld [vmem:[%s2750_s1 + $0x28] sm:$0xff]   ;;  %v1729_v3 = vld [vmem:[%s2750_s1 + $0x20] sm:$0xff]   ;;  %v288_v5 = vld [vmem:[%s2157_s13 + $0x10] sm:$0xff]  ;;  %s2354_s18 = scalar_lea.vmem [#allocation5], %s1523_s16  ;;  %p2766_p12 = scmp.ne.s32.totalorder %s2761_s9, 0 }
  0x40   : > { %1621 = vmatpush3.bf16.msra.mxu0 %v1726_v0  ;;  %v286_v4 = vld [vmem:[%s2157_s13] sm:$0xff]  ;;  %v1730_v7 = vld [vmem:[%s2750_s1 + $0x18] sm:$0xff]   ;;  %v1731_v8 = vld [vmem:[%s2750_s1 + $0x10] sm:$0xff]   ;;  %s1393_s14 = sshll.u32 %s2354_s18, 4  ;;  %s2016_s26 = smov [#allocation5]   ;;  %s2683_s14 = int_to_ptr.vmem [resolvable:$true] %s1393_s14 }
  0x41   : > { %1622 = vmatprep.subr.bf16.mxu0 %v1727_v1  ;;  %v350_v6 = vpack.c.bf16 %v288_v5, %v286_v4  ;;  %v1732_v9 = vld [vmem:[%s2750_s1 + $0x8] sm:$0xff]   ;;  %v1734_v10 = vld [vmem:[%s2752_s3 + $0x74] ss:$8 sps:$4 sm:$0xff]   ;;  %v1736_v11 = vld [vmem:[%s2752_s3 + $0x70] ss:$8 sps:$4 sm:$0xff]   ;;  %s1914_s17 = scalar_lea.vmem %s2683_s14, 4096 }
  0x42   : > { %v1737_v12 = vld [vmem:[%s2752_s3 + $0x64] ss:$8 sps:$4 sm:$0xff]   ;;  %754 = vmatprep.subr.bf16.mxu1 %v1734_v10  ;;  %v1739_v13 = vld [vmem:[%s2752_s3 + $0x60] ss:$8 sps:$4 sm:$0xff]   ;;  %v1740_v14 = vld [vmem:[%s2752_s3 + $0x54] ss:$8 sps:$4 sm:$0xff]   ;;  %p1915_p11 = scmp.ne.s32.totalorder %s2683_s14, %s1914_s17 }
  0x43   : > { %1636 = vmatprep.mubr.bf16.mxu0 %v350_v6  ;;  %755 = vmatpush1.bf16.msra.mxu1 %v1736_v11  ;;  %v1733_v15 = vld [vmem:[%s2750_s1] sm:$0xff]   ;;  %v1742_v17 = vld [vmem:[%s2752_s3 + $0x50] ss:$8 sps:$4 sm:$0xff]   ;;  %v1746_v25 = vld [vmem:[%s2752_s3 + $0x34] ss:$8 sps:$4 sm:$0xff]   ;;  %s1918_s28 = sshll.u32 %s2016_s26, 4  ;;  %s1919_s28 = int_to_ptr.vmem [resolvable:$false] %s1918_s28 }
  0x44   : > { %1623 = vmatpush3.bf16.msra.mxu0 %v1727_v1  ;;  %756 = vmatprep.subr.bf16.mxu1 %v1737_v12  ;;  %v290_v16 = vld [vmem:[%s2157_s13 + $0x20] sm:$0xff]  ;;  %v292_v18 = vld [vmem:[%s2157_s13 + $0x30] sm:$0xff]  ;;  %p1916_p13 = pnand %p1915_p11, %p2766_p12  ;;  %s1920_s12 = scalar_lea.vmem %s1919_s28, 8192 }
  0x45   : > { %1624 = vmatprep.subr.bf16.mxu0 %v1728_v2  ;;  %v1743_v19 = vld [vmem:[%s2752_s3 + $0x44] ss:$8 sps:$4 sm:$0xff]   ;;  %v296_v21 = vld [vmem:[%s2157_s13 + $0x50] sm:$0xff]  ;;  %v351_v22 = vpack.c.bf16 %v292_v18, %v290_v16  ;;  %v1745_v23 = vld [vmem:[%s2752_s3 + $0x40] ss:$8 sps:$4 sm:$0xff]   ;;  %p1921_p5 = scmp.lt.s32.totalorder %s2683_s14, %s1919_s28  ;;  %p1922_p7 = scmp.lt.s32.totalorder %s1920_s12, %s1914_s17 }
  0x46   : > { %v294_v20 = vld [vmem:[%s2157_s13 + $0x40] sm:$0xff]  ;;  %v1748_v26 = vld [vmem:[%s2752_s3 + $0x30] ss:$8 sps:$4 sm:$0xff]   ;;  %v1752_v4 = vld [vmem:[%s2752_s3 + $0x14] ss:$8 sps:$4 sm:$0xff]   ;;  %p1917_p4 = pneg %p1916_p13 }
  0x47   : > { %757 = vmatpush1.bf16.msra.mxu1 %v1739_v13  ;;  %v352_v24 = vpack.c.bf16 %v296_v21, %v294_v20  ;;  %v298_v27 = vld [vmem:[%s2157_s13 + $0x60] sm:$0xff]  ;;  %v300_v28 = vld [vmem:[%s2157_s13 + $0x70] sm:$0xff]  ;;  %p1923_p8 = por %p1922_p7, %p1921_p5 }
  0x48   : > { %1625 = vmatpush3.bf16.msra.mxu0 %v1728_v2  ;;  %758 = vmatprep.subr.bf16.mxu1 %v1740_v14  ;;  %v302_v29 = vld [vmem:[%s2157_s13 + $0x80] sm:$0xff]  ;;  %v304_v30 = vld [vmem:[%s2157_s13 + $0x90] sm:$0xff]  ;;  %v353_v31 = vpack.c.bf16 %v300_v28, %v298_v27 }
  0x49   : > { %1626 = vmatprep.subr.bf16.mxu0 %v1729_v3  ;;  %v354_v32 = vpack.c.bf16 %v304_v30, %v302_v29  ;;  %v306_v33 = vld [vmem:[%s2157_s13 + $0xa0] sm:$0xff]  ;;  %v308_v34 = vld [vmem:[%s2157_s13 + $0xb0] sm:$0xff]  ;;  %p1924_p10 = pnand %p1923_p8, %p1917_p4 }
  0x4a   : > { %v310_v35 = vld [vmem:[%s2157_s13 + $0xc0] sm:$0xff]  ;;  %v312_v36 = vld [vmem:[%s2157_s13 + $0xd0] sm:$0xff]  ;;  %v355_v37 = vpack.c.bf16 %v308_v34, %v306_v33 }
  0x4b   : > { %759 = vmatpush1.bf16.msra.mxu1 %v1742_v17  ;;  %v356_v38 = vpack.c.bf16 %v312_v36, %v310_v35  ;;  %v314_v39 = vld [vmem:[%s2157_s13 + $0xe0] sm:$0xff]  ;;  %v316_v40 = vld [vmem:[%s2157_s13 + $0xf0] sm:$0xff] }
  0x4c   : > { %1627 = vmatpush3.bf16.msra.mxu0 %v1729_v3  ;;  %760 = vmatprep.subr.bf16.mxu1 %v1743_v19  ;;  %v318_v41 = vld [vmem:[%s2157_s13 + $0x100] sm:$0xff]  ;;  %v320_v42 = vld [vmem:[%s2157_s13 + $0x110] sm:$0xff]  ;;  %v357_v43 = vpack.c.bf16 %v316_v40, %v314_v39 }
  0x4d   : > { %1628 = vmatprep.subr.bf16.mxu0 %v1730_v7  ;;  %v358_v44 = vpack.c.bf16 %v320_v42, %v318_v41  ;;  %v322_v45 = vld [vmem:[%s2157_s13 + $0x120] sm:$0xff]  ;;  %v324_v46 = vld [vmem:[%s2157_s13 + $0x130] sm:$0xff] }
  0x4e   : > { %v326_v47 = vld [vmem:[%s2157_s13 + $0x140] sm:$0xff]  ;;  %v328_v48 = vld [vmem:[%s2157_s13 + $0x150] sm:$0xff]  ;;  %v359_v49 = vpack.c.bf16 %v324_v46, %v322_v45 }
  0x4f   : > { %761 = vmatpush1.bf16.msra.mxu1 %v1745_v23  ;;  %v360_v50 = vpack.c.bf16 %v328_v48, %v326_v47  ;;  %v330_v51 = vld [vmem:[%s2157_s13 + $0x160] sm:$0xff]  ;;  %v332_v52 = vld [vmem:[%s2157_s13 + $0x170] sm:$0xff] }
  0x50   : > { %1629 = vmatpush3.bf16.msra.mxu0 %v1730_v7  ;;  %762 = vmatprep.subr.bf16.mxu1 %v1746_v25  ;;  %v334_v53 = vld [vmem:[%s2157_s13 + $0x180] sm:$0xff]  ;;  %v336_v54 = vld [vmem:[%s2157_s13 + $0x190] sm:$0xff]  ;;  %v361_v55 = vpack.c.bf16 %v332_v52, %v330_v51 }
  0x51   : > { %1630 = vmatprep.subr.bf16.mxu0 %v1731_v8  ;;  %v362_v56 = vpack.c.bf16 %v336_v54, %v334_v53  ;;  %v338_v57 = vld [vmem:[%s2157_s13 + $0x1a0] sm:$0xff]  ;;  %v340_v58 = vld [vmem:[%s2157_s13 + $0x1b0] sm:$0xff] }
  0x52   : > { %v342_v59 = vld [vmem:[%s2157_s13 + $0x1c0] sm:$0xff]  ;;  %v344_v60 = vld [vmem:[%s2157_s13 + $0x1d0] sm:$0xff]  ;;  %v363_v61 = vpack.c.bf16 %v340_v58, %v338_v57 }
  0x53   : > { %763 = vmatpush1.bf16.msra.mxu1 %v1748_v26  ;;  %v364_v62 = vpack.c.bf16 %v344_v60, %v342_v59  ;;  %v346_v63 = vld [vmem:[%s2157_s13 + $0x1e0] sm:$0xff]  ;;  %v348_v0 = vld [vmem:[%s2157_s13 + $0x1f0] sm:$0xff] }
  0x54   : > { %1631 = vmatpush3.bf16.msra.mxu0 %v1731_v8  ;;  %v365_v1 = vpack.c.bf16 %v348_v0, %v346_v63  ;;  %v1749_v2 = vld [vmem:[%s2752_s3 + $0x24] ss:$8 sps:$4 sm:$0xff]   ;;  %v1751_v3 = vld [vmem:[%s2752_s3 + $0x20] ss:$8 sps:$4 sm:$0xff]   ;;  %v1754_v5 = vld [vmem:[%s2752_s3 + $0x10] ss:$8 sps:$4 sm:$0xff]  }
  0x55   : > { %1632 = vmatprep.subr.bf16.mxu0 %v1732_v9  ;;  %764 = vmatprep.subr.bf16.mxu1 %v1749_v2  ;;  %v1755_v6 = vld [vmem:[%s2752_s3 + $0x4] ss:$8 sps:$4 sm:$0xff]   ;;  %v1757_v7 = vld [vmem:[%s2752_s3] ss:$8 sps:$4 sm:$0xff]   ;;  %v2014_v8 = vmov 0  }
  0x56   : > { %786 = vmatprep.mubr.bf16.mxu1 %v2014_v8  ;;  %v2271_v11 = vld [vmem:[%s2751_s2] ss:$0 sm:$0xff] }
  0x57   : > { %765 = vmatpush1.bf16.msra.mxu1 %v1751_v3 }
  0x58   : > { %1633 = vmatpush3.bf16.msra.mxu0 %v1732_v9  ;;  %766 = vmatprep.subr.bf16.mxu1 %v1752_v4 }
  0x59   : > { %1634 = vmatprep.subr.bf16.mxu0 %v1733_v15 }
  0x5b   : > { %767 = vmatpush1.bf16.msra.mxu1 %v1754_v5 }
  0x5c   : > { %1635 = vmatpush3.bf16.msra.mxu0 %v1733_v15  ;;  %768 = vmatprep.subr.bf16.mxu1 %v1755_v6 }
  0x5f   : > { %1637 = vmatmul.mubr.bf16.vlgmr.msra.gmra.mxu0 %v351_v22  ;;  %769 = vmatpush1.bf16.msra.mxu1 %v1757_v7 }
  0x60   : > { %1640 = vmatprep.mubr.bf16.mxu0 %v352_v24 }
  0x67   : > { %1641 = vmatmul.mubr.bf16.gmra.mxu0 %v353_v31 }
  0x68   : > { %1644 = vmatprep.mubr.bf16.mxu0 %v354_v32 }
  0x6f   : > { %1645 = vmatmul.mubr.bf16.gmra.mxu0 %v355_v37 }
  0x70   : > { %1648 = vmatprep.mubr.bf16.mxu0 %v356_v38 }
  0x77   : > { %1649 = vmatmul.mubr.bf16.gmra.mxu0 %v357_v43 }
  0x78   : > { %1652 = vmatprep.mubr.bf16.mxu0 %v358_v44 }
  0x7f   : > { %1653 = vmatmul.mubr.bf16.gmra.mxu0 %v359_v49 }
  0x80   : > { %1656 = vmatprep.mubr.bf16.mxu0 %v360_v50 }
  0x87   : > { %1657 = vmatmul.mubr.bf16.gmra.mxu0 %v361_v55 }
  0x88   : > { %1660 = vmatprep.mubr.bf16.mxu0 %v362_v56 }
  0x8f   : > { %1661 = vmatmul.mubr.bf16.gmra.mxu0 %v363_v61 }
  0x90   : > { %1664 = vmatprep.mubr.bf16.mxu0 %v364_v62 }
  0x97   : > { %1665 = vmatmul.mubr.bf16.gmra.mxu0 %v365_v1 }
 0x11f   : > { %v1638_v9 = vpop.f32.mrf.mxu0 }
 0x120   : > { %v480_v23 = vadd.f32 %v1638_v9, %v2271_v11 }
 0x121   : > { %v471_v10 = vpop.f32.mrf.mxu0 }
 0x122   : > { %v472_v13 = vadd.f32 %v2271_v11, %v471_v10  ;;  %v600_v26 = vmax.f32 %v480_v23, 0.0 }
 0x123   : > { %v1639_v12 = vpop.f32.mrf.mxu0 }
 0x124   : > { %v598_v17 = vmax.f32 %v472_v13, 0.0  ;;  %v483_v20 = vadd.f32 %v1639_v12, %v2271_v11 }
 0x125   : > { %v474_v14 = vpop.f32.mrf.mxu0 }
 0x126   : > { %v475_v15 = vadd.f32 %v2271_v11, %v474_v14  ;;  %v601_v24 = vmax.f32 %v483_v20, 0.0 }
 0x127   : > { %v1642_v16 = vpop.f32.mrf.mxu0 }
 0x128   : > { %v599_v18 = vmax.f32 %v475_v15, 0.0  ;;  %v631_v27 = vpack.c.bf16 %v601_v24, %v600_v26  ;;  %v496_v34 = vadd.f32 %v1642_v16, %v2271_v11 }
 0x129   : > { %v487_v19 = vpop.f32.mrf.mxu0 }
 0x12a   : > { %v630_v21 = vpack.c.bf16 %v599_v18, %v598_v17  ;;  %v488_v28 = vadd.f32 %v2271_v11, %v487_v19  ;;  %v604_v38 = vmax.f32 %v496_v34, 0.0 }
 0x12b   : > { %v1643_v22 = vpop.f32.mrf.mxu0 }
 0x12c   : > { %787 = vmatmul.mubr.bf16.vlgmr.msra.gmra.mxu1 %v630_v21  ;;  %v602_v31 = vmax.f32 %v488_v28, 0.0  ;;  %v499_v35 = vadd.f32 %v1643_v22, %v2271_v11 }
 0x12d   : > { %796 = vmatprep.mubr.bf16.mxu1 %v2014_v8  ;;  %v490_v25 = vpop.f32.mrf.mxu0 }
 0x12e   : > { %v491_v29 = vadd.f32 %v2271_v11, %v490_v25  ;;  %v605_v39 = vmax.f32 %v499_v35, 0.0 }
 0x12f   : > { %v1646_v30 = vpop.f32.mrf.mxu0 }
 0x130   : > { %v603_v32 = vmax.f32 %v491_v29, 0.0  ;;  %v633_v41 = vpack.c.bf16 %v605_v39, %v604_v38  ;;  %v512_v48 = vadd.f32 %v1646_v30, %v2271_v11 }
 0x131   : > { %v503_v33 = vpop.f32.mrf.mxu0 }
 0x132   : > { %v632_v36 = vpack.c.bf16 %v603_v32, %v602_v31  ;;  %v504_v42 = vadd.f32 %v2271_v11, %v503_v33  ;;  %v608_v52 = vmax.f32 %v512_v48, 0.0 }
 0x133   : > { %v1647_v37 = vpop.f32.mrf.mxu0 }
 0x134   : > { %797 = vmatmul.mubr.bf16.gmra.mxu1 %v631_v27  ;;  %v606_v45 = vmax.f32 %v504_v42, 0.0  ;;  %v515_v49 = vadd.f32 %v1647_v37, %v2271_v11 }
 0x135   : > { %806 = vmatprep.mubr.bf16.mxu1 %v2014_v8  ;;  %v506_v40 = vpop.f32.mrf.mxu0 }
 0x136   : > { %v507_v43 = vadd.f32 %v2271_v11, %v506_v40  ;;  %v609_v53 = vmax.f32 %v515_v49, 0.0 }
 0x137   : > { %v1650_v44 = vpop.f32.mrf.mxu0 }
 0x138   : > { %v607_v46 = vmax.f32 %v507_v43, 0.0  ;;  %v635_v55 = vpack.c.bf16 %v609_v53, %v608_v52  ;;  %v528_v62 = vadd.f32 %v1650_v44, %v2271_v11 }
 0x139   : > { %v519_v47 = vpop.f32.mrf.mxu0 }
 0x13a   : > { %v634_v50 = vpack.c.bf16 %v607_v46, %v606_v45  ;;  %v520_v56 = vadd.f32 %v2271_v11, %v519_v47  ;;  %v612_v2 = vmax.f32 %v528_v62, 0.0 }
 0x13b   : > { %v1651_v51 = vpop.f32.mrf.mxu0 }
 0x13c   : > { %807 = vmatmul.mubr.bf16.gmra.mxu1 %v632_v36  ;;  %v610_v59 = vmax.f32 %v520_v56, 0.0  ;;  %v531_v63 = vadd.f32 %v1651_v51, %v2271_v11 }
 0x13d   : > { %816 = vmatprep.mubr.bf16.mxu1 %v2014_v8  ;;  %v522_v54 = vpop.f32.mrf.mxu0 }
 0x13e   : > { %v523_v57 = vadd.f32 %v2271_v11, %v522_v54  ;;  %v613_v3 = vmax.f32 %v531_v63, 0.0  ;;  %v662_v63 = vld [vmem:[%s2753_s4] sm:$0x3] }
 0x13f   : > { %v1654_v58 = vpop.f32.mrf.mxu0 }
 0x140   : > { %v611_v60 = vmax.f32 %v523_v57, 0.0  ;;  %v637_v5 = vpack.c.bf16 %v613_v3, %v612_v2  ;;  %v544_v14 = vadd.f32 %v1654_v58, %v2271_v11 }
 0x141   : > { %v535_v61 = vpop.f32.mrf.mxu0 }
 0x142   : > { %v636_v0 = vpack.c.bf16 %v611_v60, %v610_v59  ;;  %v536_v6 = vadd.f32 %v2271_v11, %v535_v61  ;;  %v616_v18 = vmax.f32 %v544_v14, 0.0  ;;  %v664_v60 = vlaneseq }
 0x143   : > { %v1655_v1 = vpop.f32.mrf.mxu0 }
 0x144   : > { %817 = vmatmul.mubr.bf16.gmra.mxu1 %v633_v41  ;;  %v614_v10 = vmax.f32 %v536_v6, 0.0  ;;  %v547_v15 = vadd.f32 %v1655_v1, %v2271_v11  ;;  %v665_v61 = vshrl.u32 %v664_v60, 7 }
 0x145   : > { %826 = vmatprep.mubr.bf16.mxu1 %v2014_v8  ;;  %v538_v4 = vpop.f32.mrf.mxu0 }
 0x146   : > { %v539_v7 = vadd.f32 %v2271_v11, %v538_v4  ;;  %v617_v19 = vmax.f32 %v547_v15, 0.0  ;;  %v666_v62 = vsub.s32 0, %v665_v61 }
 0x147   : > { %v1658_v9 = vpop.f32.mrf.mxu0 }
 0x148   : > { %v615_v12 = vmax.f32 %v539_v7, 0.0  ;;  %v639_v21 = vpack.c.bf16 %v617_v19, %v616_v18  ;;  %v560_v28 = vadd.f32 %v1658_v9, %v2271_v11 }
 0x149   : > { %v551_v13 = vpop.f32.mrf.mxu0 }
 0x14a   : > { %v638_v16 = vpack.c.bf16 %v615_v12, %v614_v10  ;;  %v552_v22 = vadd.f32 %v2271_v11, %v551_v13  ;;  %v620_v32 = vmax.f32 %v560_v28, 0.0 }
 0x14b   : > { %v1659_v17 = vpop.f32.mrf.mxu0 }
 0x14c   : > { %827 = vmatmul.mubr.bf16.gmra.mxu1 %v634_v50  ;;  %v618_v25 = vmax.f32 %v552_v22, 0.0  ;;  %v563_v29 = vadd.f32 %v1659_v17, %v2271_v11 }
 0x14d   : > { %836 = vmatprep.mubr.bf16.mxu1 %v2014_v8  ;;  %v554_v20 = vpop.f32.mrf.mxu0 }
 0x14e   : > { %v555_v23 = vadd.f32 %v2271_v11, %v554_v20  ;;  %v621_v33 = vmax.f32 %v563_v29, 0.0  ;;  %v287_v29 = vld [vmem:[%s2157_s13 + $0x8] sm:$0xff] }
 0x14f   : > { %v1662_v24 = vpop.f32.mrf.mxu0 }
 0x150   : > { %v619_v26 = vmax.f32 %v555_v23, 0.0  ;;  %v641_v35 = vpack.c.bf16 %v621_v33, %v620_v32  ;;  %v576_v42 = vadd.f32 %v1662_v24, %v2271_v11 }
 0x151   : > { %v567_v27 = vpop.f32.mrf.mxu0 }
 0x152   : > { %v640_v30 = vpack.c.bf16 %v619_v26, %v618_v25  ;;  %v568_v36 = vadd.f32 %v2271_v11, %v567_v27  ;;  %v624_v46 = vmax.f32 %v576_v42, 0.0 }
 0x153   : > { %v1663_v31 = vpop.f32.mrf.mxu0 }
 0x154   : > { %837 = vmatmul.mubr.bf16.gmra.mxu1 %v635_v55  ;;  %v622_v39 = vmax.f32 %v568_v36, 0.0  ;;  %v579_v43 = vadd.f32 %v1663_v31, %v2271_v11 }
 0x155   : > { %846 = vmatprep.mubr.bf16.mxu1 %v2014_v8  ;;  %v570_v34 = vpop.f32.mrf.mxu0 }
 0x156   : > { %v571_v37 = vadd.f32 %v2271_v11, %v570_v34  ;;  %v625_v47 = vmax.f32 %v579_v43, 0.0 }
 0x157   : > { %v1666_v38 = vpop.f32.mrf.mxu0 }
 0x158   : > { %v623_v40 = vmax.f32 %v571_v37, 0.0  ;;  %v643_v49 = vpack.c.bf16 %v625_v47, %v624_v46  ;;  %v592_v54 = vadd.f32 %v1666_v38, %v2271_v11 }
 0x159   : > { %v583_v41 = vpop.f32.mrf.mxu0 }
 0x15a   : > { %v642_v44 = vpack.c.bf16 %v623_v40, %v622_v39  ;;  %v584_v50 = vadd.f32 %v2271_v11, %v583_v41  ;;  %v628_v57 = vmax.f32 %v592_v54, 0.0  ;;  %v289_v41 = vld [vmem:[%s2157_s13 + $0x18] sm:$0xff] }
 0x15b   : > { %v1667_v45 = vpop.f32.mrf.mxu0 }
 0x15c   : > { %847 = vmatmul.mubr.bf16.gmra.mxu1 %v636_v0  ;;  %v626_v52 = vmax.f32 %v584_v50, 0.0  ;;  %v595_v55 = vadd.f32 %v1667_v45, %v2271_v11  ;;  %v2323_v0 = vrot.slane %v662_v63, %v666_v62 }
 0x15d   : > { %856 = vmatprep.mubr.bf16.mxu1 %v2014_v8  ;;  %v586_v48 = vpop.f32.mrf.mxu0 }
 0x15e   : > { %v587_v51 = vadd.f32 %v2271_v11, %v586_v48  ;;  %v629_v58 = vmax.f32 %v595_v55, 0.0 }
 0x160   : > { %v627_v53 = vmax.f32 %v587_v51, 0.0  ;;  %v645_v59 = vpack.c.bf16 %v629_v58, %v628_v57 }
 0x162   : > { %v644_v56 = vpack.c.bf16 %v627_v53, %v626_v52 }
 0x164   : > { %857 = vmatmul.mubr.bf16.gmra.mxu1 %v637_v5 }
 0x165   : > { %866 = vmatprep.mubr.bf16.mxu1 %v2014_v8 }
 0x16c   : > { %867 = vmatmul.mubr.bf16.gmra.mxu1 %v638_v16  ;;  %v670_v16 = vsub.s32 1, %v665_v61 }
 0x16d   : > { %876 = vmatprep.mubr.bf16.mxu1 %v2014_v8 }
 0x16e   : > { %v2334_v23 = vrot.slane %v662_v63, %v670_v16 }
 0x174   : > { %877 = vmatmul.mubr.bf16.gmra.mxu1 %v639_v21 }
 0x175   : > { %886 = vmatprep.mubr.bf16.mxu1 %v2014_v8 }
 0x17c   : > { %887 = vmatmul.mubr.bf16.gmra.mxu1 %v640_v30 }
 0x17d   : > { %896 = vmatprep.mubr.bf16.mxu1 %v2014_v8 }
 0x184   : > { %897 = vmatmul.mubr.bf16.gmra.mxu1 %v641_v35 }
 0x185   : > { %906 = vmatprep.mubr.bf16.mxu1 %v2014_v8 }
 0x18c   : > { %907 = vmatmul.mubr.bf16.gmra.mxu1 %v642_v44 }
 0x18d   : > { %916 = vmatprep.mubr.bf16.mxu1 %v2014_v8 }
 0x194   : > { %917 = vmatmul.mubr.bf16.gmra.mxu1 %v643_v49 }
 0x195   : > { %926 = vmatprep.mubr.bf16.mxu1 %v2014_v8 }
 0x19c   : > { %927 = vmatmul.mubr.bf16.gmra.mxu1 %v644_v56  ;;  %v291_v56 = vld [vmem:[%s2157_s13 + $0x28] sm:$0xff] }
 0x19d   : > { %936 = vmatprep.mubr.bf16.mxu1 %v2014_v8 }
 0x1a4   : > { %937 = vmatmul.mubr.bf16.gmra.mxu1 %v645_v59 }
 0x1ec   : > { %v788_v1 = vpop.f32.mrf.mxu1 }
 0x1ed   : > { %v789_v11 = vadd.f32 %v788_v1, %v2323_v0 }
 0x1ee   : > { %v790_v2 = vpop.f32.mrf.mxu1 }
 0x1ef   : > { %v947_v3 = vmul.f32 0.5, %v789_v11  ;;  %v791_v31 = vadd.f32 %v790_v2, %v2334_v23 }
 0x1f0   : > { %v792_v4 = vpop.f32.mrf.mxu1 }
 0x1f1   : > { %1758 = vtanh.f32 %v947_v3  ;;  %v793_v8 = vadd.f32 %v792_v4, %v2323_v0  ;;  %v293_v3 = vld [vmem:[%s2157_s13 + $0x38] sm:$0xff] }
 0x1f2   : > { %v794_v5 = vpop.f32.mrf.mxu1 }
 0x1f3   : > { %v948_v6 = vmul.f32 0.5, %v793_v8  ;;  %v795_v44 = vadd.f32 %v794_v5, %v2334_v23 }
 0x1f4   : > { %v798_v7 = vpop.f32.mrf.mxu1 }
 0x1f5   : > { %1760 = vtanh.f32 %v948_v6  ;;  %v799_v9 = vadd.f32 %v798_v7, %v2323_v0 }
 0x1f6   : > { %v800_v10 = vpop.f32.mrf.mxu1 }
 0x1f7   : > { %v949_v12 = vmul.f32 0.5, %v799_v9  ;;  %v801_v59 = vadd.f32 %v800_v10, %v2334_v23 }
 0x1f8   : > { %v802_v13 = vpop.f32.mrf.mxu1 }
 0x1f9   : > { %1762 = vtanh.f32 %v949_v12  ;;  %v803_v14 = vadd.f32 %v802_v13, %v2323_v0 }
 0x1fa   : > { %v2329_v15 = vpop.f32.mrf.mxu1 }
 0x1fb   : > { %v950_v17 = vmul.f32 0.5, %v803_v14  ;;  %v805_v8 = vadd.f32 %v2329_v15, %v2334_v23 }
 0x1fc   : > { %v808_v18 = vpop.f32.mrf.mxu1 }
 0x1fd   : > { %1764 = vtanh.f32 %v950_v17  ;;  %v809_v19 = vadd.f32 %v808_v18, %v2323_v0  ;;  %v295_v17 = vld [vmem:[%s2157_s13 + $0x48] sm:$0xff] }
 0x1fe   : > { %v1759_v20 = vpop.eup %1758  ;;  %v2332_v21 = vpop.f32.mrf.mxu1 }
 0x1ff   : > { %v1011_v22 = vmul.f32 0.49, %v1759_v20  ;;  %v951_v24 = vmul.f32 0.5, %v809_v19  ;;  %v811_v20 = vadd.f32 %v2332_v21, %v2334_v23 }
 0x200   : > { %v812_v25 = vpop.f32.mrf.mxu1 }
 0x201   : > { %v2336_v26 = vadd.f32 0.5, %v1011_v22  ;;  %1766 = vtanh.f32 %v951_v24  ;;  %v813_v27 = vadd.f32 %v812_v25, %v2323_v0 }
 0x202   : > { %v1761_v28 = vpop.eup %1760  ;;  %v2340_v30 = vpop.f32.mrf.mxu1 }
 0x203   : > { %v1107_v32 = vsub.f32 1.0, %v2336_v26  ;;  %v1012_v33 = vmul.f32 0.49, %v1761_v28  ;;  %v952_v34 = vmul.f32 0.5, %v813_v27  ;;  %v1075_v36 = vmul.f32 %v2336_v26, %v287_v29 }
 0x204   : > { %v818_v35 = vpop.f32.mrf.mxu1 }
 0x205   : > { %v1139_v37 = vmul.f32 %v1107_v32, %v791_v31  ;;  %v2346_v38 = vadd.f32 0.5, %v1012_v33  ;;  %v819_v39 = vadd.f32 %v818_v35, %v2323_v0  ;;  %1768 = vtanh.f32 %v952_v34  ;;  %v297_v35 = vld [vmem:[%s2157_s13 + $0x58] sm:$0xff] }
 0x206   : > { %v1763_v40 = vpop.eup %1762  ;;  %v2350_v42 = vpop.f32.mrf.mxu1 }
 0x207   : > { %v1171_v43 = vadd.f32 %v1139_v37, %v1075_v36  ;;  %v1108_v45 = vsub.f32 1.0, %v2346_v38  ;;  %v1013_v46 = vmul.f32 0.49, %v1763_v40  ;;  %v953_v47 = vmul.f32 0.5, %v819_v39 }
 0x208   : > { %v822_v48 = vpop.f32.mrf.mxu1  ;;  %v1076_v49 = vmul.f32 %v2346_v38, %v289_v41  ;;  %v815_v37 = vadd.f32 %v2340_v30, %v2334_v23 }
 0x209   : > { %1203 = vst [vmem:[%s2354_s18] sm:$0xff] %v1171_v43  ;;  %v1140_v50 = vmul.f32 %v1108_v45, %v795_v44  ;;  %v823_v51 = vadd.f32 %v822_v48, %v2323_v0  ;;  %v2359_v53 = vadd.f32 0.5, %v1013_v46  ;;  %1770 = vtanh.f32 %v953_v47 }
 0x20a   : > { %v1765_v52 = vpop.eup %1764  ;;  %v2361_v54 = vpop.f32.mrf.mxu1 }
 0x20b   : > { %v1172_v55 = vadd.f32 %v1140_v50, %v1076_v49  ;;  %v1014_v57 = vmul.f32 0.49, %v1765_v52  ;;  %v954_v58 = vmul.f32 0.5, %v823_v51  ;;  %v1109_v60 = vsub.f32 1.0, %v2359_v53  ;;  %v299_v49 = vld [vmem:[%s2157_s13 + $0x68] sm:$0xff] }
 0x20c   : > { %v828_v61 = vpop.f32.mrf.mxu1  ;;  %v1077_v11 = vmul.f32 %v2359_v53, %v291_v56  ;;  %v821_v52 = vadd.f32 %v2350_v42, %v2334_v23  ;;  %v825_v42 = vadd.f32 %v2361_v54, %v2334_v23 }
 0x20d   : > { %1204 = vst [vmem:[%s2354_s18 + $0x8] sm:$0xff] %v1172_v55  ;;  %v2367_v62 = vadd.f32 0.5, %v1014_v57  ;;  %1772 = vtanh.f32 %v954_v58  ;;  %v829_v63 = vadd.f32 %v828_v61, %v2323_v0  ;;  %v1141_v2 = vmul.f32 %v1109_v60, %v801_v59  ;;  %v301_v61 = vld [vmem:[%s2157_s13 + $0x78] sm:$0xff] }
 0x20e   : > { %v1767_v1 = vpop.eup %1766  ;;  %v2372_v4 = vpop.f32.mrf.mxu1 }
 0x20f   : > { %v1110_v5 = vsub.f32 1.0, %v2367_v62  ;;  %v1015_v6 = vmul.f32 0.49, %v1767_v1  ;;  %v1173_v7 = vadd.f32 %v1141_v2, %v1077_v11  ;;  %v955_v9 = vmul.f32 0.5, %v829_v63 }
 0x210   : > { %v832_v10 = vpop.f32.mrf.mxu1  ;;  %v1078_v12 = vmul.f32 %v2367_v62, %v293_v3 }
 0x211   : > { %v1142_v13 = vmul.f32 %v1110_v5, %v805_v8  ;;  %v2378_v14 = vadd.f32 0.5, %v1015_v6  ;;  %v833_v16 = vadd.f32 %v832_v10, %v2323_v0  ;;  %1205 = vst [vmem:[%s2354_s18 + $0x10] sm:$0xff] %v1173_v7  ;;  %1774 = vtanh.f32 %v955_v9 }
 0x212   : > { %v2383_v18 = vpop.f32.mrf.mxu1  ;;  %v1769_v15 = vpop.eup %1768 }
 0x213   : > { %v1174_v19 = vadd.f32 %v1142_v13, %v1078_v12  ;;  %v1111_v22 = vsub.f32 1.0, %v2378_v14  ;;  %v1016_v24 = vmul.f32 0.49, %v1769_v15  ;;  %v956_v25 = vmul.f32 0.5, %v833_v16  ;;  %v303_v16 = vld [vmem:[%s2157_s13 + $0x88] sm:$0xff] }
 0x214   : > { %v838_v27 = vpop.f32.mrf.mxu1  ;;  %v1079_v28 = vmul.f32 %v2378_v14, %v295_v17  ;;  %v831_v15 = vadd.f32 %v2372_v4, %v2334_v23 }
 0x215   : > { %1206 = vst [vmem:[%s2354_s18 + $0x18] sm:$0xff] %v1174_v19  ;;  %v1143_v29 = vmul.f32 %v1111_v22, %v811_v20  ;;  %v839_v31 = vadd.f32 %v838_v27, %v2323_v0  ;;  %v2391_v32 = vadd.f32 0.5, %v1016_v24  ;;  %1776 = vtanh.f32 %v956_v25 }
 0x216   : > { %v2393_v33 = vpop.f32.mrf.mxu1  ;;  %v1771_v34 = vpop.eup %1770 }
 0x217   : > { %v1175_v21 = vadd.f32 %v1143_v29, %v1079_v28  ;;  %v957_v36 = vmul.f32 0.5, %v839_v31  ;;  %v1112_v39 = vsub.f32 1.0, %v2391_v32  ;;  %v1017_v40 = vmul.f32 0.49, %v1771_v34  ;;  %v305_v34 = vld [vmem:[%s2157_s13 + $0x98] sm:$0xff] }
 0x218   : > { %v842_v41 = vpop.f32.mrf.mxu1  ;;  %v1080_v45 = vmul.f32 %v2391_v32, %v297_v35 }
 0x219   : > { %1207 = vst [vmem:[%s2354_s18 + $0x20] sm:$0xff] %v1175_v21  ;;  %1778 = vtanh.f32 %v957_v36  ;;  %v843_v43 = vadd.f32 %v842_v41, %v2323_v0  ;;  %v1144_v46 = vmul.f32 %v1112_v39, %v815_v37  ;;  %v2402_v47 = vadd.f32 0.5, %v1017_v40 }
 0x21a   : > { %v1773_v44 = vpop.eup %1772  ;;  %v2404_v48 = vpop.f32.mrf.mxu1  ;;  %v835_v36 = vadd.f32 %v2383_v18, %v2334_v23  ;;  %v841_v18 = vadd.f32 %v2393_v33, %v2334_v23 }
 0x21b   : > { %v1018_v30 = vmul.f32 0.49, %v1773_v44  ;;  %v958_v50 = vmul.f32 0.5, %v843_v43  ;;  %v1176_v51 = vadd.f32 %v1144_v46, %v1080_v45  ;;  %v1113_v55 = vsub.f32 1.0, %v2402_v47  ;;  %v307_v46 = vld [vmem:[%s2157_s13 + $0xa8] sm:$0xff] }
 0x21c   : > { %v848_v56 = vpop.f32.mrf.mxu1  ;;  %v1081_v59 = vmul.f32 %v2402_v47, %v299_v49 }
 0x21d   : > { %v2410_v57 = vadd.f32 0.5, %v1018_v30  ;;  %1780 = vtanh.f32 %v958_v50  ;;  %v849_v58 = vadd.f32 %v848_v56, %v2323_v0  ;;  %1208 = vst [vmem:[%s2354_s18 + $0x28] sm:$0xff] %v1176_v51  ;;  %v1145_v60 = vmul.f32 %v1113_v55, %v821_v52 }
 0x21e   : > { %v2416_v63 = vpop.f32.mrf.mxu1  ;;  %v1775_v1 = vpop.eup %1774 }
 0x21f   : > { %v1114_v11 = vsub.f32 1.0, %v2410_v57  ;;  %v959_v2 = vmul.f32 0.5, %v849_v58  ;;  %v1177_v3 = vadd.f32 %v1145_v60, %v1081_v59  ;;  %v1019_v8 = vmul.f32 0.49, %v1775_v1  ;;  %v309_v1 = vld [vmem:[%s2157_s13 + $0xb8] sm:$0xff] }
 0x220   : > { %v852_v5 = vpop.f32.mrf.mxu1  ;;  %v1082_v6 = vmul.f32 %v2410_v57, %v301_v61 }
 0x221   : > { %v1146_v7 = vmul.f32 %v1114_v11, %v825_v42  ;;  %1782 = vtanh.f32 %v959_v2  ;;  %v853_v9 = vadd.f32 %v852_v5, %v2323_v0  ;;  %1209 = vst [vmem:[%s2354_s18 + $0x30] sm:$0xff] %v1177_v3  ;;  %v2424_v10 = vadd.f32 0.5, %v1019_v8 }
 0x222   : > { %v2426_v12 = vpop.f32.mrf.mxu1  ;;  %v1777_v13 = vpop.eup %1776  ;;  %v845_v11 = vadd.f32 %v2404_v48, %v2334_v23 }
 0x223   : > { %v1178_v54 = vadd.f32 %v1146_v7, %v1082_v6  ;;  %v960_v17 = vmul.f32 0.5, %v853_v9  ;;  %v1115_v19 = vsub.f32 1.0, %v2424_v10  ;;  %v1020_v20 = vmul.f32 0.49, %v1777_v13 }
 0x224   : > { %v858_v22 = vpop.f32.mrf.mxu1  ;;  %v1083_v27 = vmul.f32 %v2424_v10, %v303_v16 }
 0x225   : > { %1210 = vst [vmem:[%s2354_s18 + $0x38] sm:$0xff] %v1178_v54  ;;  %1784 = vtanh.f32 %v960_v17  ;;  %v859_v24 = vadd.f32 %v858_v22, %v2323_v0  ;;  %v1147_v28 = vmul.f32 %v1115_v19, %v831_v15  ;;  %v2435_v29 = vadd.f32 0.5, %v1020_v20  ;;  %v311_v17 = vld [vmem:[%s2157_s13 + $0xc8] sm:$0xff] }
 0x226   : > { %v1779_v25 = vpop.eup %1778  ;;  %v2437_v31 = vpop.f32.mrf.mxu1  ;;  %v851_v20 = vadd.f32 %v2416_v63, %v2334_v23  ;;  %v855_v63 = vadd.f32 %v2426_v12, %v2334_v23 }
 0x227   : > { %v1021_v4 = vmul.f32 0.49, %v1779_v25  ;;  %v961_v21 = vmul.f32 0.5, %v859_v24  ;;  %v1179_v35 = vadd.f32 %v1147_v28, %v1083_v27  ;;  %v1116_v37 = vsub.f32 1.0, %v2435_v29 }
 0x228   : > { %v862_v39 = vpop.f32.mrf.mxu1  ;;  %v1084_v44 = vmul.f32 %v2435_v29, %v305_v34 }
 0x229   : > { %v2443_v40 = vadd.f32 0.5, %v1021_v4  ;;  %1786 = vtanh.f32 %v961_v21  ;;  %v863_v41 = vadd.f32 %v862_v39, %v2323_v0  ;;  %1211 = vst [vmem:[%s2354_s18 + $0x40] sm:$0xff] %v1179_v35  ;;  %v1148_v45 = vmul.f32 %v1116_v37, %v835_v36  ;;  %v313_v21 = vld [vmem:[%s2157_s13 + $0xd8] sm:$0xff] }
 0x22a   : > { %v1781_v43 = vpop.eup %1780  ;;  %v2449_v49 = vpop.f32.mrf.mxu1 }
 0x22b   : > { %v1117_v30 = vsub.f32 1.0, %v2443_v40  ;;  %v1022_v50 = vmul.f32 0.49, %v1781_v43  ;;  %v1180_v51 = vadd.f32 %v1148_v45, %v1084_v44  ;;  %v962_v52 = vmul.f32 0.5, %v863_v41 }
 0x22c   : > { %v868_v55 = vpop.f32.mrf.mxu1  ;;  %v1085_v56 = vmul.f32 %v2443_v40, %v307_v46 }
 0x22d   : > { %v1149_v58 = vmul.f32 %v1117_v30, %v841_v18  ;;  %v2455_v59 = vadd.f32 0.5, %v1022_v50  ;;  %v869_v60 = vadd.f32 %v868_v55, %v2323_v0  ;;  %1212 = vst [vmem:[%s2354_s18 + $0x48] sm:$0xff] %v1180_v51  ;;  %1788 = vtanh.f32 %v962_v52  ;;  %v315_v30 = vld [vmem:[%s2157_s13 + $0xe8] sm:$0xff] }
 0x22e   : > { %v1783_v61 = vpop.eup %1782  ;;  %v2460_v42 = vpop.f32.mrf.mxu1  ;;  %v861_v52 = vadd.f32 %v2437_v31, %v2334_v23 }
 0x22f   : > { %v1181_v33 = vadd.f32 %v1149_v58, %v1085_v56  ;;  %v1118_v2 = vsub.f32 1.0, %v2455_v59  ;;  %v1023_v3 = vmul.f32 0.49, %v1783_v61  ;;  %v963_v8 = vmul.f32 0.5, %v869_v60 }
 0x230   : > { %v872_v5 = vpop.f32.mrf.mxu1  ;;  %v1086_v6 = vmul.f32 %v2455_v59, %v309_v1 }
 0x231   : > { %1213 = vst [vmem:[%s2354_s18 + $0x50] sm:$0xff] %v1181_v33  ;;  %v1150_v7 = vmul.f32 %v1118_v2, %v845_v11  ;;  %v873_v9 = vadd.f32 %v872_v5, %v2323_v0  ;;  %v2468_v54 = vadd.f32 0.5, %v1023_v3  ;;  %1790 = vtanh.f32 %v963_v8  ;;  %v317_v8 = vld [vmem:[%s2157_s13 + $0xf8] sm:$0xff] }
 0x232   : > { %v1785_v13 = vpop.eup %1784  ;;  %v2470_v16 = vpop.f32.mrf.mxu1 }
 0x233   : > { %v1182_v48 = vadd.f32 %v1150_v7, %v1086_v6  ;;  %v1024_v15 = vmul.f32 0.49, %v1785_v13  ;;  %v964_v19 = vmul.f32 0.5, %v873_v9  ;;  %v1119_v22 = vsub.f32 1.0, %v2468_v54 }
 0x234   : > { %v878_v24 = vpop.f32.mrf.mxu1  ;;  %v1087_v34 = vmul.f32 %v2468_v54, %v311_v17  ;;  %v865_v6 = vadd.f32 %v2449_v49, %v2334_v23 }
 0x235   : > { %1214 = vst [vmem:[%s2354_s18 + $0x58] sm:$0xff] %v1182_v48  ;;  %v2477_v25 = vadd.f32 0.5, %v1024_v15  ;;  %1792 = vtanh.f32 %v964_v19  ;;  %v879_v27 = vadd.f32 %v878_v24, %v2323_v0  ;;  %v1151_v4 = vmul.f32 %v1119_v22, %v851_v20  ;;  %v319_v24 = vld [vmem:[%s2157_s13 + $0x108] sm:$0xff] }
 0x236   : > { %v1787_v28 = vpop.eup %1786  ;;  %v2482_v35 = vpop.f32.mrf.mxu1 }
 0x237   : > { %v1120_v36 = vsub.f32 1.0, %v2477_v25  ;;  %v1025_v37 = vmul.f32 0.49, %v1787_v28  ;;  %v1183_v39 = vadd.f32 %v1151_v4, %v1087_v34  ;;  %v965_v41 = vmul.f32 0.5, %v879_v27 }
 0x238   : > { %v882_v43 = vpop.f32.mrf.mxu1  ;;  %v1088_v44 = vmul.f32 %v2477_v25, %v313_v21  ;;  %v871_v34 = vadd.f32 %v2460_v42, %v2334_v23  ;;  %v875_v42 = vadd.f32 %v2470_v16, %v2334_v23 }
 0x239   : > { %v1152_v45 = vmul.f32 %v1120_v36, %v855_v63  ;;  %v2488_v46 = vadd.f32 0.5, %v1025_v37  ;;  %v883_v18 = vadd.f32 %v882_v43, %v2323_v0  ;;  %1215 = vst [vmem:[%s2354_s18 + $0x60] sm:$0xff] %v1183_v39  ;;  %1794 = vtanh.f32 %v965_v41  ;;  %v321_v41 = vld [vmem:[%s2157_s13 + $0x118] sm:$0xff] }
 0x23a   : > { %v2493_v50 = vpop.f32.mrf.mxu1  ;;  %v1789_v12 = vpop.eup %1788 }
 0x23b   : > { %v1184_v51 = vadd.f32 %v1152_v45, %v1088_v44  ;;  %v1121_v55 = vsub.f32 1.0, %v2488_v46  ;;  %v1026_v56 = vmul.f32 0.49, %v1789_v12  ;;  %v966_v58 = vmul.f32 0.5, %v883_v18 }
 0x23c   : > { %v888_v60 = vpop.f32.mrf.mxu1  ;;  %v1089_v61 = vmul.f32 %v2488_v46, %v315_v30 }
 0x23d   : > { %1216 = vst [vmem:[%s2354_s18 + $0x68] sm:$0xff] %v1184_v51  ;;  %v1153_v1 = vmul.f32 %v1121_v55, %v861_v52  ;;  %v889_v33 = vadd.f32 %v888_v60, %v2323_v0  ;;  %v2501_v11 = vadd.f32 0.5, %v1026_v56  ;;  %1796 = vtanh.f32 %v966_v58 }
 0x23e   : > { %v2503_v2 = vpop.f32.mrf.mxu1  ;;  %v1791_v3 = vpop.eup %1790 }
 0x23f   : > { %v1185_v31 = vadd.f32 %v1153_v1, %v1089_v61  ;;  %v967_v5 = vmul.f32 0.5, %v889_v33  ;;  %v1122_v7 = vsub.f32 1.0, %v2501_v11  ;;  %v1027_v9 = vmul.f32 0.49, %v1791_v3  ;;  %v323_v1 = vld [vmem:[%s2157_s13 + $0x128] sm:$0xff] }
 0x240   : > { %v892_v13 = vpop.f32.mrf.mxu1  ;;  %v1090_v15 = vmul.f32 %v2501_v11, %v317_v8  ;;  %v881_v3 = vadd.f32 %v2482_v35, %v2334_v23  ;;  %v325_v35 = vld [vmem:[%s2157_s13 + $0x138] sm:$0xff] }
 0x241   : > { %1217 = vst [vmem:[%s2354_s18 + $0x70] sm:$0xff] %v1185_v31  ;;  %1798 = vtanh.f32 %v967_v5  ;;  %v893_v48 = vadd.f32 %v892_v13, %v2323_v0  ;;  %v1154_v19 = vmul.f32 %v1122_v7, %v865_v6  ;;  %v2512_v20 = vadd.f32 0.5, %v1027_v9 }
 0x242   : > { %v1793_v17 = vpop.eup %1792  ;;  %v2514_v22 = vpop.f32.mrf.mxu1 }
 0x243   : > { %v1028_v49 = vmul.f32 0.49, %v1793_v17  ;;  %v968_v27 = vmul.f32 0.5, %v893_v48  ;;  %v1186_v28 = vadd.f32 %v1154_v19, %v1090_v15  ;;  %v1123_v4 = vsub.f32 1.0, %v2512_v20 }
 0x244   : > { %v898_v21 = vpop.f32.mrf.mxu1  ;;  %v1091_v37 = vmul.f32 %v2512_v20, %v319_v24  ;;  %v2015_v15 = vmov 1.0  }
 0x245   : > { %v2520_v63 = vadd.f32 0.5, %v1028_v49  ;;  %1800 = vtanh.f32 %v968_v27  ;;  %v899_v36 = vadd.f32 %v898_v21, %v2323_v0  ;;  %1218 = vst [vmem:[%s2354_s18 + $0x78] sm:$0xff] %v1186_v28  ;;  %v1155_v39 = vmul.f32 %v1123_v4, %v871_v34  ;;  %1618 = vmatprep.mubr.f32.mxu0 %v2015_v15  ;;  %v327_v21 = vld [vmem:[%s2157_s13 + $0x148] sm:$0xff] }
 0x246   : > { %v2526_v43 = vpop.f32.mrf.mxu1  ;;  %v1795_v44 = vpop.eup %1794  ;;  %v885_v27 = vadd.f32 %v2493_v50, %v2334_v23  ;;  %v891_v50 = vadd.f32 %v2503_v2, %v2334_v23 }
 0x247   : > { %v1124_v45 = vsub.f32 1.0, %v2520_v63  ;;  %v969_v18 = vmul.f32 0.5, %v899_v36  ;;  %v1187_v30 = vadd.f32 %v1155_v39, %v1091_v37  ;;  %v1029_v12 = vmul.f32 0.49, %v1795_v44 }
 0x248   : > { %v902_v51 = vpop.f32.mrf.mxu1  ;;  %v1092_v52 = vmul.f32 %v2520_v63, %v321_v41 }
 0x249   : > { %v1156_v55 = vmul.f32 %v1124_v45, %v875_v42  ;;  %1802 = vtanh.f32 %v969_v18  ;;  %v903_v56 = vadd.f32 %v902_v51, %v2323_v0  ;;  %1219 = vst [vmem:[%s2354_s18 + $0x80] sm:$0xff] %v1187_v30  ;;  %v2534_v58 = vadd.f32 0.5, %v1029_v12 }
 0x24a   : > { %v2536_v60 = vpop.f32.mrf.mxu1  ;;  %v1797_v61 = vpop.eup %1796 }
 0x24b   : > { %v1188_v16 = vadd.f32 %v1156_v55, %v1092_v52  ;;  %v970_v33 = vmul.f32 0.5, %v903_v56  ;;  %v1125_v31 = vsub.f32 1.0, %v2534_v58  ;;  %v1030_v8 = vmul.f32 0.49, %v1797_v61 }
 0x24c   : > { %v908_v5 = vpop.f32.mrf.mxu1  ;;  %v1093_v9 = vmul.f32 %v2534_v58, %v323_v1 }
 0x24d   : > { %1220 = vst [vmem:[%s2354_s18 + $0x88] sm:$0xff] %v1188_v16  ;;  %1804 = vtanh.f32 %v970_v33  ;;  %v909_v6 = vadd.f32 %v908_v5, %v2323_v0  ;;  %v1157_v13 = vmul.f32 %v1125_v31, %v881_v3  ;;  %v2545_v48 = vadd.f32 0.5, %v1030_v8  ;;  %v329_v16 = vld [vmem:[%s2157_s13 + $0x158] sm:$0xff] }
 0x24e   : > { %v1799_v7 = vpop.eup %1798  ;;  %v2547_v17 = vpop.f32.mrf.mxu1  ;;  %v895_v33 = vadd.f32 %v2514_v22, %v2334_v23 }
 0x24f   : > { %v1031_v19 = vmul.f32 0.49, %v1799_v7  ;;  %v971_v24 = vmul.f32 0.5, %v909_v6  ;;  %v1189_v49 = vadd.f32 %v1157_v13, %v1093_v9  ;;  %v1126_v28 = vsub.f32 1.0, %v2545_v48 }
 0x250   : > { %v912_v34 = vpop.f32.mrf.mxu1  ;;  %v1094_v39 = vmul.f32 %v2545_v48, %v325_v35 }
 0x251   : > { %v2554_v4 = vadd.f32 0.5, %v1031_v19  ;;  %1806 = vtanh.f32 %v971_v24  ;;  %v913_v36 = vadd.f32 %v912_v34, %v2323_v0  ;;  %1221 = vst [vmem:[%s2354_s18 + $0x90] sm:$0xff] %v1189_v49  ;;  %v1158_v41 = vmul.f32 %v1126_v28, %v885_v27  ;;  %v331_v19 = vld [vmem:[%s2157_s13 + $0x168] sm:$0xff] }
 0x252   : > { %v1801_v37 = vpop.eup %1800  ;;  %v2560_v44 = vpop.f32.mrf.mxu1  ;;  %v901_v49 = vadd.f32 %v2526_v43, %v2334_v23 }
 0x253   : > { %v1127_v42 = vsub.f32 1.0, %v2554_v4  ;;  %v1032_v45 = vmul.f32 0.49, %v1801_v37  ;;  %v972_v18 = vmul.f32 0.5, %v913_v36  ;;  %v1190_v30 = vadd.f32 %v1158_v41, %v1094_v39 }
 0x254   : > { %v1095_v12 = vmul.f32 %v2554_v4, %v327_v21  ;;  %v918_v51 = vpop.f32.mrf.mxu1 }
 0x255   : > { %v1159_v52 = vmul.f32 %v1127_v42, %v891_v50  ;;  %v2566_v55 = vadd.f32 0.5, %v1032_v45  ;;  %1808 = vtanh.f32 %v972_v18  ;;  %v919_v56 = vadd.f32 %v918_v51, %v2323_v0  ;;  %1222 = vst [vmem:[%s2354_s18 + $0x98] sm:$0xff] %v1190_v30  ;;  %v333_v42 = vld [vmem:[%s2157_s13 + $0x178] sm:$0xff] }
 0x256   : > { %v1803_v61 = vpop.eup %1802  ;;  %v2571_v2 = vpop.f32.mrf.mxu1  ;;  %v905_v18 = vadd.f32 %v2536_v60, %v2334_v23 }
 0x257   : > { %v1191_v1 = vadd.f32 %v1159_v52, %v1095_v12  ;;  %v1128_v3 = vsub.f32 1.0, %v2566_v55  ;;  %v1033_v31 = vmul.f32 0.49, %v1803_v61  ;;  %v973_v8 = vmul.f32 0.5, %v919_v56 }
 0x258   : > { %v922_v5 = vpop.f32.mrf.mxu1  ;;  %v1096_v6 = vmul.f32 %v2566_v55, %v329_v16 }
 0x259   : > { %1223 = vst [vmem:[%s2354_s18 + $0xa0] sm:$0xff] %v1191_v1  ;;  %v1160_v7 = vmul.f32 %v1128_v3, %v895_v33  ;;  %v2578_v9 = vadd.f32 0.5, %v1033_v31  ;;  %v923_v13 = vadd.f32 %v922_v5, %v2323_v0  ;;  %1810 = vtanh.f32 %v973_v8  ;;  %v335_v3 = vld [vmem:[%s2157_s13 + $0x188] sm:$0xff] }
 0x25a   : > { %v1805_v35 = vpop.eup %1804  ;;  %v2582_v24 = vpop.f32.mrf.mxu1  ;;  %v911_v8 = vadd.f32 %v2547_v17, %v2334_v23 }
 0x25b   : > { %v1192_v22 = vadd.f32 %v1160_v7, %v1096_v6  ;;  %v1129_v27 = vsub.f32 1.0, %v2578_v9  ;;  %v1034_v28 = vmul.f32 0.49, %v1805_v35  ;;  %v974_v34 = vmul.f32 0.5, %v923_v13 }
 0x25c   : > { %v928_v21 = vpop.f32.mrf.mxu1  ;;  %v1097_v36 = vmul.f32 %v2578_v9, %v331_v19 }
 0x25d   : > { %1224 = vst [vmem:[%s2354_s18 + $0xa8] sm:$0xff] %v1192_v22  ;;  %v1161_v37 = vmul.f32 %v1129_v27, %v901_v49  ;;  %v2589_v39 = vadd.f32 0.5, %v1034_v28  ;;  %v929_v41 = vadd.f32 %v928_v21, %v2323_v0  ;;  %1812 = vtanh.f32 %v974_v34  ;;  %v337_v27 = vld [vmem:[%s2157_s13 + $0x198] sm:$0xff] }
 0x25e   : > { %v1807_v50 = vpop.eup %1806  ;;  %v2593_v45 = vpop.f32.mrf.mxu1  ;;  %v915_v21 = vadd.f32 %v2560_v44, %v2334_v23 }
 0x25f   : > { %v1193_v43 = vadd.f32 %v1161_v37, %v1097_v36  ;;  %v1130_v30 = vsub.f32 1.0, %v2589_v39  ;;  %v1035_v12 = vmul.f32 0.49, %v1807_v50  ;;  %v975_v51 = vmul.f32 0.5, %v929_v41 }
 0x260   : > { %v932_v52 = vpop.f32.mrf.mxu1  ;;  %v1098_v56 = vmul.f32 %v2589_v39, %v333_v42 }
 0x261   : > { %1225 = vst [vmem:[%s2354_s18 + $0xb0] sm:$0xff] %v1193_v43  ;;  %v1162_v61 = vmul.f32 %v1130_v30, %v905_v18  ;;  %v2600_v16 = vadd.f32 0.5, %v1035_v12  ;;  %v933_v1 = vadd.f32 %v932_v52, %v2323_v0  ;;  %1814 = vtanh.f32 %v975_v51  ;;  %v339_v52 = vld [vmem:[%s2157_s13 + $0x1a8] sm:$0xff] }
 0x262   : > { %v1809_v33 = vpop.eup %1808  ;;  %v2604_v31 = vpop.f32.mrf.mxu1 }
 0x263   : > { %v1194_v60 = vadd.f32 %v1162_v61, %v1098_v56  ;;  %v1131_v5 = vsub.f32 1.0, %v2600_v16  ;;  %v1036_v6 = vmul.f32 0.49, %v1809_v33  ;;  %v976_v7 = vmul.f32 0.5, %v933_v1 }
 0x264   : > { %v938_v13 = vpop.f32.mrf.mxu1  ;;  %v1099_v35 = vmul.f32 %v2600_v16, %v335_v3  ;;  %v921_v56 = vadd.f32 %v2571_v2, %v2334_v23 }
 0x265   : > { %1226 = vst [vmem:[%s2354_s18 + $0xb8] sm:$0xff] %v1194_v60  ;;  %v1163_v19 = vmul.f32 %v1131_v5, %v911_v8  ;;  %v2611_v22 = vadd.f32 0.5, %v1036_v6  ;;  %v939_v49 = vadd.f32 %v938_v13, %v2323_v0  ;;  %1816 = vtanh.f32 %v976_v7  ;;  %v341_v8 = vld [vmem:[%s2157_s13 + $0x1b8] sm:$0xff] }
 0x266   : > { %v940_v28 = vpop.f32.mrf.mxu1  ;;  %v1811_v34 = vpop.eup %1810  ;;  %v925_v6 = vadd.f32 %v2582_v24, %v2334_v23 }
 0x267   : > { %v1195_v17 = vadd.f32 %v1163_v19, %v1099_v35  ;;  %v1132_v36 = vsub.f32 1.0, %v2611_v22  ;;  %v977_v37 = vmul.f32 0.5, %v939_v49  ;;  %v1037_v41 = vmul.f32 0.49, %v1811_v34 }
 0x268   : > { %v942_v50 = vpop.f32.mrf.mxu1  ;;  %v1100_v42 = vmul.f32 %v2611_v22, %v337_v27  ;;  %v343_v27 = vld [vmem:[%s2157_s13 + $0x1c8] sm:$0xff] }
 0x269   : > { %1227 = vst [vmem:[%s2354_s18 + $0xc0] sm:$0xff] %v1195_v17  ;;  %v1164_v43 = vmul.f32 %v1132_v36, %v915_v21  ;;  %1818 = vtanh.f32 %v977_v37  ;;  %v943_v18 = vadd.f32 %v942_v50, %v2323_v0  ;;  %v2621_v30 = vadd.f32 0.5, %v1037_v41 }
 0x26a   : > { %v1813_v12 = vpop.eup %1812  ;;  %v931_v17 = vadd.f32 %v2593_v45, %v2334_v23 }
 0x26b   : > { %v1196_v51 = vadd.f32 %v1164_v43, %v1100_v42  ;;  %v978_v44 = vmul.f32 0.5, %v943_v18  ;;  %v1133_v61 = vsub.f32 1.0, %v2621_v30  ;;  %v1038_v1 = vmul.f32 0.49, %v1813_v12  ;;  %v345_v42 = vld [vmem:[%s2157_s13 + $0x1d8] sm:$0xff] }
 0x26c   : > { %v1101_v33 = vmul.f32 %v2621_v30, %v339_v52  ;;  %v935_v12 = vadd.f32 %v2604_v31, %v2334_v23 }
 0x26d   : > { %1228 = vst [vmem:[%s2354_s18 + $0xc8] sm:$0xff] %v1196_v51  ;;  %1820 = vtanh.f32 %v978_v44  ;;  %v1165_v3 = vmul.f32 %v1133_v61, %v921_v56  ;;  %v1070_v0 = vadd.f32 0.5, %v1038_v1  ;;  %v347_v61 = vld [vmem:[%s2157_s13 + $0x1e8] sm:$0xff]  ;;  %v941_v1 = vadd.f32 %v940_v28, %v2334_v23 }
 0x26e   : > { %v1815_v60 = vpop.eup %1814  ;;  %1822 = vlog2.f32 %v2501_v11 }
 0x26f   : > { %v1197_v5 = vadd.f32 %v1165_v3, %v1101_v33  ;;  %v1134_v7 = vsub.f32 1.0, %v1070_v0  ;;  %v1039_v13 = vmul.f32 0.49, %v1815_v60  ;;  %v1102_v2 = vmul.f32 %v1070_v0, %v341_v8  ;;  %v944_v8 = vpop.f32.mrf.mxu1 }
 0x271   : > { %1229 = vst [vmem:[%s2354_s18 + $0xd0] sm:$0xff] %v1197_v5  ;;  %v1166_v35 = vmul.f32 %v1134_v7, %v925_v6  ;;  %v1071_v19 = vadd.f32 0.5, %v1039_v13  ;;  %v349_v7 = vld [vmem:[%s2157_s13 + $0x1f8] sm:$0xff]  ;;  %s1560_s13 = sshll.u32 %s2077_s25, 13 }
 0x272   : > { %v1817_v49 = vpop.eup %1816  ;;  %s1471_s11 = scalar_lea.hbm %s2754_s5, %s1560_s13 }
 0x273   : > { %v1198_v34 = vadd.f32 %v1166_v35, %v1102_v2  ;;  %v1135_v21 = vsub.f32 1.0, %v1071_v19  ;;  %v1040_v36 = vmul.f32 0.49, %v1817_v49  ;;  %v1103_v24 = vmul.f32 %v1071_v19, %v343_v27  ;;  %s2681_s8 = scalar_lea.hbm %s1471_s11, 128 }
 0x274   : > { %v945_v2 = vadd.f32 %v944_v8, %v2334_v23 }
 0x275   : > { %1230 = vst [vmem:[%s2354_s18 + $0xd8] sm:$0xff] %v1198_v34  ;;  %v1167_v41 = vmul.f32 %v1135_v21, %v931_v17  ;;  %v1072_v50 = vadd.f32 0.5, %v1040_v36 }
 0x276   : > { %v1819_v37 = vpop.eup %1818 }
 0x277   : > { %v1041_v43 = vmul.f32 0.49, %v1819_v37  ;;  %v1199_v18 = vadd.f32 %v1167_v41, %v1103_v24  ;;  %v1136_v51 = vsub.f32 1.0, %v1072_v50  ;;  %v1104_v45 = vmul.f32 %v1072_v50, %v345_v42 }
 0x279   : > { %v1073_v52 = vadd.f32 0.5, %v1041_v43  ;;  %1231 = vst [vmem:[%s2354_s18 + $0xe0] sm:$0xff] %v1199_v18  ;;  %v1168_v56 = vmul.f32 %v1136_v51, %v935_v12 }
 0x27a   : > { %v1821_v44 = vpop.eup %1820 }
 0x27b   : > { %v1137_v33 = vsub.f32 1.0, %v1073_v52  ;;  %v1042_v3 = vmul.f32 0.49, %v1821_v44  ;;  %v1200_v60 = vadd.f32 %v1168_v56, %v1104_v45  ;;  %v1105_v5 = vmul.f32 %v1073_v52, %v347_v61  ;;  %v1823_v11 = vpop.eup %1822 }
 0x27c   : > { %1824 = vlog2.f32 %v1073_v52  ;;  %v1266_v21 = vmul.f32 0.6931472, %v1823_v11 }
 0x27d   : > { %v1169_v31 = vmul.f32 %v1137_v33, %v941_v1  ;;  %v1074_v6 = vadd.f32 0.5, %v1042_v3  ;;  %1232 = vst [vmem:[%s2354_s18 + $0xe8] sm:$0xff] %v1200_v60 }
 0x27f   : > { %v1201_v13 = vadd.f32 %v1169_v31, %v1105_v5  ;;  %v1138_v35 = vsub.f32 1.0, %v1074_v6  ;;  %1826 = vlog2.f32 %v1074_v6  ;;  %v1106_v28 = vmul.f32 %v1074_v6, %v349_v7 }
 0x280   : > { %1828 = vlog2.f32 %v2488_v46 }
 0x281   : > { %1233 = vst [vmem:[%s2354_s18 + $0xf0] sm:$0xff] %v1201_v13  ;;  %v1170_v49 = vmul.f32 %v1138_v35, %v945_v2  ;;  %1830 = vlog2.f32 %v1072_v50 }
 0x282   : > { %1832 = vlog2.f32 %v2477_v25 }
 0x283   : > { %v1202_v27 = vadd.f32 %v1170_v49, %v1106_v28  ;;  %1834 = vlog2.f32 %v1071_v19 }
 0x284   : > { %1836 = vlog2.f32 %v2468_v54 }
 0x285   : > { %1234 = vst [vmem:[%s2354_s18 + $0xf8] sm:$0xff] %v1202_v27  ;;  %1838 = vlog2.f32 %v1070_v0 }
 0x286   : > { %1840 = vlog2.f32 %v2455_v59 }
 0x287   : > { %1842 = vlog2.f32 %v2621_v30 }
 0x288   : > { %1844 = vlog2.f32 %v2443_v40 }
 0x289   : > { %v1825_v34 = vpop.eup %1824  ;;  %1846 = vlog2.f32 %v2611_v22 }
 0x28a   : > { %v1296_v37 = vmul.f32 0.6931472, %v1825_v34  ;;  %1848 = vlog2.f32 %v2435_v29 }
 0x28b   : > { %1850 = vlog2.f32 %v2600_v16 }
 0x28c   : > { %v1827_v17 = vpop.eup %1826  ;;  %1852 = vlog2.f32 %v2424_v10 }
 0x28d   : > { %v1298_v23 = vmul.f32 0.6931472, %v1827_v17  ;;  %v1829_v36 = vpop.eup %1828  ;;  %1854 = vlog2.f32 %v2589_v39 }
 0x28e   : > { %v1831_v46 = vpop.eup %1830  ;;  %v1264_v25 = vmul.f32 0.6931472, %v1829_v36  ;;  %1856 = vlog2.f32 %v2410_v57 }
 0x28f   : > { %1586 = vmatprep.subr.mxu0 %v1298_v23  ;;  %v1833_v19 = vpop.eup %1832  ;;  %v1294_v54 = vmul.f32 0.6931472, %v1831_v46  ;;  %1858 = vlog2.f32 %v2578_v9 }
 0x290   : > { %1587 = vmatpush3.xpose.msra.mxu0 %v1266_v21  ;;  %v1835_v0 = vpop.eup %1834  ;;  %v1262_v59 = vmul.f32 0.6931472, %v1833_v19  ;;  %1860 = vlog2.f32 %v2402_v47 }
 0x291   : > { %1588 = vmatprep.subr.mxu0 %v1296_v37  ;;  %v1837_v24 = vpop.eup %1836  ;;  %v1292_v41 = vmul.f32 0.6931472, %v1835_v0  ;;  %1862 = vlog2.f32 %v2566_v55 }
 0x292   : > { %v1839_v30 = vpop.eup %1838  ;;  %v1260_v40 = vmul.f32 0.6931472, %v1837_v24  ;;  %1864 = vlog2.f32 %v2391_v32 }
 0x293   : > { %v1841_v50 = vpop.eup %1840  ;;  %v1290_v42 = vmul.f32 0.6931472, %v1839_v30  ;;  %1866 = vlog2.f32 %v2554_v4 }
 0x294   : > { %1589 = vmatpush3.xpose.msra.mxu0 %v1264_v25  ;;  %v1843_v22 = vpop.eup %1842  ;;  %v1258_v29 = vmul.f32 0.6931472, %v1841_v50  ;;  %1868 = vlog2.f32 %v2378_v14 }
 0x295   : > { %1590 = vmatprep.subr.mxu0 %v1294_v54  ;;  %v1845_v43 = vpop.eup %1844  ;;  %v1288_v18 = vmul.f32 0.6931472, %v1843_v22  ;;  %1870 = vlog2.f32 %v2545_v48 }
 0x296   : > { %v1847_v16 = vpop.eup %1846  ;;  %v1256_v10 = vmul.f32 0.6931472, %v1845_v43  ;;  %1872 = vlog2.f32 %v2367_v62 }
 0x297   : > { %v1849_v12 = vpop.eup %1848  ;;  %v1286_v51 = vmul.f32 0.6931472, %v1847_v16  ;;  %1874 = vlog2.f32 %v2534_v58 }
 0x298   : > { %1591 = vmatpush3.xpose.msra.mxu0 %v1262_v59  ;;  %v1851_v39 = vpop.eup %1850  ;;  %v1254_v57 = vmul.f32 0.6931472, %v1849_v12  ;;  %1876 = vlog2.f32 %v2359_v53 }
 0x299   : > { %1592 = vmatprep.subr.mxu0 %v1292_v41  ;;  %v1853_v52 = vpop.eup %1852  ;;  %v1284_v44 = vmul.f32 0.6931472, %v1851_v39  ;;  %1878 = vlog2.f32 %v2520_v63 }
 0x29a   : > { %v1855_v9 = vpop.eup %1854  ;;  %v1252_v47 = vmul.f32 0.6931472, %v1853_v52  ;;  %1880 = vlog2.f32 %v2346_v38 }
 0x29b   : > { %v1857_v45 = vpop.eup %1856  ;;  %v1282_v56 = vmul.f32 0.6931472, %v1855_v9  ;;  %1882 = vlog2.f32 %v2512_v20 }
 0x29c   : > { %1593 = vmatpush3.xpose.msra.mxu0 %v1260_v40  ;;  %v1859_v55 = vpop.eup %1858  ;;  %v1250_v32 = vmul.f32 0.6931472, %v1857_v45  ;;  %1884 = vlog2.f32 %v2336_v26 }
 0x29d   : > { %1594 = vmatprep.subr.mxu0 %v1290_v42  ;;  %v1861_v61 = vpop.eup %1860  ;;  %v1280_v1 = vmul.f32 0.6931472, %v1859_v55 }
 0x29e   : > { %v1863_v4 = vpop.eup %1862  ;;  %v1248_v14 = vmul.f32 0.6931472, %v1861_v61 }
 0x29f   : > { %v1865_v33 = vpop.eup %1864  ;;  %v1278_v3 = vmul.f32 0.6931472, %v1863_v4 }
 0x2a0   : > { %1595 = vmatpush3.xpose.msra.mxu0 %v1258_v29  ;;  %v1867_v48 = vpop.eup %1866  ;;  %v1246_v62 = vmul.f32 0.6931472, %v1865_v33 }
 0x2a1   : > { %1596 = vmatprep.subr.mxu0 %v1288_v18  ;;  %v1869_v60 = vpop.eup %1868  ;;  %v1276_v8 = vmul.f32 0.6931472, %v1867_v48 }
 0x2a2   : > { %v1871_v58 = vpop.eup %1870  ;;  %v1244_v53 = vmul.f32 0.6931472, %v1869_v60 }
 0x2a3   : > { %v1873_v5 = vpop.eup %1872  ;;  %v1274_v31 = vmul.f32 0.6931472, %v1871_v58 }
 0x2a4   : > { %1597 = vmatpush3.xpose.msra.mxu0 %v1256_v10  ;;  %v1875_v6 = vpop.eup %1874  ;;  %v1242_v63 = vmul.f32 0.6931472, %v1873_v5 }
 0x2a5   : > { %1598 = vmatprep.subr.mxu0 %v1286_v51  ;;  %v1877_v7 = vpop.eup %1876  ;;  %v1272_v13 = vmul.f32 0.6931472, %v1875_v6 }
 0x2a6   : > { %v1879_v38 = vpop.eup %1878  ;;  %v1240_v2 = vmul.f32 0.6931472, %v1877_v7 }
 0x2a7   : > { %v1881_v20 = vpop.eup %1880  ;;  %v1270_v35 = vmul.f32 0.6931472, %v1879_v38 }
 0x2a8   : > { %1599 = vmatpush3.xpose.msra.mxu0 %v1254_v57  ;;  %v1883_v28 = vpop.eup %1882  ;;  %v1238_v26 = vmul.f32 0.6931472, %v1881_v20 }
 0x2a9   : > { %1600 = vmatprep.subr.mxu0 %v1284_v44  ;;  %v1885_v49 = vpop.eup %1884  ;;  %v1268_v27 = vmul.f32 0.6931472, %v1883_v28 }
 0x2aa   : > { %v1236_v11 = vmul.f32 0.6931472, %v1885_v49 }
 0x2ac   : > { %1601 = vmatpush3.xpose.msra.mxu0 %v1252_v47 }
 0x2ad   : > { %1602 = vmatprep.subr.mxu0 %v1282_v56 }
 0x2b0   : > { %1603 = vmatpush3.xpose.msra.mxu0 %v1250_v32 }
 0x2b1   : > { %1604 = vmatprep.subr.mxu0 %v1280_v1 }
 0x2b4   : > { %1605 = vmatpush3.xpose.msra.mxu0 %v1248_v14 }
 0x2b5   : > { %1606 = vmatprep.subr.mxu0 %v1278_v3 }
 0x2b8   : > { %1607 = vmatpush3.xpose.msra.mxu0 %v1246_v62 }
 0x2b9   : > { %1608 = vmatprep.subr.mxu0 %v1276_v8 }
 0x2bc   : > { %1609 = vmatpush3.xpose.msra.mxu0 %v1244_v53 }
 0x2bd   : > { %1610 = vmatprep.subr.mxu0 %v1274_v31 }
 0x2c0   : > { %1611 = vmatpush3.xpose.msra.mxu0 %v1242_v63 }
 0x2c1   : > { %1612 = vmatprep.subr.mxu0 %v1272_v13 }
 0x2c4   : > { %1613 = vmatpush3.xpose.msra.mxu0 %v1240_v2 }
 0x2c5   : > { %1614 = vmatprep.subr.mxu0 %v1270_v35 }
 0x2c8   : > { %1615 = vmatpush3.xpose.msra.mxu0 %v1238_v26 }
 0x2c9   : > { %1616 = vmatprep.subr.mxu0 %v1268_v27 }
 0x2cc   : > { %1617 = vmatpush3.xpose.msra.mxu0 %v1236_v11 }
 0x2cf   : > { %1619 = vmatmul.mubr.f32.vlgmr.msra.gmra.mxu0 %v2015_v15 }
 0x2d0   : > { %1927 = shalt.err (!%p1924_p10)
}
 0x2d1   : > { %s1940_s7 = scalar_lea.hbm %s1471_s11, 4224  ;;  %s1932_s13 = scalar_lea.hbm %s2754_s5, 16384 }
 0x2d2   : > { %p1929_p0 = scmp.ne.s32.totalorder %s2681_s8, %s1940_s7  ;;  %p1933_p1 = scmp.lt.s32.totalorder %s2681_s8, %s2754_s5 }
 0x2d3   : > { %p1934_p3 = scmp.lt.s32.totalorder %s1932_s13, %s1940_s7 }
 0x2d4   : > { %p1930_p2 = pnand %p1929_p0, %p2766_p12 }
 0x2d5   : > { %p1935_p6 = por %p1934_p3, %p1933_p1 }
 0x2d6   : > { %p1931_p9 = pneg %p1930_p2 }
 0x2d8   : > { %p1936_p11 = pnand %p1935_p6, %p1931_p9 }
 0x2da   : > { %1939 = shalt.err (!%p1936_p11)
}
 0x2db   : > { %s2017_s11 = smov 128   ;;  %s2018_s17 = smov 256  }
 0x2dc   : > { %s2019_s26 = smov 8   ;;  %s1524_s28 = sshll.u32 %s2153_s29, 4 }
 0x2dd   : > { %1670 = dma.vmem_to_hbm [thread:$0]  (%p2766_p12), %s2683_s14, 4096, %s2681_s8, %s1373_s15, %s2017_s11, %s2018_s17, %s2019_s26  }
 0x2de   : > { %s281_s12 = scalar_lea.vmem [#allocation6], %s1524_s28  ;;  %s1561_s16 = sshll.u32 %s2077_s25, 8 }
 0x2df   : > { %s1410_s7 = sshll.u32 %s281_s12, 4  ;;  %s1408_s19 = scalar_lea.hbm %s2755_s6, %s1561_s16  ;;  %s2709_s7 = int_to_ptr.vmem [resolvable:$true] %s1410_s7 }
 0x2e0   : > { %s1378_s20 = scalar_lea.sflag [#allocation7], %s2153_s29  ;;  %s1941_s0 = scalar_lea.vmem %s2709_s7, 256 }
 0x2e1   : > { %p1942_p13 = scmp.ne.s32.totalorder %s2709_s7, %s1941_s0  ;;  %s2020_s25 = smov [#allocation6]  }
 0x2e2   : > { %s1945_s14 = sshll.u32 %s2020_s25, 4  ;;  %s1946_s14 = int_to_ptr.vmem [resolvable:$false] %s1945_s14 }
 0x2e3   : > { %p1943_p4 = pnand %p1942_p13, %p2766_p12  ;;  %s1947_s8 = scalar_lea.vmem %s1946_s14, 512 }
 0x2e4   : > { %p1948_p7 = scmp.lt.s32.totalorder %s2709_s7, %s1946_s14  ;;  %p1949_p8 = scmp.lt.s32.totalorder %s1947_s8, %s1941_s0 }
 0x2e5   : > { %p1944_p5 = pneg %p1943_p4 }
 0x2e6   : > { %p1950_p10 = por %p1949_p8, %p1948_p7 }
 0x2e8   : > { %p1951_p0 = pnand %p1950_p10, %p1944_p5 }
 0x38f   : > { %v1365_v15 = vpop.f32.mrf.mxu0 }
 0x390   : > { %1370 = vst [vmem:[%s281_s12] sm:$0xff] %v1365_v15 }
 0x391   : > { %v1367_v34 = vpop.f32.mrf.mxu0 }
 0x392   : > { %1371 = vst [vmem:[%s281_s12 + $0x8] sm:$0xff] %v1367_v34 }
 0x393   : > { %1954 = shalt.err (!%p1951_p0)
}
 0x394   : > { %s1955_s15 = scalar_lea.hbm %s1408_s19, 256  ;;  %s1959_s17 = scalar_lea.hbm %s2755_s6, 512 }
 0x395   : > { %p1956_p2 = scmp.ne.s32.totalorder %s1408_s19, %s1955_s15  ;;  %p1960_p3 = scmp.lt.s32.totalorder %s1408_s19, %s2755_s6 }
 0x396   : > { %p1961_p6 = scmp.lt.s32.totalorder %s1959_s17, %s1955_s15 }
 0x397   : > { %p1957_p9 = pnand %p1956_p2, %p2766_p12 }
 0x398   : > { %p1962_p11 = por %p1961_p6, %p1960_p3 }
 0x399   : > { %p1958_p1 = pneg %p1957_p9 }
 0x39b   : > { %p1963_p13 = pnand %p1962_p11, %p1958_p1 }
 0x39d   : > { %1966 = shalt.err (!%p1963_p13)
}
 0x39e   : > { %1671 = dma.vmem_to_hbm [thread:$0]  (%p2766_p12), %s2709_s7, 256, %s1408_s19, %s1378_s20  }
 0x39f PF: > { %s1422_s0 = sand.u32 1, %s1997_s21   ;;  %p2767_p4 = scmp.ne.s32.totalorder %s2762_s10, 0 }
 0x3a0   : > { %p2768_p5 = scmp.ge.s32.totalorder %s2009_s24, 2  ;;  %s1423_s12 = scalar_lea.sflag [#allocation4], %s1422_s0 }
 0x3a2   : > { %p1679_p7 = pnand %p2768_p5, %p2767_p4 }
 0x3a4   : > { %p1680_p8 = pneg %p1679_p7 }
 0x3a6   : > { %1988 = dma.done.wait (%p1680_p8), %s1423_s12, 4096  }
 0x3a7   : > { %1990 = vsyncadd (%p1680_p8), %s1423_s12, 4294963200  ;;  %s1432_s16 = scalar_lea.sflag [#allocation7], %s1422_s0 }
 0x3a8   : > { %1992 = dma.done.wait (%p1680_p8), %s1432_s16, 256  }
 0x3a9   : > { %1994 = vsyncadd (%p1680_p8), %s1432_s16, 4294967040  ;;  %p23_p12 = scmp.ge.s32.totalorder %s2081_s27, 4   ;;  %s2769_s21 = smov %s2001_s22 }
 0x3aa   : > { %s2770_s22 = smov %s2005_s23  ;;  %s2771_s23 = smov %s2093_s30 }
 0x3ab   : > { %s2772_s24 = smov %s2081_s27  ;;  %25 = sbr.rel (!%p23_p12) target bundleno = 9 (0x9), region = 102 }
 0x3b0   :  { %1437 = vsyncpa [#allocation3], 1 }
 0x3b1   :  { %1439 = vsyncpa [#allocation3 + $0x1], 1 }
 0x3b2   :  { %1440 = vsyncpa [#allocation4], 1 }
 0x3b3   :  { %1442 = vsyncpa [#allocation4 + $0x1], 1 }
 0x3b4   :  { %1443 = vsyncpa [#allocation7], 1 }
 0x3b5   :  { %1445 = vsyncpa [#allocation7 + $0x1], 1 }

</bundles_post_ra>
